<compile_context>
chip_gen: v6e
topology: v6e:2x2x1
jax: 0.10.0
libtpu: 0.0.40
codegen_flags: <defaults>
</compile_context>

<pallas_src>
import functools

import jax
import jax.numpy as jnp
from jax.experimental import pallas as pl
from jax.experimental.pallas import tpu as pltpu


def _round_up(x, m):
    return ((x + m - 1) // m) * m


def _convdown_kernel(x_ref, w1_ref, b1_ref, w2_ref, b2_ref, o_ref, a_ref,
                     *, H, W, M, A_OFF):
    """One batch image: conv2x2+BN+ReLU -> conv3x3(p=1)+BN+ReLU.

    x_ref : (1, XROWS, Cin)  bf16   flat image rows (+ zero margin)
    w1_ref: (4, Cin, NPAD)   bf16   BN-scaled 2x2 weights, per tap
    b1_ref: (1, NPAD)        f32    fused BN bias
    w2_ref: (9, NPAD, NPAD)  bf16   BN-scaled 3x3 weights, per tap
    b2_ref: (1, NPAD)        f32
    o_ref : (1, M, NPAD)     f32    flat output (garbage rows sliced on host)
    a_ref : (A_ROWS, NPAD)   f32    VMEM scratch for the layer-1 activation
    """
    NPAD = o_ref.shape[-1]
    A_ROWS = a_ref.shape[0]

    # ---- layer 1: 2x2 "valid" conv, BN + ReLU fused ------------------------
    # flat output position m = ho*W + wo reads input flat rows m + i*W + j.
    acc1 = jnp.zeros((M, NPAD), jnp.float32)
    for i in range(2):
        for j in range(2):
            off = i * W + j
            xs = x_ref[0, off:off + M, :]                       # (M, Cin) bf16
            acc1 = acc1 + jnp.dot(xs, w1_ref[i * 2 + j],
                                  preferred_element_type=jnp.float32)
    a1 = jnp.maximum(acc1 + b1_ref[...], 0.0)

    # Zero flat rows that are not valid layer-1 outputs (wo == W-1 or
    # ho == H-1); those slots double as layer-2's zero padding.
    ridx = jax.lax.broadcasted_iota(jnp.int32, (M, 1), 0)
    valid = ((ridx % W) < (W - 1)) & (ridx < (H - 1) * W)
    a1 = jnp.where(valid, a1, 0.0)

    # Stash the activation, surrounded by zero rows, in VMEM scratch.
    a_ref[0:A_OFF, :] = jnp.zeros((A_OFF, NPAD), jnp.float32)
    a_ref[A_OFF:A_OFF + M, :] = a1
    a_ref[A_OFF + M:A_ROWS, :] = jnp.zeros((A_ROWS - A_OFF - M, NPAD),
                                           jnp.float32)

    # ---- layer 2: 3x3 conv with padding 1, BN + ReLU fused ------------------
    acc2 = jnp.zeros((M, NPAD), jnp.float32)
    for i in range(3):
        for j in range(3):
            off = A_OFF + (i - 1) * W + (j - 1)
            asl = a_ref[off:off + M, :].astype(jnp.bfloat16)    # (M, NPAD)
            acc2 = acc2 + jnp.dot(asl, w2_ref[i * 3 + j],
                                  preferred_element_type=jnp.float32)
    o_ref[0] = jnp.maximum(acc2 + b2_ref[...], 0.0)


def conv_down(x_nchw, params, *, eps=1e-5):
    """PyTorch-equivalent ConvDown forward. Input/output in NCHW (f32)."""
    B, Cin, H, W = x_nchw.shape
    w1, w2 = params["w1"], params["w2"]
    Cout = w1.shape[-1]

    NPAD = _round_up(Cout, 128)            # lane-dense output channels
    Ho, Wo = H - 1, W - 1                  # spatial size after the 2x2 conv
    M = H * W                              # flat compute grid (incl. garbage rows)
    XROWS = _round_up(M + W + 1, 16)       # input rows incl. shift margin
    A_OFF = _round_up(W + 1, 16)           # zero margin before the activation
    A_ROWS = _round_up(A_OFF + M + W + 1, 8)

    # Fold conv bias + inference BatchNorm into the weights / a single bias:
    #   relu(((x*w + b) - mu)/sqrt(var+eps)*gamma + beta)
    #     = relu(x*(w*s) + ((b - mu)*s + beta)),  s = gamma/sqrt(var+eps)
    def fold(w, b, g, be, mu, var):
        s = g / jnp.sqrt(var + eps)
        return w * s, (b - mu) * s + be

    w1f, bias1 = fold(w1, params["b1"], params["g1"], params["be1"],
                      params["m1"], params["v1"])
    w2f, bias2 = fold(w2, params["b2"], params["g2"], params["be2"],
                      params["m2"], params["v2"])

    # Lane-dense channel padding (Cout -> NPAD) + bf16 MXU operands.
    w1p = jnp.zeros((4, Cin, NPAD), jnp.float32)
    w1p = w1p.at[:, :, :Cout].set(w1f.reshape(4, Cin, Cout)).astype(jnp.bfloat16)
    w2p = jnp.zeros((9, NPAD, NPAD), jnp.float32)
    w2p = w2p.at[:, :Cout, :Cout].set(w2f.reshape(9, Cout, Cout)).astype(jnp.bfloat16)
    b1p = jnp.zeros((1, NPAD), jnp.float32).at[0, :Cout].set(bias1)
    b2p = jnp.zeros((1, NPAD), jnp.float32).at[0, :Cout].set(bias2)

    # NCHW -> flat (B, H*W + margin, Cin) bf16; no im2col materialization.
    x_flat = jnp.transpose(x_nchw, (0, 2, 3, 1)).reshape(B, M, Cin)
    x_flat = jnp.pad(x_flat, ((0, 0), (0, XROWS - M), (0, 0))).astype(jnp.bfloat16)

    kernel = functools.partial(_convdown_kernel, H=H, W=W, M=M, A_OFF=A_OFF)
    out = pl.pallas_call(
        kernel,
        out_shape=jax.ShapeDtypeStruct((B, M, NPAD), jnp.float32),
        grid_spec=pltpu.PrefetchScalarGridSpec(
            num_scalar_prefetch=0,
            grid=(B,),
            in_specs=[
                pl.BlockSpec((1, XROWS, Cin), lambda b: (b, 0, 0)),   # image
                pl.BlockSpec((4, Cin, NPAD), lambda b: (0, 0, 0)),    # w1 (grid-invariant)
                pl.BlockSpec((1, NPAD), lambda b: (0, 0)),            # bias1
                pl.BlockSpec((9, NPAD, NPAD), lambda b: (0, 0, 0)),   # w2 (grid-invariant)
                pl.BlockSpec((1, NPAD), lambda b: (0, 0)),            # bias2
            ],
            out_specs=pl.BlockSpec((1, M, NPAD), lambda b: (b, 0, 0)),
            scratch_shapes=[pltpu.VMEM((A_ROWS, NPAD), jnp.float32)],
        ),
        compiler_params=pltpu.CompilerParams(
            dimension_semantics=("parallel",),
            vmem_limit_bytes=32 * 1024 * 1024,
        ),
    )(x_flat, w1p, b1p, w2p, b2p)

    # Drop padded channels and the garbage flat rows, back to NCHW.
    y = out.reshape(B, H, W, NPAD)[:, :Ho, :Wo, :Cout]
    return jnp.transpose(y, (0, 3, 1, 2))


def _reference(x_nchw, params, eps=1e-5):
    """Pure-JAX reference using lax.conv_general_dilated (NHWC / HWIO)."""
    def layer(x, w, b, g, be, m, v, pad):
        y = jax.lax.conv_general_dilated(
            x, w, window_strides=(1, 1),
            padding=[(pad, pad), (pad, pad)],
            dimension_numbers=("NHWC", "HWIO", "NHWC"))
        y = y + b
        y = (y - m) / jnp.sqrt(v + eps) * g + be
        return jnp.maximum(y, 0.0)
    x = jnp.transpose(x_nchw, (0, 2, 3, 1))
    y = layer(x, params["w1"], params["b1"], params["g1"], params["be1"],
              params["m1"], params["v1"], 0)
    y = layer(y, params["w2"], params["b2"], params["g2"], params["be2"],
              params["m2"], params["v2"], 1)
    return jnp.transpose(y, (0, 3, 1, 2))


if __name__ == "__main__":
    key = jax.random.PRNGKey(0)
    B, Cin, H, W = 2, 4, 16, 16
    Cout = 8
    ks = jax.random.split(key, 13)

    x = jax.random.normal(ks[0], (B, Cin, H, W), jnp.float32)

    params = {
        # conv1: kernel 2x2, padding 0   (HWIO layout)
        "w1": 0.2 * jax.random.normal(ks[1], (2, 2, Cin, Cout), jnp.float32),
        "b1": 0.1 * jax.random.normal(ks[2], (Cout,), jnp.float32),
        "g1": 1.0 + 0.1 * jax.random.normal(ks[3], (Cout,), jnp.float32),
        "be1": 0.1 * jax.random.normal(ks[4], (Cout,), jnp.float32),
        "m1": 0.1 * jax.random.normal(ks[5], (Cout,), jnp.float32),
        "v1": 0.5 + jnp.abs(jax.random.normal(ks[6], (Cout,), jnp.float32)),
        # conv2: kernel 3x3, padding 1
        "w2": 0.2 * jax.random.normal(ks[7], (3, 3, Cout, Cout), jnp.float32),
        "b2": 0.1 * jax.random.normal(ks[8], (Cout,), jnp.float32),
        "g2": 1.0 + 0.1 * jax.random.normal(ks[9], (Cout,), jnp.float32),
        "be2": 0.1 * jax.random.normal(ks[10], (Cout,), jnp.float32),
        "m2": 0.1 * jax.random.normal(ks[11], (Cout,), jnp.float32),
        "v2": 0.5 + jnp.abs(jax.random.normal(ks[12], (Cout,), jnp.float32)),
    }

    y = jax.block_until_ready(jax.jit(conv_down)(x, params))
    assert y.shape == (B, Cout, H - 1, W - 1), y.shape

    y_ref = jax.block_until_ready(_reference(x, params))
    assert jnp.allclose(y, y_ref, rtol=5e-2, atol=5e-2), (
        float(jnp.max(jnp.abs(y - y_ref))))

    print("KERNEL_OK")
</pallas_src>

<mosaic_0001>
module attributes {stable_mosaic.version = 11 : i64} {
  func.func @_convdown_kernel(%arg0: i32, %arg1: memref<1x288x4xbf16, #tpu.memory_space<vmem>>, %arg2: memref<4x4x128xbf16, #tpu.memory_space<vmem>>, %arg3: memref<1x128xf32, #tpu.memory_space<vmem>>, %arg4: memref<9x128x128xbf16, #tpu.memory_space<vmem>>, %arg5: memref<1x128xf32, #tpu.memory_space<vmem>>, %arg6: memref<1x256x128xf32, #tpu.memory_space<vmem>>, %arg7: memref<312x128xf32, #tpu.memory_space<vmem>>) attributes {dimension_semantics = [#tpu.dimension_semantics<parallel>], iteration_bounds = array<i64: 2>, scalar_prefetch = 0 : i64, scratch_operands = 1 : i64, tpu.core_type = #tpu.core_type<tc>, window_params = [{transform_indices = @transform_0, window_bounds = array<i64: 1, 288, 4>}, {pipeline_mode = #tpu.pipeline_mode<synchronous>, transform_indices = @transform_1, window_bounds = array<i64: 4, 4, 128>}, {pipeline_mode = #tpu.pipeline_mode<synchronous>, transform_indices = @transform_2, window_bounds = array<i64: 1, 128>}, {pipeline_mode = #tpu.pipeline_mode<synchronous>, transform_indices = @transform_3, window_bounds = array<i64: 9, 128, 128>}, {pipeline_mode = #tpu.pipeline_mode<synchronous>, transform_indices = @transform_4, window_bounds = array<i64: 1, 128>}, {transform_indices = @transform_5, window_bounds = array<i64: 1, 256, 128>}]} {
    %cst = arith.constant 0.000000e+00 : f32
    %0 = vector.broadcast %cst : f32 to vector<256x128xf32>
    %c0 = arith.constant 0 : index
    %c0_0 = arith.constant 0 : index
    %c0_1 = arith.constant 0 : index
    %1 = vector.load %arg1[%c0, %c0_0, %c0_1] : memref<1x288x4xbf16, #tpu.memory_space<vmem>>, vector<1x256x4xbf16>
    %2 = vector.shape_cast %1 : vector<1x256x4xbf16> to vector<256x4xbf16>
    %c0_2 = arith.constant 0 : index
    %c0_3 = arith.constant 0 : index
    %c0_4 = arith.constant 0 : index
    %3 = vector.load %arg2[%c0_2, %c0_3, %c0_4] : memref<4x4x128xbf16, #tpu.memory_space<vmem>>, vector<1x4x128xbf16>
    %4 = vector.shape_cast %3 : vector<1x4x128xbf16> to vector<4x128xbf16>
    %cst_5 = arith.constant dense<0.000000e+00> : vector<256x128xf32>
    %5 = tpu.matmul %2, %4, %cst_5 {dimension_numbers = #tpu.dot_dimension_numbers<[1], [0], [0], [1], [0, 0, 1, 1], [], []>} : vector<256x4xbf16>, vector<4x128xbf16>, vector<256x128xf32> -> vector<256x128xf32>
    %6 = arith.addf %0, %5 : vector<256x128xf32>
    %c0_6 = arith.constant 0 : index
    %c1 = arith.constant 1 : index
    %c0_7 = arith.constant 0 : index
    %7 = vector.load %arg1[%c0_6, %c1, %c0_7] : memref<1x288x4xbf16, #tpu.memory_space<vmem>>, vector<1x256x4xbf16>
    %8 = vector.shape_cast %7 : vector<1x256x4xbf16> to vector<256x4xbf16>
    %c1_8 = arith.constant 1 : index
    %c0_9 = arith.constant 0 : index
    %c0_10 = arith.constant 0 : index
    %9 = vector.load %arg2[%c1_8, %c0_9, %c0_10] : memref<4x4x128xbf16, #tpu.memory_space<vmem>>, vector<1x4x128xbf16>
    %10 = vector.shape_cast %9 : vector<1x4x128xbf16> to vector<4x128xbf16>
    %cst_11 = arith.constant dense<0.000000e+00> : vector<256x128xf32>
    %11 = tpu.matmul %8, %10, %cst_11 {dimension_numbers = #tpu.dot_dimension_numbers<[1], [0], [0], [1], [0, 0, 1, 1], [], []>} : vector<256x4xbf16>, vector<4x128xbf16>, vector<256x128xf32> -> vector<256x128xf32>
    %12 = arith.addf %6, %11 : vector<256x128xf32>
    %c0_12 = arith.constant 0 : index
    %c16 = arith.constant 16 : index
    %c0_13 = arith.constant 0 : index
    %13 = vector.load %arg1[%c0_12, %c16, %c0_13] : memref<1x288x4xbf16, #tpu.memory_space<vmem>>, vector<1x256x4xbf16>
    %14 = vector.shape_cast %13 : vector<1x256x4xbf16> to vector<256x4xbf16>
    %c2 = arith.constant 2 : index
    %c0_14 = arith.constant 0 : index
    %c0_15 = arith.constant 0 : index
    %15 = vector.load %arg2[%c2, %c0_14, %c0_15] : memref<4x4x128xbf16, #tpu.memory_space<vmem>>, vector<1x4x128xbf16>
    %16 = vector.shape_cast %15 : vector<1x4x128xbf16> to vector<4x128xbf16>
    %cst_16 = arith.constant dense<0.000000e+00> : vector<256x128xf32>
    %17 = tpu.matmul %14, %16, %cst_16 {dimension_numbers = #tpu.dot_dimension_numbers<[1], [0], [0], [1], [0, 0, 1, 1], [], []>} : vector<256x4xbf16>, vector<4x128xbf16>, vector<256x128xf32> -> vector<256x128xf32>
    %18 = arith.addf %12, %17 : vector<256x128xf32>
    %c0_17 = arith.constant 0 : index
    %c17 = arith.constant 17 : index
    %c0_18 = arith.constant 0 : index
    %19 = vector.load %arg1[%c0_17, %c17, %c0_18] : memref<1x288x4xbf16, #tpu.memory_space<vmem>>, vector<1x256x4xbf16>
    %20 = vector.shape_cast %19 : vector<1x256x4xbf16> to vector<256x4xbf16>
    %c3 = arith.constant 3 : index
    %c0_19 = arith.constant 0 : index
    %c0_20 = arith.constant 0 : index
    %21 = vector.load %arg2[%c3, %c0_19, %c0_20] : memref<4x4x128xbf16, #tpu.memory_space<vmem>>, vector<1x4x128xbf16>
    %22 = vector.shape_cast %21 : vector<1x4x128xbf16> to vector<4x128xbf16>
    %cst_21 = arith.constant dense<0.000000e+00> : vector<256x128xf32>
    %23 = tpu.matmul %20, %22, %cst_21 {dimension_numbers = #tpu.dot_dimension_numbers<[1], [0], [0], [1], [0, 0, 1, 1], [], []>} : vector<256x4xbf16>, vector<4x128xbf16>, vector<256x128xf32> -> vector<256x128xf32>
    %24 = arith.addf %18, %23 : vector<256x128xf32>
    %c0_22 = arith.constant 0 : index
    %c0_23 = arith.constant 0 : index
    %25 = vector.load %arg3[%c0_22, %c0_23] : memref<1x128xf32, #tpu.memory_space<vmem>>, vector<1x128xf32>
    %26 = vector.broadcast %25 : vector<1x128xf32> to vector<256x128xf32>
    %27 = arith.addf %24, %26 : vector<256x128xf32>
    %cst_24 = arith.constant 0.000000e+00 : f32
    %28 = vector.broadcast %cst_24 : f32 to vector<256x128xf32>
    %29 = arith.maximumf %27, %28 : vector<256x128xf32>
    %30 = tpu.iota {dimensions = array<i32: 0>} : vector<256x1xi32>
    %c16_i32 = arith.constant 16 : i32
    %c0_i32 = arith.constant 0 : i32
    %31 = arith.cmpi eq, %c16_i32, %c0_i32 : i32
    %c1_i32 = arith.constant 1 : i32
    %32 = arith.select %31, %c1_i32, %c16_i32 : i32
    %33 = vector.broadcast %32 : i32 to vector<256x1xi32>
    %34 = arith.remsi %30, %33 : vector<256x1xi32>
    %c0_i32_25 = arith.constant 0 : i32
    %35 = vector.broadcast %c0_i32_25 : i32 to vector<256x1xi32>
    %36 = arith.cmpi ne, %34, %35 : vector<256x1xi32>
    %c0_i32_26 = arith.constant 0 : i32
    %37 = vector.broadcast %c0_i32_26 : i32 to vector<256x1xi32>
    %38 = arith.cmpi slt, %34, %37 : vector<256x1xi32>
    %c0_i32_27 = arith.constant 0 : i32
    %39 = arith.cmpi slt, %32, %c0_i32_27 : i32
    %40 = vector.broadcast %39 : i1 to vector<256x1xi1>
    %41 = vector.broadcast %40 : vector<256x1xi1> to vector<256x1xi1>
    %42 = arith.xori %38, %41 : vector<256x1xi1>
    %43 = arith.andi %42, %36 : vector<256x1xi1>
    %44 = vector.broadcast %32 : i32 to vector<256x1xi32>
    %45 = arith.addi %34, %44 : vector<256x1xi32>
    %46 = arith.select %43, %45, %34 : vector<256x1xi1>, vector<256x1xi32>
    %c15_i32 = arith.constant 15 : i32
    %47 = vector.broadcast %c15_i32 : i32 to vector<256x1xi32>
    %48 = arith.cmpi slt, %46, %47 : vector<256x1xi32>
    %c240_i32 = arith.constant 240 : i32
    %49 = vector.broadcast %c240_i32 : i32 to vector<256x1xi32>
    %50 = arith.cmpi slt, %30, %49 : vector<256x1xi32>
    %51 = arith.andi %48, %50 : vector<256x1xi1>
    %cst_28 = arith.constant 0.000000e+00 : f32
    %52 = vector.shape_cast %51 : vector<256x1xi1> to vector<256x1xi1>
    %53 = vector.broadcast %52 : vector<256x1xi1> to vector<256x128xi1>
    %54 = vector.broadcast %cst_28 : f32 to vector<256x128xf32>
    %55 = arith.select %53, %29, %54 : vector<256x128xi1>, vector<256x128xf32>
    %cst_29 = arith.constant 0.000000e+00 : f32
    %56 = vector.broadcast %cst_29 : f32 to vector<32x128xf32>
    %c0_30 = arith.constant 0 : index
    %c0_31 = arith.constant 0 : index
    %57 = vector.load %arg7[%c0_30, %c0_31] : memref<312x128xf32, #tpu.memory_space<vmem>>, vector<32x128xf32>
    tpu.vector_store %arg7[%c0_30, %c0_31], %56 {strides = array<i32>} : memref<312x128xf32, #tpu.memory_space<vmem>>, vector<32x128xf32>,
    %c32 = arith.constant 32 : index
    %c0_32 = arith.constant 0 : index
    %58 = vector.load %arg7[%c32, %c0_32] : memref<312x128xf32, #tpu.memory_space<vmem>>, vector<256x128xf32>
    tpu.vector_store %arg7[%c32, %c0_32], %55 {strides = array<i32>} : memref<312x128xf32, #tpu.memory_space<vmem>>, vector<256x128xf32>,
    %cst_33 = arith.constant 0.000000e+00 : f32
    %59 = vector.broadcast %cst_33 : f32 to vector<24x128xf32>
    %c288 = arith.constant 288 : index
    %c0_34 = arith.constant 0 : index
    %60 = vector.load %arg7[%c288, %c0_34] : memref<312x128xf32, #tpu.memory_space<vmem>>, vector<24x128xf32>
    tpu.vector_store %arg7[%c288, %c0_34], %59 {strides = array<i32>} : memref<312x128xf32, #tpu.memory_space<vmem>>, vector<24x128xf32>,
    %cst_35 = arith.constant 0.000000e+00 : f32
    %61 = vector.broadcast %cst_35 : f32 to vector<256x128xf32>
    %c15 = arith.constant 15 : index
    %c0_36 = arith.constant 0 : index
    %62 = vector.load %arg7[%c15, %c0_36] : memref<312x128xf32, #tpu.memory_space<vmem>>, vector<256x128xf32>
    %63 = arith.truncf %62 : vector<256x128xf32> to vector<256x128xbf16>
    %c0_37 = arith.constant 0 : index
    %c0_38 = arith.constant 0 : index
    %c0_39 = arith.constant 0 : index
    %64 = vector.load %arg4[%c0_37, %c0_38, %c0_39] : memref<9x128x128xbf16, #tpu.memory_space<vmem>>, vector<1x128x128xbf16>
    %65 = vector.shape_cast %64 : vector<1x128x128xbf16> to vector<128x128xbf16>
    %cst_40 = arith.constant dense<0.000000e+00> : vector<256x128xf32>
    %66 = tpu.matmul %63, %65, %cst_40 {dimension_numbers = #tpu.dot_dimension_numbers<[1], [0], [0], [1], [0, 0, 1, 1], [], []>} : vector<256x128xbf16>, vector<128x128xbf16>, vector<256x128xf32> -> vector<256x128xf32>
    %67 = arith.addf %61, %66 : vector<256x128xf32>
    %c16_41 = arith.constant 16 : index
    %c0_42 = arith.constant 0 : index
    %68 = vector.load %arg7[%c16_41, %c0_42] : memref<312x128xf32, #tpu.memory_space<vmem>>, vector<256x128xf32>
    %69 = arith.truncf %68 : vector<256x128xf32> to vector<256x128xbf16>
    %c1_43 = arith.constant 1 : index
    %c0_44 = arith.constant 0 : index
    %c0_45 = arith.constant 0 : index
    %70 = vector.load %arg4[%c1_43, %c0_44, %c0_45] : memref<9x128x128xbf16, #tpu.memory_space<vmem>>, vector<1x128x128xbf16>
    %71 = vector.shape_cast %70 : vector<1x128x128xbf16> to vector<128x128xbf16>
    %cst_46 = arith.constant dense<0.000000e+00> : vector<256x128xf32>
    %72 = tpu.matmul %69, %71, %cst_46 {dimension_numbers = #tpu.dot_dimension_numbers<[1], [0], [0], [1], [0, 0, 1, 1], [], []>} : vector<256x128xbf16>, vector<128x128xbf16>, vector<256x128xf32> -> vector<256x128xf32>
    %73 = arith.addf %67, %72 : vector<256x128xf32>
    %c17_47 = arith.constant 17 : index
    %c0_48 = arith.constant 0 : index
    %74 = vector.load %arg7[%c17_47, %c0_48] : memref<312x128xf32, #tpu.memory_space<vmem>>, vector<256x128xf32>
    %75 = arith.truncf %74 : vector<256x128xf32> to vector<256x128xbf16>
    %c2_49 = arith.constant 2 : index
    %c0_50 = arith.constant 0 : index
    %c0_51 = arith.constant 0 : index
    %76 = vector.load %arg4[%c2_49, %c0_50, %c0_51] : memref<9x128x128xbf16, #tpu.memory_space<vmem>>, vector<1x128x128xbf16>
    %77 = vector.shape_cast %76 : vector<1x128x128xbf16> to vector<128x128xbf16>
    %cst_52 = arith.constant dense<0.000000e+00> : vector<256x128xf32>
    %78 = tpu.matmul %75, %77, %cst_52 {dimension_numbers = #tpu.dot_dimension_numbers<[1], [0], [0], [1], [0, 0, 1, 1], [], []>} : vector<256x128xbf16>, vector<128x128xbf16>, vector<256x128xf32> -> vector<256x128xf32>
    %79 = arith.addf %73, %78 : vector<256x128xf32>
    %c31 = arith.constant 31 : index
    %c0_53 = arith.constant 0 : index
    %80 = vector.load %arg7[%c31, %c0_53] : memref<312x128xf32, #tpu.memory_space<vmem>>, vector<256x128xf32>
    %81 = arith.truncf %80 : vector<256x128xf32> to vector<256x128xbf16>
    %c3_54 = arith.constant 3 : index
    %c0_55 = arith.constant 0 : index
    %c0_56 = arith.constant 0 : index
    %82 = vector.load %arg4[%c3_54, %c0_55, %c0_56] : memref<9x128x128xbf16, #tpu.memory_space<vmem>>, vector<1x128x128xbf16>
    %83 = vector.shape_cast %82 : vector<1x128x128xbf16> to vector<128x128xbf16>
    %cst_57 = arith.constant dense<0.000000e+00> : vector<256x128xf32>
    %84 = tpu.matmul %81, %83, %cst_57 {dimension_numbers = #tpu.dot_dimension_numbers<[1], [0], [0], [1], [0, 0, 1, 1], [], []>} : vector<256x128xbf16>, vector<128x128xbf16>, vector<256x128xf32> -> vector<256x128xf32>
    %85 = arith.addf %79, %84 : vector<256x128xf32>
    %c32_58 = arith.constant 32 : index
    %c0_59 = arith.constant 0 : index
    %86 = vector.load %arg7[%c32_58, %c0_59] : memref<312x128xf32, #tpu.memory_space<vmem>>, vector<256x128xf32>
    %87 = arith.truncf %86 : vector<256x128xf32> to vector<256x128xbf16>
    %c4 = arith.constant 4 : index
    %c0_60 = arith.constant 0 : index
    %c0_61 = arith.constant 0 : index
    %88 = vector.load %arg4[%c4, %c0_60, %c0_61] : memref<9x128x128xbf16, #tpu.memory_space<vmem>>, vector<1x128x128xbf16>
    %89 = vector.shape_cast %88 : vector<1x128x128xbf16> to vector<128x128xbf16>
    %cst_62 = arith.constant dense<0.000000e+00> : vector<256x128xf32>
    %90 = tpu.matmul %87, %89, %cst_62 {dimension_numbers = #tpu.dot_dimension_numbers<[1], [0], [0], [1], [0, 0, 1, 1], [], []>} : vector<256x128xbf16>, vector<128x128xbf16>, vector<256x128xf32> -> vector<256x128xf32>
    %91 = arith.addf %85, %90 : vector<256x128xf32>
    %c33 = arith.constant 33 : index
    %c0_63 = arith.constant 0 : index
    %92 = vector.load %arg7[%c33, %c0_63] : memref<312x128xf32, #tpu.memory_space<vmem>>, vector<256x128xf32>
    %93 = arith.truncf %92 : vector<256x128xf32> to vector<256x128xbf16>
    %c5 = arith.constant 5 : index
    %c0_64 = arith.constant 0 : index
    %c0_65 = arith.constant 0 : index
    %94 = vector.load %arg4[%c5, %c0_64, %c0_65] : memref<9x128x128xbf16, #tpu.memory_space<vmem>>, vector<1x128x128xbf16>
    %95 = vector.shape_cast %94 : vector<1x128x128xbf16> to vector<128x128xbf16>
    %cst_66 = arith.constant dense<0.000000e+00> : vector<256x128xf32>
    %96 = tpu.matmul %93, %95, %cst_66 {dimension_numbers = #tpu.dot_dimension_numbers<[1], [0], [0], [1], [0, 0, 1, 1], [], []>} : vector<256x128xbf16>, vector<128x128xbf16>, vector<256x128xf32> -> vector<256x128xf32>
    %97 = arith.addf %91, %96 : vector<256x128xf32>
    %c47 = arith.constant 47 : index
    %c0_67 = arith.constant 0 : index
    %98 = vector.load %arg7[%c47, %c0_67] : memref<312x128xf32, #tpu.memory_space<vmem>>, vector<256x128xf32>
    %99 = arith.truncf %98 : vector<256x128xf32> to vector<256x128xbf16>
    %c6 = arith.constant 6 : index
    %c0_68 = arith.constant 0 : index
    %c0_69 = arith.constant 0 : index
    %100 = vector.load %arg4[%c6, %c0_68, %c0_69] : memref<9x128x128xbf16, #tpu.memory_space<vmem>>, vector<1x128x128xbf16>
    %101 = vector.shape_cast %100 : vector<1x128x128xbf16> to vector<128x128xbf16>
    %cst_70 = arith.constant dense<0.000000e+00> : vector<256x128xf32>
    %102 = tpu.matmul %99, %101, %cst_70 {dimension_numbers = #tpu.dot_dimension_numbers<[1], [0], [0], [1], [0, 0, 1, 1], [], []>} : vector<256x128xbf16>, vector<128x128xbf16>, vector<256x128xf32> -> vector<256x128xf32>
    %103 = arith.addf %97, %102 : vector<256x128xf32>
    %c48 = arith.constant 48 : index
    %c0_71 = arith.constant 0 : index
    %104 = vector.load %arg7[%c48, %c0_71] : memref<312x128xf32, #tpu.memory_space<vmem>>, vector<256x128xf32>
    %105 = arith.truncf %104 : vector<256x128xf32> to vector<256x128xbf16>
    %c7 = arith.constant 7 : index
    %c0_72 = arith.constant 0 : index
    %c0_73 = arith.constant 0 : index
    %106 = vector.load %arg4[%c7, %c0_72, %c0_73] : memref<9x128x128xbf16, #tpu.memory_space<vmem>>, vector<1x128x128xbf16>
    %107 = vector.shape_cast %106 : vector<1x128x128xbf16> to vector<128x128xbf16>
    %cst_74 = arith.constant dense<0.000000e+00> : vector<256x128xf32>
    %108 = tpu.matmul %105, %107, %cst_74 {dimension_numbers = #tpu.dot_dimension_numbers<[1], [0], [0], [1], [0, 0, 1, 1], [], []>} : vector<256x128xbf16>, vector<128x128xbf16>, vector<256x128xf32> -> vector<256x128xf32>
    %109 = arith.addf %103, %108 : vector<256x128xf32>
    %c49 = arith.constant 49 : index
    %c0_75 = arith.constant 0 : index
    %110 = vector.load %arg7[%c49, %c0_75] : memref<312x128xf32, #tpu.memory_space<vmem>>, vector<256x128xf32>
    %111 = arith.truncf %110 : vector<256x128xf32> to vector<256x128xbf16>
    %c8 = arith.constant 8 : index
    %c0_76 = arith.constant 0 : index
    %c0_77 = arith.constant 0 : index
    %112 = vector.load %arg4[%c8, %c0_76, %c0_77] : memref<9x128x128xbf16, #tpu.memory_space<vmem>>, vector<1x128x128xbf16>
    %113 = vector.shape_cast %112 : vector<1x128x128xbf16> to vector<128x128xbf16>
    %cst_78 = arith.constant dense<0.000000e+00> : vector<256x128xf32>
    %114 = tpu.matmul %111, %113, %cst_78 {dimension_numbers = #tpu.dot_dimension_numbers<[1], [0], [0], [1], [0, 0, 1, 1], [], []>} : vector<256x128xbf16>, vector<128x128xbf16>, vector<256x128xf32> -> vector<256x128xf32>
    %115 = arith.addf %109, %114 : vector<256x128xf32>
    %c0_79 = arith.constant 0 : index
    %c0_80 = arith.constant 0 : index
    %116 = vector.load %arg5[%c0_79, %c0_80] : memref<1x128xf32, #tpu.memory_space<vmem>>, vector<1x128xf32>
    %117 = vector.broadcast %116 : vector<1x128xf32> to vector<256x128xf32>
    %118 = arith.addf %115, %117 : vector<256x128xf32>
    %cst_81 = arith.constant 0.000000e+00 : f32
    %119 = vector.broadcast %cst_81 : f32 to vector<256x128xf32>
    %120 = arith.maximumf %118, %119 : vector<256x128xf32>
    %c0_82 = arith.constant 0 : index
    %c0_83 = arith.constant 0 : index
    %c0_84 = arith.constant 0 : index
    %121 = vector.load %arg6[%c0_82, %c0_83, %c0_84] : memref<1x256x128xf32, #tpu.memory_space<vmem>>, vector<1x256x128xf32>
    %122 = vector.shape_cast %121 : vector<1x256x128xf32> to vector<256x128xf32>
    %123 = vector.shape_cast %120 : vector<256x128xf32> to vector<1x256x128xf32>
    tpu.vector_store %arg6[%c0_82, %c0_83, %c0_84], %123 {strides = array<i32>} : memref<1x256x128xf32, #tpu.memory_space<vmem>>, vector<1x256x128xf32>,
    return
  }
  func.func @transform_0(%arg0: i32) -> (i32, i32, i32) {
    %c0_i32 = arith.constant 0 : i32
    %c0_i32_0 = arith.constant 0 : i32
    %c0_i32_1 = arith.constant 0 : i32
    return %arg0, %c0_i32, %c0_i32_0 : i32, i32, i32
  }
  func.func @transform_1(%arg0: i32) -> (i32, i32, i32) {
    %c0_i32 = arith.constant 0 : i32
    %c0_i32_0 = arith.constant 0 : i32
    %c0_i32_1 = arith.constant 0 : i32
    %c0_i32_2 = arith.constant 0 : i32
    return %c0_i32, %c0_i32_0, %c0_i32_1 : i32, i32, i32
  }
  func.func @transform_2(%arg0: i32) -> (i32, i32) {
    %c0_i32 = arith.constant 0 : i32
    %c0_i32_0 = arith.constant 0 : i32
    %c0_i32_1 = arith.constant 0 : i32
    return %c0_i32, %c0_i32_0 : i32, i32
  }
  func.func @transform_3(%arg0: i32) -> (i32, i32, i32) {
    %c0_i32 = arith.constant 0 : i32
    %c0_i32_0 = arith.constant 0 : i32
    %c0_i32_1 = arith.constant 0 : i32
    %c0_i32_2 = arith.constant 0 : i32
    return %c0_i32, %c0_i32_0, %c0_i32_1 : i32, i32, i32
  }
  func.func @transform_4(%arg0: i32) -> (i32, i32) {
    %c0_i32 = arith.constant 0 : i32
    %c0_i32_0 = arith.constant 0 : i32
    %c0_i32_1 = arith.constant 0 : i32
    return %c0_i32, %c0_i32_0 : i32, i32
  }
  func.func @transform_5(%arg0: i32) -> (i32, i32, i32) {
    %c0_i32 = arith.constant 0 : i32
    %c0_i32_0 = arith.constant 0 : i32
    %c0_i32_1 = arith.constant 0 : i32
    return %arg0, %c0_i32, %c0_i32_0 : i32, i32, i32
  }
}

</mosaic_0001>

<bundles_post_ra>
// kernel: conv_down.1
= control target key start
LH: loop header
LB: loop body
LE: loop exit
PB: predicated region body
PF: predicated region fallthrough
CT: control target
= control target key end

     0   :  { %s6726_s18 = smov 0   ;;  %s8676_s0 = inlined_call_operand.vmem [shape: bf16[2,288,4], index: 0, kind: input, shape index: {}]   ;;  %s8677_s1 = inlined_call_operand.vmem [shape: bf16[4,4,128], index: 1, kind: input, shape index: {}]   ;;  %s8678_s2 = inlined_call_operand.vmem [shape: f32[1,128], index: 2, kind: input, shape index: {}]   ;;  %s8679_s3 = inlined_call_operand.vmem [shape: bf16[9,128,128], index: 3, kind: input, shape index: {}]   ;;  %s8680_s4 = inlined_call_operand.vmem [shape: f32[1,128], index: 4, kind: input, shape index: {}]   ;;  %s8681_s5 = inlined_call_operand.vmem [shape: f32[2,256,128], index: 5, kind: output, shape index: {}]  }
   0x1 LB: > { %s5306_s19 = sadd.s32 4294967295, %s6691_s18   ;;  %p5310_p0 = scmp.ge.s32.totalorder %s6691_s18, 1  ;;  %s6691_s18 = sphi %s6726_s18, %s15_s18  }
   0x2   : > { %p187_p1 = scmp.lt.s32.totalorder %s6691_s18, 3 }
   0x4   : > { %p188_p2 = pnand %p5310_p0, %p187_p1 }
   0x6   : > { %191 = sbr.rel (%p188_p2) target bundleno = 850 (0x352), region = 40 }
   0xb   : > { %v5314_v0 = vld [vmem:[%s8677_s1 + $0x2] sm:$0x3]  ;;  %vm527_vm0 = vcmask 1041408   ;;  %p215_p3 = scmp.lt.s32.totalorder %s5306_s19, 1  ;;  %v258_v2 = vld [vmem:[%s8677_s1] sm:$0x3] }
   0xc   : > { %6491 = vmatprep.subr.msk.bf16.mxu1 %vm527_vm0, %v5314_v0  ;;  %v529_v1 = vsel %vm527_vm0, %v5314_v0, 0  ;;  %6490 = vmatprep.subr.msk.bf16.mxu0 %vm527_vm0, %v5314_v0  ;;  %v5364_v3 = vld [vmem:[%s8677_s1 + $0x4] sm:$0x3]  ;;  %vm345_vm1 = vsmask.f32 7424  ;;  %vm478_vm2 = vcmask 31744  }
   0xd   : > { %6489 = vmatpush3.bf16.msra.mxu1 %v529_v1  ;;  %5921 = vmatpush3.bf16.msra.mxu0 %v529_v1  ;;  %s8911_s19 = smov (!%p215_p3, %s5306_s19), 1  ;;  %v725_v6 = vsel %vm527_vm0, %v258_v2, 0  ;;  %v1051_v8 = vsel %vm527_vm0, %v5364_v3, 0  ;;  %v6802_v35 = vld [vmem:[%s8677_s1 + $0x6] sm:$0x3]  ;;  %vm6695_vm7 = vmmov 1  }
   0xe   : > { %6492 = vmatprep.subr.msk.bf16.mxu1 %vm527_vm0, %v258_v2  ;;  %6493 = vmatprep.subr.msk.bf16.mxu0 %vm527_vm0, %v5364_v3  ;;  %s6495_s26 = smul.u32 144, %s8911_s19  ;;  %s5635_s17 = sshll.u32 %s8911_s19, 8 }
   0xf   : > { %s8493_s21 = scalar_lea.vmem %s8681_s5, %s5635_s17 }
  0x10   : > { %s6754_s29 = scalar_lea.vmem %s8676_s0, %s6495_s26 }
  0x11   : > { %v6757_v4 = vld [vmem:[%s6754_s29 + $0x40] sm:$0xff]   ;;  %v6760_v5 = vld [vmem:[%s6754_s29 + $0x48] sm:$0xff]   ;;  %v6764_v7 = vld [vmem:[%s6754_s29 + $0x50] sm:$0xff]  }
  0x12   : > { %v410_v9 = vshll.u32 %v6757_v4, 16  ;;  %v414_v10 = vshrl.u32 %v6757_v4, 16  ;;  %v418_v11 = vshll.u32 %v6760_v5, 16  ;;  %v422_v12 = vshrl.u32 %v6760_v5, 16  ;;  %v6773_v14 = vld [vmem:[%s6754_s29] sm:$0xff]   ;;  %v6778_v17 = vld [vmem:[%s6754_s29 + $0x8] sm:$0xff]  }
  0x13   : > { %v426_v13 = vshll.u32 %v6764_v7, 16  ;;  %v6781_v18 = vld [vmem:[%s6754_s29 + $0x10] sm:$0xff]   ;;  %v347_v20 = vshrl.u32 %v6773_v14, 16  ;;  %v349_v21 = vshll.u32 %v6773_v14, 16  ;;  %v6786_v22 = vld [vmem:[%s6754_s29 + $0x58] sm:$0xff]   ;;  %v354_v25 = vshll.u32 %v6778_v17, 16 }
  0x14   : > { %v6775_v15 = vrot.slane %v410_v9, 1  ;;  %v420_v16 = vrot.slane %v418_v11, 1  ;;  %v358_v26 = vshrl.u32 %v6778_v17, 16  ;;  %v362_v28 = vshll.u32 %v6781_v18, 16  ;;  %v6797_v34 = vld [vmem:[%s6754_s29 + $0x60] sm:$0xff]   ;;  %v6809_v43 = vld [vmem:[%s6754_s29 + $0x18] sm:$0xff]  }
  0x15   : > { %v428_v19 = vrot.slane %v426_v13, 1  ;;  %v351_v27 = vrot.slane %v349_v21, 1  ;;  %v430_v29 = vshrl.u32 %v6764_v7, 16  ;;  %v434_v30 = vshll.u32 %v6786_v22, 16  ;;  %v6815_v47 = vld [vmem:[%s6754_s29 + $0x20] sm:$0xff]   ;;  %v6822_v52 = vld [vmem:[%s6754_s29 + $0x68] sm:$0xff]  }
  0x16   : > { %v416_v23 = vor.u32 %v414_v10, %v6775_v15  ;;  %v424_v24 = vor.u32 %v422_v12, %v420_v16  ;;  %v356_v33 = vrot.slane %v354_v25, 1  ;;  %v364_v37 = vrot.slane %v362_v28, 1  ;;  %v6829_v57 = vld [vmem:[%s6754_s29 + $0x70] sm:$0xff]   ;;  %v6838_v1 = vld [vmem:[%s6754_s29 + $0x28] sm:$0xff]   ;;  %v6845_v9 = vld [vmem:[%s6754_s29 + $0x78] sm:$0xff]  }
  0x17   : > { %v352_v36 = vor.u32 %v351_v27, %v347_v20  ;;  %v432_v38 = vor.u32 %v430_v29, %v428_v19  ;;  %v436_v39 = vrot.slane %v434_v30, 1  ;;  %v438_v41 = vshrl.u32 %v6786_v22, 16  ;;  %v6842_v3 = vld [vmem:[%s6754_s29 + $0x30] sm:$0xff]   ;;  %v6520_v27 = vld [vmem:[%s6754_s29 + $0x80] ss:$0 sps:$4 sm:$0x11]  }
  0x18   : > { %v421_v31 = vsel %vm345_vm1, %v416_v23, %v420_v16  ;;  %v429_v32 = vsel %vm345_vm1, %v424_v24, %v428_v19  ;;  %v360_v40 = vor.u32 %v358_v26, %v356_v33  ;;  %v442_v42 = vshll.u32 %v6797_v34, 16 }
  0x19   : > { %5938 = vmatprep.mubr.msk.bf16.mxu1 %vm478_vm2, %v421_v31  ;;  %v366_v44 = vshrl.u32 %v6781_v18, 16  ;;  %v357_v45 = vsel %vm345_vm1, %v352_v36, %v356_v33  ;;  %v437_v46 = vsel %vm345_vm1, %v432_v38, %v436_v39  ;;  %v446_v48 = vshrl.u32 %v6797_v34, 16 }
  0x1a   : > { %5939 = vmatmul.mubr.msk.bf16.vlgmr.msra.gmra.mxu1 %vm478_vm2, %v429_v32  ;;  %5922 = vmatprep.mubr.msk.bf16.mxu0 %vm478_vm2, %v357_v45  ;;  %v365_v49 = vsel %vm345_vm1, %v360_v40, %v364_v37  ;;  %v440_v50 = vor.u32 %v438_v41, %v436_v39  ;;  %v444_v51 = vrot.slane %v442_v42, 1  ;;  %v370_v54 = vshll.u32 %v6809_v43, 16 }
  0x1b   : > { %5955 = vmatpush3.bf16.msra.mxu1 %v725_v6  ;;  %5942 = vmatprep.mubr.msk.bf16.mxu1 %vm478_vm2, %v437_v46  ;;  %v368_v53 = vor.u32 %v366_v44, %v364_v37  ;;  %v374_v55 = vshrl.u32 %v6809_v43, 16  ;;  %v378_v56 = vshll.u32 %v6815_v47, 16  ;;  %v450_v60 = vshll.u32 %v6822_v52, 16 }
  0x1c   : > { %5923 = vmatmul.mubr.msk.bf16.vlgmr.msra.gmra.mxu0 %vm478_vm2, %v365_v49  ;;  %6494 = vmatprep.subr.msk.bf16.mxu1 %vm527_vm0, %v6802_v35  ;;  %v445_v58 = vsel %vm345_vm1, %v440_v50, %v444_v51  ;;  %v448_v59 = vor.u32 %v446_v48, %v444_v51  ;;  %v454_v61 = vshrl.u32 %v6822_v52, 16  ;;  %v372_v62 = vrot.slane %v370_v54, 1 }
  0x1d   : > { %5989 = vmatpush3.bf16.msra.mxu0 %v1051_v8  ;;  %v380_v63 = vrot.slane %v378_v56, 1  ;;  %v458_v0 = vshll.u32 %v6829_v57, 16  ;;  %v382_v2 = vshrl.u32 %v6815_v47, 16  ;;  %v452_v6 = vrot.slane %v450_v60, 1  ;;  %v6849_v8 = vld [vmem:[%s6754_s29 + $0x38] sm:$0xff]   ;;  %v6538_v56 = vld [vmem:[%s6754_s29 + $0x8] sm:$0xff]  }
  0x1e   : > { %v373_v10 = vsel %vm345_vm1, %v368_v53, %v372_v62  ;;  %v376_v11 = vor.u32 %v374_v55, %v372_v62  ;;  %v386_v20 = vshll.u32 %v6838_v1, 16  ;;  %v390_v21 = vshrl.u32 %v6838_v1, 16  ;;  %v6522_v55 = vld [vmem:[%s6754_s29 + $0x8] sm:$0xff]   ;;  %v6539_v60 = vld [vmem:[%s6754_s29 + $0x10] sm:$0xff]  }
  0x1f   : > { %v460_v12 = vrot.slane %v458_v0, 1  ;;  %v384_v13 = vor.u32 %v382_v2, %v380_v63  ;;  %5926 = vmatprep.mubr.msk.bf16.mxu0 %vm478_vm2, %v373_v10  ;;  %v453_v16 = vsel %vm345_vm1, %v448_v59, %v452_v6  ;;  %v456_v19 = vor.u32 %v454_v61, %v452_v6  ;;  %v6523_v59 = vld [vmem:[%s6754_s29 + $0x10] sm:$0xff]   ;;  %v6524_v61 = vld [vmem:[%s6754_s29 + $0x18] sm:$0xff]   ;;  %v6541_v0 = vld [vmem:[%s6754_s29 + $0x20] sm:$0xff]  }
  0x20   : > { %v381_v23 = vsel %vm345_vm1, %v376_v11, %v380_v63  ;;  %v394_v24 = vshll.u32 %v6842_v3, 16  ;;  %v462_v25 = vshrl.u32 %v6829_v57, 16  ;;  %v466_v26 = vshll.u32 %v6845_v9, 16 }
  0x21   : > { %v388_v28 = vrot.slane %v386_v20, 1  ;;  %v398_v29 = vshrl.u32 %v6842_v3, 16  ;;  %v402_v37 = vshll.u32 %v6849_v8, 16  ;;  %v461_v38 = vsel %vm345_vm1, %v456_v19, %v460_v12  ;;  %v6543_v19 = vld [vmem:[%s6754_s29 + $0x30] sm:$0xff]  }
  0x22   : > { %5943 = vmatmul.mubr.msk.bf16.gmra.mxu1 %vm478_vm2, %v445_v58  ;;  %v396_v30 = vrot.slane %v394_v24, 1  ;;  %v464_v31 = vor.u32 %v462_v25, %v460_v12  ;;  %v468_v32 = vrot.slane %v466_v26, 1  ;;  %v470_v39 = vshrl.u32 %v6845_v9, 16 }
  0x23   : > { %5946 = vmatprep.mubr.msk.bf16.mxu1 %vm478_vm2, %v453_v16  ;;  %v389_v33 = vsel %vm345_vm1, %v384_v13, %v388_v28  ;;  %v392_v36 = vor.u32 %v390_v21, %v388_v28  ;;  %v474_v40 = vshll.u32 %v6520_v27, 16  ;;  %v404_v44 = vrot.slane %v402_v37, 1  ;;  %v6542_v13 = vld [vmem:[%s6754_s29 + $0x28] sm:$0xff]   ;;  %v6544_v27 = vld [vmem:[%s6754_s29 + $0x38] sm:$0xff]  }
  0x24   : > { %5927 = vmatmul.mubr.msk.bf16.gmra.mxu0 %vm478_vm2, %v381_v23  ;;  %v400_v41 = vor.u32 %v398_v29, %v396_v30  ;;  %v469_v42 = vsel %vm345_vm1, %v464_v31, %v468_v32  ;;  %v406_v46 = vshrl.u32 %v6849_v8, 16  ;;  %v472_v48 = vor.u32 %v470_v39, %v468_v32  ;;  %v6545_v31 = vld [vmem:[%s6754_s29 + $0x40] sm:$0xff]   ;;  %v6546_v39 = vld [vmem:[%s6754_s29 + $0x48] sm:$0xff]  }
  0x25   : > { %5930 = vmatprep.mubr.msk.bf16.mxu0 %vm478_vm2, %v389_v33  ;;  %v397_v45 = vsel %vm345_vm1, %v392_v36, %v396_v30  ;;  %v476_v49 = vrot.slane %v474_v40, 1  ;;  %v1545_v58 = vsel %vm527_vm0, %v6802_v35, 0  ;;  %v1365_v62 = vshrl.u32 %v6538_v56, 16  ;;  %v6525_v32 = vld [vmem:[%s6754_s29 + $0x20] sm:$0xff]   ;;  %v6526_v40 = vld [vmem:[%s6754_s29 + $0x28] sm:$0xff]  }
  0x26   : > { %v405_v50 = vsel %vm345_vm1, %v400_v41, %v404_v44  ;;  %v408_v51 = vor.u32 %v406_v46, %v404_v44  ;;  %v1367_v63 = vshll.u32 %v6538_v56, 16  ;;  %v1372_v2 = vshll.u32 %v6539_v60, 16  ;;  %v6547_v46 = vld [vmem:[%s6754_s29 + $0x50] sm:$0xff]  }
  0x27   : > { %v477_v53 = vsel %vm345_vm1, %v472_v48, %v476_v49  ;;  %v1376_v6 = vshrl.u32 %v6539_v60, 16  ;;  %v1388_v12 = vshll.u32 %v6541_v0, 16  ;;  %v1392_v16 = vshrl.u32 %v6541_v0, 16 }
  0x28   : > { %v413_v54 = vsel %vm345_vm1, %v408_v51, %v6775_v15  ;;  %v6540_v15 = vld [vmem:[%s6754_s29 + $0x18] sm:$0xff]   ;;  %v1374_v35 = vrot.slane %v1372_v2, 1  ;;  %v1396_v24 = vshll.u32 %v6542_v13, 16  ;;  %v1400_v25 = vshrl.u32 %v6542_v13, 16 }
  0x29   : > { %v1380_v10 = vshll.u32 %v6540_v15, 16  ;;  %v1384_v11 = vshrl.u32 %v6540_v15, 16  ;;  %v1390_v23 = vrot.slane %v1388_v12, 1  ;;  %v1404_v26 = vshll.u32 %v6543_v19, 16 }
  0x2a   : > { %5947 = vmatmul.mubr.msk.bf16.gmra.mxu1 %vm478_vm2, %v461_v38  ;;  %v1408_v30 = vshrl.u32 %v6543_v19, 16  ;;  %v1398_v36 = vrot.slane %v1396_v24, 1  ;;  %v1412_v38 = vshll.u32 %v6544_v27, 16  ;;  %v1420_v44 = vshll.u32 %v6545_v31, 16 }
  0x2b   : > { %5950 = vmatprep.mubr.msk.bf16.mxu1 %vm478_vm2, %v469_v42  ;;  %v1382_v21 = vrot.slane %v1380_v10, 1  ;;  %v1394_v29 = vor.u32 %v1392_v16, %v1390_v23  ;;  %v1406_v37 = vrot.slane %v1404_v26, 1  ;;  %v1416_v42 = vshrl.u32 %v6544_v27, 16  ;;  %v6551_v16 = vld [vmem:[%s6754_s29 + $0x70] sm:$0xff]   ;;  %v6552_v27 = vld [vmem:[%s6754_s29 + $0x78] sm:$0xff]  }
  0x2c   : > { %5931 = vmatmul.mubr.msk.bf16.gmra.mxu0 %vm478_vm2, %v397_v45  ;;  %v1424_v45 = vshrl.u32 %v6545_v31, 16  ;;  %v1402_v49 = vor.u32 %v1400_v25, %v1398_v36  ;;  %v1414_v51 = vrot.slane %v1412_v38, 1  ;;  %v1432_v56 = vshrl.u32 %v6546_v39, 16 }
  0x2d   : > { %5934 = vmatprep.mubr.msk.bf16.mxu0 %vm478_vm2, %v405_v50  ;;  %v1386_v28 = vor.u32 %v1384_v11, %v1382_v21  ;;  %v6918_v48 = vsel %vm345_vm1, %v1394_v29, %v1398_v36  ;;  %v1410_v50 = vor.u32 %v1408_v30, %v1406_v37  ;;  %v1468_v26 = vshll.u32 %v6551_v16, 16  ;;  %v6528_v36 = vld [vmem:[%s6754_s29 + $0x38] sm:$0xff]  }
  0x2e   : > { %v1472_v31 = vshrl.u32 %v6551_v16, 16 }
  0x2f   : > { %v6914_v41 = vsel %vm345_vm1, %v1386_v28, %v1390_v23  ;;  %v6929_v60 = vsel %vm345_vm1, %v1410_v50, %v1414_v51  ;;  %v6527_v28 = vld [vmem:[%s6754_s29 + $0x30] sm:$0xff]   ;;  %v1470_v38 = vrot.slane %v1468_v26, 1 }
  0x31   : > { %v1474_v50 = vor.u32 %v1472_v31, %v1470_v38 }
  0x32   : > { %5951 = vmatmul.mubr.msk.bf16.gmra.mxu1 %vm478_vm2, %v477_v53  ;;  %v6548_v53 = vld [vmem:[%s6754_s29 + $0x58] sm:$0xff]  }
  0x33   : > { %5956 = vmatprep.mubr.msk.bf16.mxu1 %vm478_vm2, %v6773_v14  ;;  %v1369_v14 = vrot.slane %v1367_v63, 1  ;;  %v6549_v63 = vld [vmem:[%s6754_s29 + $0x60] sm:$0xff]   ;;  %v1444_v2 = vshll.u32 %v6548_v53, 16 }
  0x34   : > { %5935 = vmatmul.mubr.msk.bf16.gmra.mxu0 %vm478_vm2, %v413_v54  ;;  %v1422_v54 = vrot.slane %v1420_v44, 1  ;;  %v1452_v10 = vshll.u32 %v6549_v63, 16 }
  0x35   : > { %5990 = vmatprep.mubr.msk.bf16.mxu0 %vm478_vm2, %v6522_v55  ;;  %v1370_v20 = vor.u32 %v1369_v14, %v1365_v62  ;;  %v1428_v55 = vshll.u32 %v6546_v39, 16  ;;  %v1440_v62 = vshrl.u32 %v6547_v46, 16  ;;  %v1446_v13 = vrot.slane %v1444_v2, 1  ;;  %v6536_v2 = vld [vmem:[%s6754_s29 + $0x78] sm:$0xff]  }
  0x36   : > { %v1426_v15 = vor.u32 %v1424_v45, %v1422_v54  ;;  %v1454_v19 = vrot.slane %v1452_v10, 1  ;;  %v1476_v39 = vshll.u32 %v6552_v27, 16  ;;  %v6568_v10 = vld [vmem:[%s8679_s3 + $0x40] sm:$0xff]  }
  0x37   : > { %v1430_v0 = vrot.slane %v1428_v55, 1 }
  0x39   : > { %v6939_v11 = vsel %vm345_vm1, %v1426_v15, %v1430_v0  ;;  %v1434_v12 = vor.u32 %v1432_v56, %v1430_v0  ;;  %v6529_v56 = vld [vmem:[%s6754_s29 + $0x40] sm:$0xff]   ;;  %v6531_v0 = vld [vmem:[%s6754_s29 + $0x50] sm:$0xff]  }
  0x3a   : > { %5957 = vmatmul.mubr.msk.bf16.vlgmr.msra.gmra.mxu1 %vm478_vm2, %v6778_v17  ;;  %v1378_v17 = vor.u32 %v1376_v6, %v1374_v35  ;;  %v6550_v6 = vld [vmem:[%s6754_s29 + $0x68] sm:$0xff]  }
  0x3b   : > { %6023 = vmatpush3.bf16.msra.mxu1 %v1545_v58  ;;  %5960 = vmatprep.mubr.msk.bf16.mxu1 %vm478_vm2, %v6781_v18  ;;  %v6904_v18 = vsel %vm345_vm1, %v1370_v20, %v1374_v35  ;;  %v1436_v58 = vshll.u32 %v6547_v46, 16  ;;  %v1456_v20 = vshrl.u32 %v6549_v63, 16  ;;  %v1464_v23 = vshrl.u32 %v6550_v6, 16  ;;  %v6554_v46 = vld [vmem:[%s6754_s29 + $0x88] ss:$0 sps:$4 sm:$0x11]  }
  0x3c   : > { %5991 = vmatmul.mubr.msk.bf16.vlgmr.msra.gmra.mxu0 %vm478_vm2, %v6523_v59  ;;  %v6909_v33 = vsel %vm345_vm1, %v1378_v17, %v1382_v21  ;;  %v6926_v59 = vsel %vm345_vm1, %v1402_v49, %v1406_v37  ;;  %v1460_v21 = vshll.u32 %v6550_v6, 16  ;;  %v6566_v6 = vld [vmem:[%s8679_s3 + $0x18] sm:$0xff]  }
  0x3d   : > { %5994 = vmatprep.mubr.msk.bf16.mxu0 %vm478_vm2, %v6524_v61  ;;  %v1418_v61 = vor.u32 %v1416_v42, %v1414_v51  ;;  %v1458_v29 = vor.u32 %v1456_v20, %v1454_v19  ;;  %v7081_v20 = vld [vmem:[%s8679_s3 + $0xb8] sm:$0xff]  }
  0x3e   : > { %v1462_v30 = vrot.slane %v1460_v21, 1 }
  0x3f   : > { %v6935_v14 = vsel %vm345_vm1, %v1418_v61, %v1422_v54  ;;  %v1492_v54 = vshll.u32 %v6554_v46, 16 }
  0x40   : > { %v1463_v42 = vsel %vm345_vm1, %v1458_v29, %v1462_v30  ;;  %v1466_v44 = vor.u32 %v1464_v23, %v1462_v30 }
  0x41   : > { %v1494_v61 = vrot.slane %v1492_v54, 1 }
  0x42   : > { %5961 = vmatmul.mubr.msk.bf16.gmra.mxu1 %vm478_vm2, %v6809_v43  ;;  %v1438_v43 = vrot.slane %v1436_v58, 1  ;;  %v1471_v51 = vsel %vm345_vm1, %v1466_v44, %v1470_v38 }
  0x43   : > { %5964 = vmatprep.mubr.msk.bf16.mxu1 %vm478_vm2, %v6815_v47  ;;  %v1448_v47 = vshrl.u32 %v6548_v53, 16 }
  0x44   : > { %5995 = vmatmul.mubr.msk.bf16.gmra.mxu0 %vm478_vm2, %v6525_v32  ;;  %v1442_v35 = vor.u32 %v1440_v62, %v1438_v43  ;;  %v6943_v17 = vsel %vm345_vm1, %v1434_v12, %v1438_v43  ;;  %v6553_v32 = vld [vmem:[%s6754_s29 + $0x80] sm:$0xff]   ;;  %v6530_v62 = vld [vmem:[%s6754_s29 + $0x48] sm:$0xff]   ;;  %v6532_v43 = vld [vmem:[%s6754_s29 + $0x58] sm:$0xff]   ;;  %v6694_v12 = vmov 0.0|0.0  }
  0x45   : > { %5998 = vmatprep.mubr.msk.bf16.mxu0 %vm478_vm2, %v6526_v40  ;;  %v1450_v25 = vor.u32 %v1448_v47, %v1446_v13  ;;  %v1480_v40 = vshrl.u32 %v6552_v27, 16  ;;  %v1484_v45 = vshll.u32 %v6553_v32, 16  ;;  %v1488_v49 = vshrl.u32 %v6553_v32, 16  ;;  %v6567_v47 = vld [vmem:[%s8679_s3 + $0x10] sm:$0xff]  }
  0x46   : > { %v6946_v24 = vsel %vm345_vm1, %v1442_v35, %v1446_v13  ;;  %v6570_v35 = vld [vmem:[%s8679_s3] sm:$0xff]  }
  0x47   : > { %v6955_v37 = vsel %vm345_vm1, %v1450_v25, %v1454_v19  ;;  %v1486_v53 = vrot.slane %v1484_v45, 1 }
  0x49   : > { %v1490_v58 = vor.u32 %v1488_v49, %v1486_v53 }
  0x4a   : > { %5965 = vmatmul.mubr.msk.bf16.gmra.mxu1 %vm478_vm2, %v6838_v1  ;;  %v1478_v1 = vrot.slane %v1476_v39, 1 }
  0x4b   : > { %5968 = vmatprep.mubr.msk.bf16.mxu1 %vm478_vm2, %v6842_v3  ;;  %v1495_v15 = vsel %vm345_vm1, %v1490_v58, %v1494_v61 }
  0x4c   : > { %5999 = vmatmul.mubr.msk.bf16.gmra.mxu0 %vm478_vm2, %v6527_v28  ;;  %v1479_v3 = vsel %vm345_vm1, %v1474_v50, %v1478_v1  ;;  %v1482_v55 = vor.u32 %v1480_v40, %v1478_v1  ;;  %v7133_v1 = vld [vmem:[%s8679_s3 + $0xf8] sm:$0xff]  }
  0x4d   : > { %6002 = vmatprep.mubr.msk.bf16.mxu0 %vm478_vm2, %v6528_v36 }
  0x4e   : > { %v1487_v63 = vsel %vm345_vm1, %v1482_v55, %v1486_v53 }
  0x52   : > { %5969 = vmatmul.mubr.msk.bf16.gmra.mxu1 %vm478_vm2, %v6849_v8  ;;  %v6533_v8 = vld [vmem:[%s6754_s29 + $0x60] sm:$0xff]  }
  0x53   : > { %5972 = vmatprep.mubr.msk.bf16.mxu1 %vm478_vm2, %v6757_v4  ;;  %v6534_v4 = vld [vmem:[%s6754_s29 + $0x68] sm:$0xff]  }
  0x54   : > { %6003 = vmatmul.mubr.msk.bf16.gmra.mxu0 %vm478_vm2, %v6529_v56 }
  0x55   : > { %6006 = vmatprep.mubr.msk.bf16.mxu0 %vm478_vm2, %v6530_v62 }
  0x5a   : > { %5973 = vmatmul.mubr.msk.bf16.gmra.mxu1 %vm478_vm2, %v6760_v5  ;;  %v6535_v5 = vld [vmem:[%s6754_s29 + $0x70] sm:$0xff]  }
  0x5b   : > { %5976 = vmatprep.mubr.msk.bf16.mxu1 %vm478_vm2, %v6764_v7  ;;  %v6537_v7 = vld [vmem:[%s6754_s29 + $0x80] sm:$0xff]  }
  0x5c   : > { %6007 = vmatmul.mubr.msk.bf16.gmra.mxu0 %vm478_vm2, %v6531_v0 }
  0x5d   : > { %6010 = vmatprep.mubr.msk.bf16.mxu0 %vm478_vm2, %v6532_v43 }
  0x62   : > { %5977 = vmatmul.mubr.msk.bf16.gmra.mxu1 %vm478_vm2, %v6786_v22  ;;  %v6555_v22 = vld [vmem:[%s8679_s3 + $0x78] sm:$0xff]  }
  0x63   : > { %5980 = vmatprep.mubr.msk.bf16.mxu1 %vm478_vm2, %v6797_v34  ;;  %6056 = vmatprep.subr.bf16.mxu0 %v6555_v22  ;;  %v6556_v34 = vld [vmem:[%s8679_s3 + $0x70] sm:$0xff]  }
  0x64   : > { %6011 = vmatmul.mubr.msk.bf16.gmra.mxu0 %vm478_vm2, %v6533_v8 }
  0x65   : > { %6014 = vmatprep.mubr.msk.bf16.mxu0 %vm478_vm2, %v6534_v4  ;;  %6057 = vmatpush3.bf16.msra.mxu0 %v6555_v22 }
  0x66   : > { %6058 = vmatprep.subr.bf16.mxu0 %v6556_v34 }
  0x69   : > { %6059 = vmatpush3.bf16.msra.mxu0 %v6556_v34 }
  0x6a   : > { %5981 = vmatmul.mubr.msk.bf16.gmra.mxu1 %vm478_vm2, %v6822_v52  ;;  %v6557_v52 = vld [vmem:[%s8679_s3 + $0x68] sm:$0xff]  }
  0x6b   : > { %5984 = vmatprep.mubr.msk.bf16.mxu1 %vm478_vm2, %v6829_v57  ;;  %6060 = vmatprep.subr.bf16.mxu0 %v6557_v52  ;;  %v6558_v57 = vld [vmem:[%s8679_s3 + $0x60] sm:$0xff]  }
  0x6c   : > { %6015 = vmatmul.mubr.msk.bf16.gmra.mxu0 %vm478_vm2, %v6535_v5 }
  0x6d   : > { %6018 = vmatprep.mubr.msk.bf16.mxu0 %vm478_vm2, %v6536_v2  ;;  %6061 = vmatpush3.bf16.msra.mxu0 %v6557_v52 }
  0x6e   : > { %6062 = vmatprep.subr.bf16.mxu0 %v6558_v57 }
  0x71   : > { %6063 = vmatpush3.bf16.msra.mxu0 %v6558_v57 }
  0x72   : > { %5985 = vmatmul.mubr.msk.bf16.gmra.mxu1 %vm478_vm2, %v6845_v9  ;;  %v6560_v9 = vld [vmem:[%s8679_s3 + $0x38] sm:$0xff]  }
  0x73   : > { %6024 = vmatprep.mubr.msk.bf16.mxu1 %vm478_vm2, %v6904_v18  ;;  %v6559_v18 = vld [vmem:[%s8679_s3 + $0x58] sm:$0xff]   ;;  %6104 = vmatprep.subr.bf16.mxu1 %v6560_v9 }
  0x74   : > { %6019 = vmatmul.mubr.msk.bf16.gmra.mxu0 %vm478_vm2, %v6537_v7  ;;  %6064 = vmatprep.subr.bf16.mxu0 %v6559_v18 }
  0x75   : > { %6065 = vmatpush3.bf16.msra.mxu0 %v6559_v18  ;;  %6072 = vmatprep.mubr.bf16.mxu0 %v6694_v12 }
  0x7a   : > { %6025 = vmatmul.mubr.msk.bf16.vlgmr.msra.gmra.mxu1 %vm478_vm2, %v6909_v33  ;;  %v6561_v33 = vld [vmem:[%s8679_s3 + $0x30] sm:$0xff]  }
  0x7b   : > { %6028 = vmatprep.mubr.msk.bf16.mxu1 %vm478_vm2, %v6914_v41  ;;  %6105 = vmatpush3.bf16.msra.mxu1 %v6560_v9  ;;  %v6562_v41 = vld [vmem:[%s8679_s3 + $0x50] sm:$0xff]  }
  0x7c   : > { %6106 = vmatprep.subr.bf16.mxu1 %v6561_v33  ;;  %6066 = vmatprep.subr.bf16.mxu0 %v6562_v41 }
  0x7d   : > { %6067 = vmatpush3.bf16.msra.mxu0 %v6562_v41 }
  0x7f   : > { %6107 = vmatpush3.bf16.msra.mxu1 %v6561_v33 }
  0x82   : > { %6029 = vmatmul.mubr.msk.bf16.gmra.mxu1 %vm478_vm2, %v6918_v48  ;;  %v6563_v48 = vld [vmem:[%s8679_s3 + $0x28] sm:$0xff]  }
  0x83   : > { %6032 = vmatprep.mubr.msk.bf16.mxu1 %vm478_vm2, %v6926_v59  ;;  %6108 = vmatprep.subr.bf16.mxu1 %v6563_v48  ;;  %v6564_v59 = vld [vmem:[%s8679_s3 + $0x20] sm:$0xff]  }
  0x84   : > { %6109 = vmatpush3.bf16.msra.mxu1 %v6563_v48 }
  0x85   : > { %6110 = vmatprep.subr.bf16.mxu1 %v6564_v59 }
  0x88   : > { %6111 = vmatpush3.bf16.msra.mxu1 %v6564_v59 }
  0x89   : > { %6112 = vmatprep.subr.bf16.mxu1 %v6566_v6 }
  0x8a   : > { %6033 = vmatmul.mubr.msk.bf16.gmra.mxu1 %vm478_vm2, %v6929_v60  ;;  %v6565_v60 = vld [vmem:[%s8679_s3 + $0x48] sm:$0xff]  }
  0x8b   : > { %6036 = vmatprep.mubr.msk.bf16.mxu1 %vm478_vm2, %v6935_v14  ;;  %6068 = vmatprep.subr.bf16.mxu0 %v6565_v60  ;;  %v6693_v14 = vmov 0.0  }
  0x8c   : > { %6069 = vmatpush3.bf16.msra.mxu0 %v6565_v60  ;;  %6113 = vmatpush3.bf16.msra.mxu1 %v6566_v6  ;;  %2420 = vst [vmem:[#allocation2] sm:$0xff] %v6693_v14  ;;  %2422 = vst [vmem:[#allocation2 + $0x10] sm:$0xff] %v6693_v14 }
  0x8d   : > { %2423 = vst [vmem:[#allocation2 + $0x18] sm:$0xff] %v6693_v14  ;;  %2421 = vst [vmem:[#allocation2 + $0x8] sm:$0xff] %v6693_v14  ;;  %6114 = vmatprep.subr.bf16.mxu1 %v6567_v47  ;;  %6070 = vmatprep.subr.bf16.mxu0 %v6568_v10 }
  0x8e   : > { %2454 = vst [vmem:[#allocation2 + $0x110] sm:$0xff] %v6693_v14  ;;  %2455 = vst [vmem:[#allocation2 + $0x118] sm:$0xff] %v6693_v14 }
  0x8f   : > { %2456 = vst [vmem:[#allocation2 + $0x120] sm:$0xff] %v6693_v14  ;;  %2457 = vst [vmem:[#allocation2 + $0x128] sm:$0xff] %v6693_v14 }
  0x90   : > { %2458 = vst [vmem:[#allocation2 + $0x130] sm:$0xff] %v6693_v14  ;;  %6115 = vmatpush3.bf16.msra.mxu1 %v6567_v47  ;;  %6071 = vmatpush3.bf16.msra.mxu0 %v6568_v10 }
  0x91   : > { %6152 = vmatprep.subr.bf16.mxu0 %v7081_v20 }
  0x92   : > { %6037 = vmatmul.mubr.msk.bf16.gmra.mxu1 %vm478_vm2, %v6939_v11  ;;  %v6569_v11 = vld [vmem:[%s8679_s3 + $0x8] sm:$0xff]  }
  0x93   : > { %6040 = vmatprep.mubr.msk.bf16.mxu1 %vm478_vm2, %v6943_v17  ;;  %6116 = vmatprep.subr.bf16.mxu1 %v6569_v11 }
  0x94   : > { %6117 = vmatpush3.bf16.msra.mxu1 %v6569_v11  ;;  %v2459_v13 = vld [vmem:[#allocation2 + $0xf] sm:$0xff]  ;;  %v2460_v16 = vld [vmem:[#allocation2 + $0x17] sm:$0xff] }
  0x95   : > { %6118 = vmatprep.subr.bf16.mxu1 %v6570_v35  ;;  %v2491_v19 = vpack.c.bf16 %v2460_v16, %v2459_v13 }
  0x98   : > { %6119 = vmatpush3.bf16.msra.mxu1 %v6570_v35 }
  0x99   : > { %6200 = vmatprep.subr.bf16.mxu1 %v7133_v1 }
  0x9a   : > { %6041 = vmatmul.mubr.msk.bf16.gmra.mxu1 %vm478_vm2, %v6946_v24 }
  0x9b   : > { %6044 = vmatprep.mubr.msk.bf16.mxu1 %vm478_vm2, %v6955_v37 }
  0xa2   : > { %6045 = vmatmul.mubr.msk.bf16.gmra.mxu1 %vm478_vm2, %v1463_v42 }
  0xa3   : > { %6048 = vmatprep.mubr.msk.bf16.mxu1 %vm478_vm2, %v1471_v51 }
  0xaa   : > { %6049 = vmatmul.mubr.msk.bf16.gmra.mxu1 %vm478_vm2, %v1479_v3 }
  0xab   : > { %6052 = vmatprep.mubr.msk.bf16.mxu1 %vm478_vm2, %v1487_v63 }
  0xb2   : > { %6053 = vmatmul.mubr.msk.bf16.gmra.mxu1 %vm478_vm2, %v1495_v15 }
  0xb3   : > { %6120 = vmatprep.mubr.bf16.mxu1 %v2491_v19 }
  0xda   : > { %v7083_v21 = vpop.f32.mrf.mxu1 }
  0xdc   : > { %v7086_v23 = vpop.f32.mrf.mxu1  ;;  %v7088_v17 = vpop.f32.mrf.mxu0 }
  0xdd   : > { %8682 = vst [vmem:[#allocation3_spill] sm:$0xff] %v7086_v23 }
  0xde   : > { %v7090_v24 = vpop.f32.mrf.mxu1  ;;  %v7092_v25 = vpop.f32.mrf.mxu0 }
  0xdf   : > { %8683 = vst [vmem:[#allocation4_spill] sm:$0xff] %v7090_v24 }
  0xe0   : > { %v7094_v26 = vpop.f32.mrf.mxu1  ;;  %v7096_v27 = vpop.f32.mrf.mxu0 }
  0xe1   : > { %8684 = vst [vmem:[#allocation5_spill] sm:$0xff] %v7094_v26 }
  0xe2   : > { %v7098_v28 = vpop.f32.mrf.mxu1  ;;  %v7100_v29 = vpop.f32.mrf.mxu0 }
  0xe3   : > { %8685 = vst [vmem:[#allocation6_spill] sm:$0xff] %v7098_v28 }
  0xe4   : > { %v7102_v30 = vpop.f32.mrf.mxu1  ;;  %v7104_v31 = vpop.f32.mrf.mxu0 }
  0xe5   : > { %8686 = vst [vmem:[#allocation7_spill] sm:$0xff] %v7102_v30 }
  0xe6   : > { %v7106_v32 = vpop.f32.mrf.mxu1  ;;  %v7108_v36 = vpop.f32.mrf.mxu0 }
  0xe7   : > { %8687 = vst [vmem:[#allocation8_spill] sm:$0xff] %v7106_v32 }
  0xe8   : > { %v7110_v37 = vpop.f32.mrf.mxu1  ;;  %v7112_v38 = vpop.f32.mrf.mxu0 }
  0xe9   : > { %8688 = vst [vmem:[#allocation9_spill] sm:$0xff] %v7110_v37 }
  0xea   : > { %v7114_v39 = vpop.f32.mrf.mxu1  ;;  %v7116_v40 = vpop.f32.mrf.mxu0 }
  0xeb   : > { %8689 = vst [vmem:[#allocation10_spill] sm:$0xff] %v7114_v39 }
  0xec   : > { %v7118_v42 = vpop.f32.mrf.mxu1  ;;  %v7120_v44 = vpop.f32.mrf.mxu0 }
  0xed   : > { %8690 = vst [vmem:[#allocation11_spill] sm:$0xff] %v7118_v42 }
  0xee   : > { %v7122_v45 = vpop.f32.mrf.mxu1  ;;  %v7124_v46 = vpop.f32.mrf.mxu0 }
  0xef   : > { %8691 = vst [vmem:[#allocation12_spill] sm:$0xff] %v7122_v45 }
  0xf0   : > { %v7126_v49 = vpop.f32.mrf.mxu1  ;;  %v7128_v50 = vpop.f32.mrf.mxu0 }
  0xf1   : > { %8692 = vst [vmem:[#allocation13_spill] sm:$0xff] %v7126_v49 }
  0xf2   : > { %v5952_v51 = vpop.f32.mrf.mxu1  ;;  %v7135_v53 = vpop.f32.mrf.mxu0 }
  0xf4   : > { %v7138_v54 = vpop.f32.mrf.mxu1  ;;  %v7140_v3 = vpop.f32.mrf.mxu0 }
  0xf5   : > { %8693 = vst [vmem:[#allocation14_spill] sm:$0xff] %v7138_v54 }
  0xf6   : > { %v5953_v55 = vpop.f32.mrf.mxu1  ;;  %v7142_v56 = vpop.f32.mrf.mxu0 }
  0xf8   : > { %v7144_v58 = vpop.f32.mrf.mxu1  ;;  %v7146_v61 = vpop.f32.mrf.mxu0 }
  0xf9   : > { %8694 = vst [vmem:[#allocation15_spill] sm:$0xff] %v7144_v58 }
  0xfa   : > { %v5958_v62 = vpop.f32.mrf.mxu1  ;;  %v7148_v63 = vpop.f32.mrf.mxu0 }
  0xfc   : > { %v761_v15 = vpop.f32.mrf.mxu1  ;;  %v7150_v0 = vpop.f32.mrf.mxu0 }
  0xfe   : > { %v7152_v43 = vpop.f32.mrf.mxu1  ;;  %v7154_v8 = vpop.f32.mrf.mxu0 }
 0x100   : > { %v7156_v4 = vpop.f32.mrf.mxu1  ;;  %v7158_v5 = vpop.f32.mrf.mxu0 }
 0x102   : > { %v7160_v2 = vpop.f32.mrf.mxu1  ;;  %v7162_v7 = vpop.f32.mrf.mxu0 }
 0x104   : > { %v7164_v22 = vpop.f32.mrf.mxu1  ;;  %v7166_v34 = vpop.f32.mrf.mxu0 }
 0x106   : > { %v7168_v52 = vpop.f32.mrf.mxu1  ;;  %v7170_v57 = vpop.f32.mrf.mxu0 }
 0x108   : > { %v7172_v9 = vpop.f32.mrf.mxu1  ;;  %v7174_v18 = vpop.f32.mrf.mxu0 }
 0x10a   : > { %v7176_v33 = vpop.f32.mrf.mxu1  ;;  %v7178_v41 = vpop.f32.mrf.mxu0 }
 0x10c   : > { %v7180_v48 = vpop.f32.mrf.mxu1  ;;  %v7182_v59 = vpop.f32.mrf.mxu0 }
 0x10e   : > { %v7184_v60 = vpop.f32.mrf.mxu1  ;;  %v7186_v6 = vpop.f32.mrf.mxu0 }
 0x110   : > { %v7188_v14 = vpop.f32.mrf.mxu1  ;;  %v7190_v47 = vpop.f32.mrf.mxu0 }
 0x112   : > { %v7192_v10 = vpop.f32.mrf.mxu1  ;;  %v7194_v11 = vpop.f32.mrf.mxu0 }
 0x114   : > { %v7196_v12 = vpop.f32.mrf.mxu1  ;;  %v7198_v35 = vpop.f32.mrf.mxu0 }
 0x116   : > { %v7200_v13 = vpop.f32.mrf.mxu1  ;;  %v7202_v16 = vpop.f32.mrf.mxu0 }
 0x118   : > { %v7204_v19 = vpop.f32.mrf.mxu1  ;;  %v7206_v51 = vpop.f32.mrf.mxu0 }
 0x11a   : > { %v7208_v55 = vpop.f32.mrf.mxu1  ;;  %v7210_v58 = vpop.f32.mrf.mxu0 }
 0x11b   : > { %8695 = vst [vmem:[#allocation16_spill] sm:$0xff] %v7210_v58 }
 0x11c   : > { %v7212_v54 = vpop.f32.mrf.mxu1  ;;  %v7214_v49 = vpop.f32.mrf.mxu0 }
 0x11d   : > { %8696 = vst [vmem:[#allocation17_spill] sm:$0xff] %v7212_v54  ;;  %8697 = vst [vmem:[#allocation18_spill] sm:$0xff] %v7214_v49 }
 0x11e   : > { %v7216_v45 = vpop.f32.mrf.mxu1  ;;  %v7218_v42 = vpop.f32.mrf.mxu0 }
 0x11f   : > { %8698 = vst [vmem:[#allocation19_spill] sm:$0xff] %v7216_v45  ;;  %8699 = vst [vmem:[#allocation20_spill] sm:$0xff] %v7218_v42 }
 0x120   : > { %v7220_v39 = vpop.f32.mrf.mxu1  ;;  %v7222_v37 = vpop.f32.mrf.mxu0 }
 0x121   : > { %8700 = vst [vmem:[#allocation21_spill] sm:$0xff] %v7220_v39  ;;  %8701 = vst [vmem:[#allocation22_spill] sm:$0xff] %v7222_v37 }
 0x122   : > { %v7224_v32 = vpop.f32.mrf.mxu1  ;;  %v7226_v30 = vpop.f32.mrf.mxu0 }
 0x123   : > { %8702 = vst [vmem:[#allocation23_spill] sm:$0xff] %v7224_v32  ;;  %8703 = vst [vmem:[#allocation24_spill] sm:$0xff] %v7226_v30 }
 0x124   : > { %v7228_v28 = vpop.f32.mrf.mxu1  ;;  %v7230_v26 = vpop.f32.mrf.mxu0 }
 0x125   : > { %8704 = vst [vmem:[#allocation25_spill] sm:$0xff] %v7228_v28  ;;  %8705 = vst [vmem:[#allocation26_spill] sm:$0xff] %v7230_v26 }
 0x126   : > { %v7232_v24 = vpop.f32.mrf.mxu1  ;;  %v7234_v54 = vpop.f32.mrf.mxu0 }
 0x127   : > { %8706 = vst [vmem:[#allocation27_spill] sm:$0xff] %v7232_v24  ;;  %8707 = vst [vmem:[#allocation28_spill] sm:$0xff] %v7234_v54 }
 0x128   : > { %v7236_v49 = vpop.f32.mrf.mxu1  ;;  %v7238_v45 = vpop.f32.mrf.mxu0 }
 0x129   : > { %8708 = vst [vmem:[#allocation29_spill] sm:$0xff] %v7236_v49  ;;  %8709 = vst [vmem:[#allocation30_spill] sm:$0xff] %v7238_v45  ;;  %v1811_v49 = vlaneseq }
 0x12a   : > { %v7240_v42 = vpop.f32.mrf.mxu1  ;;  %v7242_v39 = vpop.f32.mrf.mxu0 }
 0x12b   : > { %8710 = vst [vmem:[#allocation31_spill] sm:$0xff] %v7240_v42  ;;  %8711 = vst [vmem:[#allocation32_spill] sm:$0xff] %v7242_v39  ;;  %v770_v39 = vadd.f32 %v5958_v62, %v7088_v17  ;;  %v7261_v58 = vshrl.u32 %v1811_v49, 7 }
 0x12c   : > { %v7244_v37 = vpop.f32.mrf.mxu1  ;;  %v7246_v32 = vpop.f32.mrf.mxu0 }
 0x12d   : > { %8712 = vst [vmem:[#allocation33_spill] sm:$0xff] %v7244_v37  ;;  %8713 = vst [vmem:[#allocation34_spill] sm:$0xff] %v7246_v32  ;;  %v762_v32 = vadd.f32 %v761_v15, %v7092_v25  ;;  %v1815_v25 = vadd.s32 24, %v7261_v58 }
 0x12e   : > { %v7248_v30 = vpop.f32.mrf.mxu1  ;;  %v7250_v28 = vpop.f32.mrf.mxu0 }
 0x12f   : > { %8714 = vst [vmem:[#allocation35_spill] sm:$0xff] %v7248_v30  ;;  %8715 = vst [vmem:[#allocation36_spill] sm:$0xff] %v7250_v28  ;;  %v1214_v49 = vadd.f32 %v7154_v8, %v762_v32 }
 0x130   : > { %v7252_v26 = vpop.f32.mrf.mxu1  ;;  %v7254_v24 = vpop.f32.mrf.mxu0 }
 0x131   : > { %8716 = vst [vmem:[#allocation37_spill] sm:$0xff] %v7254_v24  ;;  %v1216_v24 = vadd.f32 %v7150_v0, %v770_v39 }
 0x132   : > { %v5986_v54 = vpop.f32.mrf.mxu1  ;;  %v7256_v23 = vpop.f32.mrf.mxu0 }
 0x133   : > { %8717 = vst [vmem:[#allocation38_spill] sm:$0xff] %v7256_v23  ;;  %v773_v54 = vadd.f32 %v7152_v43, %v7096_v27 }
 0x134   : > { %v7258_v45 = vpop.f32.mrf.mxu1  ;;  %v6020_v42 = vpop.f32.mrf.mxu0 }
 0x135   : > { %8718 = vst [vmem:[#allocation39_spill] sm:$0xff] %v7258_v45  ;;  %v765_v45 = vadd.f32 %v7156_v4, %v7100_v29  ;;  %v1813_v42 = vadd.s32 8, %v7261_v58  ;;  %v1217_v27 = vadd.f32 %v7158_v5, %v773_v54  ;;  %v1869_v4 = vand.u32 15, %v1815_v25 }
 0x136   : > { %v5987_v37 = vpop.f32.mrf.mxu1  ;;  %v7264_v30 = vpop.f32.mrf.mxu0  ;;  %v1817_v54 = vadd.s32 40, %v7261_v58 }
 0x137   : > { %8719 = vst [vmem:[#allocation40_spill] sm:$0xff] %v7264_v30  ;;  %v7276_v37 = vld [vmem:[%s8678_s2] ss:$0 sm:$0xff]  ;;  %v1215_v0 = vadd.f32 %v7162_v7, %v765_v45  ;;  %v778_v30 = vadd.f32 %v7164_v22, %v7108_v36  ;;  %vm7302_vm3 = vcmp.lt.s32.totalorder %v1869_v4, 15 }
 0x138   : > { %v7266_v28 = vpop.f32.mrf.mxu1  ;;  %v6021_v23 = vpop.f32.mrf.mxu0  ;;  %vm6631_vm9 = vmpackc.low %vm7302_vm3, %vm6695_vm7 }
 0x139   : > { %8720 = vst [vmem:[#allocation41_spill] sm:$0xff] %v7266_v28  ;;  %v786_v23 = vadd.f32 %v7160_v2, %v7104_v31  ;;  %v1855_v28 = vand.u32 15, %v1813_v42  ;;  %v789_v31 = vadd.f32 %v7168_v52, %v7112_v38  ;;  %v1819_v2 = vadd.s32 56, %v7261_v58 }
 0x13a   : > { %v6026_v17 = vpop.f32.mrf.mxu1  ;;  %v818_v38 = vadd.f32 %v7192_v10, %v7140_v3  ;;  %v810_v10 = vadd.f32 %v7196_v12, %v7142_v56  ;;  %v821_v56 = vadd.f32 %v7200_v13, %v7146_v61  ;;  %v6574_v61 = vld [vmem:[%s8679_s3 + $0xa0] sm:$0xff]   ;;  %v6577_v13 = vld [vmem:[%s8679_s3 + $0xf0] sm:$0xff]  }
 0x13b   : > { %v1710_v39 = vadd.f32 %v6026_v17, %v1216_v24  ;;  %v1220_v45 = vadd.f32 %v7166_v34, %v786_v23  ;;  %v781_v17 = vadd.f32 %v7172_v9, %v7116_v40  ;;  %vm7306_vm4 = vcmp.lt.s32.totalorder %v1855_v28, 15 }
 0x13c   : > { %v1581_v62 = vpop.f32.mrf.mxu1  ;;  %v1218_v34 = vadd.f32 %v7170_v57, %v778_v30  ;;  %v802_v40 = vadd.f32 %v7176_v33, %v7120_v44  ;;  %v1883_v23 = vand.u32 15, %v1817_v54  ;;  %v7324_v44 = vadd.s32 88, %v7261_v58  ;;  %vm6628_vm8 = vmpackc.low %vm7306_vm4, %vm6695_vm7 }
 0x13d   : > { %v7285_v29 = vadd.f32 %v7276_v37, %v1710_v39  ;;  %v1708_v15 = vadd.f32 %v1581_v62, %v1214_v49  ;;  %v1221_v62 = vadd.f32 %v7174_v18, %v789_v31  ;;  %v1219_v57 = vadd.f32 %v7178_v41, %v781_v17 }
 0x13e   : > { %v6027_v43 = vpop.f32.mrf.mxu1  ;;  %v805_v41 = vadd.f32 %v7184_v60, %v7128_v50  ;;  %v797_v60 = vadd.f32 %v7188_v14, %v7135_v53  ;;  %vm7353_vm6 = vcmp.lt.s32.totalorder %v1883_v23, 15 }
 0x13f   : > { %v1781_v24 = vmax.f32 %v7285_v29, 0.0  ;;  %v1747_v32 = vadd.f32 %v7276_v37, %v1708_v15  ;;  %v1711_v8 = vadd.f32 %v6027_v43, %v1217_v27  ;;  %v1897_v27 = vand.u32 15, %v1819_v2  ;;  %vm6634_vm12 = vmpackc.low %vm7353_vm6, %vm6695_vm7 }
 0x140   : > { %v1584_v5 = vpop.f32.mrf.mxu1  ;;  %v794_v43 = vadd.f32 %v7180_v48, %v7124_v46  ;;  %v7335_v46 = vadd.s32 72, %v7261_v58  ;;  %v6572_v48 = vld [vmem:[%s8679_s3 + $0xb0] sm:$0xff]   ;;  %v1223_v3 = vadd.f32 %v7194_v11, %v797_v60 }
 0x141   : > { %2426 = vst [vmem:[#allocation2 + $0x30] sm:$0xff] %v1781_v24  ;;  %v1779_v7 = vmax.f32 %v1747_v32, 0.0  ;;  %v1750_v36 = vadd.f32 %v7276_v37, %v1711_v8  ;;  %v1709_v22 = vadd.f32 %v1584_v5, %v1215_v0  ;;  %v1224_v5 = vadd.f32 %v7182_v59, %v802_v40 }
 0x142   : > { %v6030_v52 = vpop.f32.mrf.mxu1  ;;  %vm7349_vm5 = vcmp.lt.s32.totalorder %v1897_v27, 15  ;;  %v1222_v53 = vadd.f32 %v7186_v6, %v794_v43  ;;  %v1225_v6 = vadd.f32 %v7190_v47, %v805_v41 }
 0x143   : > { %2424 = vst [vmem:[#allocation2 + $0x20] sm:$0xff] %v1779_v7  ;;  %v1782_v42 = vmax.f32 %v1750_v36, 0.0  ;;  %v1748_v49 = vadd.f32 %v7276_v37, %v1709_v22  ;;  %v1714_v39 = vadd.f32 %v6030_v52, %v1220_v45  ;;  %v1925_v22 = vand.u32 15, %v7324_v44  ;;  %vm6637_vm13 = vmpackc.low %vm7349_vm5, %vm6695_vm7 }
 0x144   : > { %v1597_v9 = vpop.f32.mrf.mxu1  ;;  %v1228_v44 = vadd.f32 %v7198_v35, %v818_v38  ;;  %v813_v35 = vadd.f32 %v7204_v19, %v7148_v63  ;;  %v1226_v19 = vadd.f32 %v7202_v16, %v810_v10  ;;  %v1229_v16 = vadd.f32 %v7206_v51, %v821_v56  ;;  %v6578_v56 = vld [vmem:[%s8679_s3 + $0x90] sm:$0xff]  }
 0x145   : > { %v2391_v28 = vsel %vm7302_vm3, %v1782_v42, 0.0  ;;  %v1780_v15 = vmax.f32 %v1748_v49, 0.0  ;;  %v7318_v0 = vadd.f32 %v7276_v37, %v1714_v39  ;;  %v1712_v30 = vadd.f32 %v1597_v9, %v1218_v34 }
 0x146   : > { %2427 = vst [vmem:[#allocation2 + $0x38] sm:$0xff] %v2391_v28  ;;  %v6031_v18 = vpop.f32.mrf.mxu1  ;;  %v1911_v39 = vand.u32 15, %v7335_v46  ;;  %v7391_v9 = vadd.s32 104, %v7261_v58  ;;  %vm7420_vm10 = vcmp.lt.s32.totalorder %v1925_v22, 15  ;;  %v7451_v22 = vadd.s32 152, %v7261_v58 }
 0x147   : > { %v2389_v33 = vsel %vm7306_vm4, %v1780_v15, 0.0  ;;  %v1785_v4 = vmax.f32 %v7318_v0, 0.0  ;;  %v7330_v32 = vadd.f32 %v7276_v37, %v1712_v30  ;;  %v1715_v8 = vadd.f32 %v6031_v18, %v1221_v62  ;;  %vm6643_vm1 = vmpackc.low %vm7420_vm10, %vm6695_vm7 }
 0x148   : > { %2425 = vst [vmem:[#allocation2 + $0x28] sm:$0xff] %v2389_v33  ;;  %v1600_v31 = vpop.f32.mrf.mxu1  ;;  %v6629_v17 = vpack.c.bf16 %v1780_v15, %v1779_v7  ;;  %v6632_v7 = vpack.c.bf16 %v1782_v42, %v1781_v24  ;;  %v7377_v62 = vadd.s32 120, %v7261_v58  ;;  %vm7424_vm11 = vcmp.lt.s32.totalorder %v1911_v39, 15 }
 0x149   : > { %2430 = vst [vmem:[#allocation2 + $0x50] sm:$0xff] %v1785_v4  ;;  %v1783_v2 = vmax.f32 %v7330_v32, 0.0  ;;  %v7345_v54 = vadd.f32 %v7276_v37, %v1715_v8  ;;  %v1713_v50 = vadd.f32 %v1600_v31, %v1219_v57  ;;  %vm6640_vm0 = vmpackc.low %vm7424_vm11, %vm6695_vm7 }
 0x14a   : > { %v6034_v59 = vpop.f32.mrf.mxu1  ;;  %6630 = vmatmul.mubr.msk.bf16.vlgmr.msra.gmra.mxu0 %vm6628_vm8, %v6629_v17  ;;  %v2461_v40 = vld [vmem:[#allocation2 + $0x1f] sm:$0xff] }
 0x14b   : > { %2428 = vst [vmem:[#allocation2 + $0x40] sm:$0xff] %v1783_v2  ;;  %v1786_v14 = vmax.f32 %v7345_v54, 0.0  ;;  %v1752_v52 = vadd.f32 %v7276_v37, %v1713_v50  ;;  %v1718_v34 = vadd.f32 %v6034_v59, %v1224_v5  ;;  %6153 = vmatpush3.bf16.msra.mxu0 %v7081_v20  ;;  %6633 = vmatprep.mubr.msk.bf16.mxu0 %vm6631_vm9, %v6632_v7  ;;  %v6573_v20 = vld [vmem:[%s8679_s3 + $0xa8] sm:$0xff]   ;;  %v1953_v5 = vand.u32 15, %v7377_v62  ;;  %v8737_v7 = vld [vmem:[#allocation19_spill] sm:$0xff] }
 0x14c   : > { %v1613_v49 = vpop.f32.mrf.mxu1  ;;  %6154 = vmatprep.subr.bf16.mxu0 %v6572_v48  ;;  %v1939_v59 = vand.u32 15, %v7391_v9  ;;  %v7483_v9 = vadd.s32 136, %v7261_v58 }
 0x14d   : > { %v2395_v29 = vsel %vm7349_vm5, %v1786_v14, 0.0  ;;  %v1784_v24 = vmax.f32 %v1752_v52, 0.0  ;;  %v7385_v47 = vadd.f32 %v7276_v37, %v1718_v34  ;;  %v1716_v25 = vadd.f32 %v1613_v49, %v1222_v53  ;;  %v2464_v57 = vld [vmem:[#allocation2 + $0x37] sm:$0xff]  ;;  %v8736_v34 = vld [vmem:[#allocation4_spill] sm:$0xff] }
 0x14e   : > { %2431 = vst [vmem:[#allocation2 + $0x58] sm:$0xff] %v2395_v29  ;;  %v6035_v42 = vpop.f32.mrf.mxu1  ;;  %v6638_v32 = vpack.c.bf16 %v1786_v14, %v1785_v4  ;;  %v8734_v53 = vld [vmem:[#allocation3_spill] sm:$0xff]  ;;  %v8735_v14 = vld [vmem:[#allocation17_spill] sm:$0xff]  ;;  %vm7500_vm14 = vcmp.lt.s32.totalorder %v1953_v5, 15  ;;  %vm7504_vm15 = vcmp.lt.s32.totalorder %v1939_v59, 15 }
 0x14f   : > { %v2393_v27 = vsel %vm7353_vm6, %v1784_v24, 0.0  ;;  %v1789_v23 = vmax.f32 %v7385_v47, 0.0  ;;  %v7397_v28 = vadd.f32 %v7276_v37, %v1716_v25  ;;  %v1719_v15 = vadd.f32 %v6035_v42, %v1225_v6  ;;  %v2462_v30 = vld [vmem:[#allocation2 + $0x27] sm:$0xff]  ;;  %v2463_v11 = vld [vmem:[#allocation2 + $0x2f] sm:$0xff]  ;;  %6155 = vmatpush3.bf16.msra.mxu0 %v6572_v48  ;;  %vm6646_vm4 = vmpackc.low %vm7504_vm15, %vm6695_vm7 }
 0x150   : > { %2429 = vst [vmem:[#allocation2 + $0x48] sm:$0xff] %v2393_v27  ;;  %v1616_v12 = vpop.f32.mrf.mxu1  ;;  %v7401_v43 = vpack.c.bf16 %v2462_v30, %v2461_v40  ;;  %v7403_v18 = vpack.c.bf16 %v2464_v57, %v2463_v11  ;;  %6156 = vmatprep.subr.bf16.mxu0 %v6573_v20  ;;  %v6635_v63 = vpack.c.bf16 %v1784_v24, %v1783_v2  ;;  %v8738_v27 = vld [vmem:[#allocation18_spill] sm:$0xff]  ;;  %vm6649_vm5 = vmpackc.low %vm7500_vm14, %vm6695_vm7 }
 0x151   : > { %2434 = vst [vmem:[#allocation2 + $0x70] sm:$0xff] %v1789_v23  ;;  %v1787_v33 = vmax.f32 %v7397_v28, 0.0  ;;  %v7410_v8 = vadd.f32 %v7276_v37, %v1719_v15  ;;  %v1717_v41 = vadd.f32 %v1616_v12, %v1223_v3  ;;  %v834_v2 = vadd.f32 %v7208_v55, %v7083_v21  ;;  %v6575_v21 = vld [vmem:[%s8679_s3 + $0x98] sm:$0xff]   ;;  %v8733_v55 = vld [vmem:[#allocation16_spill] sm:$0xff] }
 0x152   : > { %v6038_v48 = vpop.f32.mrf.mxu1  ;;  %6121 = vmatmul.mubr.bf16.vlgmr.msra.gmra.mxu1 %v7401_v43  ;;  %6636 = vmatmul.mubr.msk.bf16.gmra.mxu0 %vm6634_vm12, %v6635_v63  ;;  %v1227_v17 = vadd.f32 %v8733_v55, %v813_v35  ;;  %v826_v52 = vadd.f32 %v8735_v14, %v8734_v53  ;;  %v837_v6 = vadd.f32 %v8737_v7, %v8736_v34  ;;  %v2465_v49 = vld [vmem:[#allocation2 + $0x3f] sm:$0xff]  ;;  %v8751_v55 = vld [vmem:[#allocation25_spill] sm:$0xff] }
 0x153   : > { %2432 = vst [vmem:[#allocation2 + $0x60] sm:$0xff] %v1787_v33  ;;  %v1790_v54 = vmax.f32 %v7410_v8, 0.0  ;;  %v1756_v50 = vadd.f32 %v7276_v37, %v1717_v41  ;;  %v1722_v60 = vadd.f32 %v6038_v48, %v1228_v44  ;;  %6124 = vmatprep.mubr.bf16.mxu1 %v7403_v18  ;;  %6639 = vmatprep.mubr.msk.bf16.mxu0 %vm6637_vm13, %v6638_v32  ;;  %v6580_v12 = vld [vmem:[%s8679_s3 + $0xe0] sm:$0xff]   ;;  %v8739_v44 = vld [vmem:[#allocation5_spill] sm:$0xff]  ;;  %v8753_v14 = vld [vmem:[#allocation27_spill] sm:$0xff] }
 0x154   : > { %v1629_v36 = vpop.f32.mrf.mxu1  ;;  %6157 = vmatpush3.bf16.msra.mxu0 %v6573_v20  ;;  %6201 = vmatpush3.bf16.msra.mxu1 %v7133_v1  ;;  %v6579_v1 = vld [vmem:[%s8679_s3 + $0xe8] sm:$0xff]   ;;  %v1232_v15 = vadd.f32 %v8738_v27, %v834_v2  ;;  %v8748_v2 = vld [vmem:[#allocation23_spill] sm:$0xff]  ;;  %v8752_v53 = vld [vmem:[#allocation8_spill] sm:$0xff]  ;;  %v7561_v27 = vadd.s32 184, %v7261_v58 }
 0x155   : > { %v2399_v0 = vsel %vm7420_vm10, %v1790_v54, 0.0  ;;  %v1788_v4 = vmax.f32 %v1756_v50, 0.0  ;;  %v7459_v51 = vadd.f32 %v7276_v37, %v1722_v60  ;;  %v1720_v45 = vadd.f32 %v1629_v36, %v1226_v19  ;;  %6158 = vmatprep.subr.bf16.mxu0 %v6574_v61  ;;  %6202 = vmatprep.subr.bf16.mxu1 %v6577_v13  ;;  %v2468_v3 = vld [vmem:[#allocation2 + $0x57] sm:$0xff]  ;;  %v8740_v41 = vld [vmem:[#allocation21_spill] sm:$0xff]  ;;  %v8745_v19 = vld [vmem:[#allocation20_spill] sm:$0xff] }
 0x156   : > { %2435 = vst [vmem:[#allocation2 + $0x78] sm:$0xff] %v2399_v0  ;;  %v6039_v38 = vpop.f32.mrf.mxu1  ;;  %v1230_v5 = vadd.f32 %v8745_v19, %v826_v52  ;;  %v6644_v28 = vpack.c.bf16 %v1790_v54, %v1789_v23  ;;  %v1981_v0 = vand.u32 15, %v7451_v22  ;;  %v6581_v54 = vld [vmem:[%s8679_s3 + $0x88] sm:$0xff]   ;;  %v6582_v22 = vld [vmem:[%s8679_s3 + $0xd8] sm:$0xff]   ;;  %v853_v52 = vadd.f32 %v8753_v14, %v8752_v53 }
 0x157   : > { %v2397_v39 = vsel %vm7424_vm11, %v1788_v4, 0.0  ;;  %v1793_v62 = vmax.f32 %v7459_v51, 0.0  ;;  %v7476_v20 = vadd.f32 %v7276_v37, %v1720_v45  ;;  %v1723_v29 = vadd.f32 %v6039_v38, %v1229_v16  ;;  %v2466_v24 = vld [vmem:[#allocation2 + $0x47] sm:$0xff]  ;;  %v2467_v25 = vld [vmem:[#allocation2 + $0x4f] sm:$0xff]  ;;  %v8769_v53 = vld [vmem:[#allocation35_spill] sm:$0xff] }
 0x158   : > { %2433 = vst [vmem:[#allocation2 + $0x68] sm:$0xff] %v2397_v39  ;;  %v1632_v10 = vpop.f32.mrf.mxu1  ;;  %v7478_v42 = vpack.c.bf16 %v2466_v24, %v2465_v49  ;;  %v7480_v40 = vpack.c.bf16 %v2468_v3, %v2467_v25  ;;  %6159 = vmatpush3.bf16.msra.mxu0 %v6574_v61  ;;  %6203 = vmatpush3.bf16.msra.mxu1 %v6577_v13  ;;  %v8747_v16 = vld [vmem:[#allocation6_spill] sm:$0xff]  ;;  %v8749_v45 = vld [vmem:[#allocation24_spill] sm:$0xff]  ;;  %vm7578_vm2 = vcmp.lt.s32.totalorder %v1981_v0, 15  ;;  %v8764_v0 = vld [vmem:[#allocation31_spill] sm:$0xff] }
 0x159   : > { %2438 = vst [vmem:[#allocation2 + $0x90] sm:$0xff] %v1793_v62  ;;  %v1791_v30 = vmax.f32 %v7476_v20, 0.0  ;;  %v7490_v11 = vadd.f32 %v7276_v37, %v1723_v29  ;;  %v1721_v57 = vadd.f32 %v1632_v10, %v1227_v17  ;;  %6160 = vmatprep.subr.bf16.mxu0 %v6575_v21  ;;  %6204 = vmatprep.subr.bf16.mxu1 %v6579_v1  ;;  %vm6655_vm9 = vmpackc.low %vm7578_vm2, %vm6695_vm7 }
 0x15a   : > { %v829_v61 = vadd.f32 %v8740_v41, %v8739_v44  ;;  %v6042_v48 = vpop.f32.mrf.mxu1  ;;  %6125 = vmatmul.mubr.bf16.gmra.mxu1 %v7478_v42  ;;  %v6641_v63 = vpack.c.bf16 %v1788_v4, %v1787_v33  ;;  %v8746_v33 = vld [vmem:[#allocation22_spill] sm:$0xff]  ;;  %v850_v36 = vadd.f32 %v8748_v2, %v8747_v16  ;;  %v1967_v4 = vand.u32 15, %v7483_v9  ;;  %v2469_v7 = vld [vmem:[#allocation2 + $0x5f] sm:$0xff] }
 0x15b   : > { %2436 = vst [vmem:[#allocation2 + $0x80] sm:$0xff] %v1791_v30  ;;  %v1794_v50 = vmax.f32 %v7490_v11, 0.0  ;;  %v1760_v60 = vadd.f32 %v7276_v37, %v1721_v57  ;;  %v1726_v32 = vadd.f32 %v6042_v48, %v1232_v15  ;;  %6128 = vmatprep.mubr.bf16.mxu1 %v7480_v40  ;;  %v1233_v46 = vadd.f32 %v8746_v33, %v837_v6  ;;  %v8754_v15 = vld [vmem:[#allocation26_spill] sm:$0xff]  ;;  %v8761_v33 = vld [vmem:[#allocation28_spill] sm:$0xff] }
 0x15c   : > { %6642 = vmatmul.mubr.msk.bf16.gmra.mxu0 %vm6640_vm0, %v6641_v63  ;;  %v1645_v59 = vpop.f32.mrf.mxu1  ;;  %6205 = vmatpush3.bf16.msra.mxu1 %v6579_v1  ;;  %v8750_v1 = vld [vmem:[#allocation7_spill] sm:$0xff]  ;;  %v1236_v57 = vadd.f32 %v8754_v15, %v850_v36  ;;  %v6583_v48 = vld [vmem:[%s8679_s3 + $0xd0] sm:$0xff]   ;;  %v8756_v63 = vld [vmem:[#allocation29_spill] sm:$0xff]  ;;  %vm7582_vm3 = vcmp.lt.s32.totalorder %v1967_v4, 15 }
 0x15d   : > { %6645 = vmatprep.mubr.msk.bf16.mxu0 %vm6643_vm1, %v6644_v28  ;;  %6161 = vmatpush3.bf16.msra.mxu0 %v6575_v21  ;;  %v2403_v47 = vsel %vm7500_vm14, %v1794_v50, 0.0  ;;  %v1792_v8 = vmax.f32 %v1760_v60, 0.0  ;;  %v7537_v23 = vadd.f32 %v7276_v37, %v1726_v32  ;;  %v1724_v31 = vadd.f32 %v1645_v59, %v1230_v5  ;;  %v2472_v25 = vld [vmem:[#allocation2 + $0x77] sm:$0xff]  ;;  %vm6652_vm8 = vmpackc.low %vm7582_vm3, %vm6695_vm7 }
 0x15e   : > { %6162 = vmatprep.subr.bf16.mxu0 %v6578_v56  ;;  %6206 = vmatprep.subr.bf16.mxu1 %v6580_v12  ;;  %v1231_v21 = vadd.f32 %v8749_v45, %v829_v61  ;;  %v842_v17 = vadd.f32 %v8751_v55, %v8750_v1  ;;  %2439 = vst [vmem:[#allocation2 + $0x98] sm:$0xff] %v2403_v47  ;;  %v6043_v34 = vpop.f32.mrf.mxu1  ;;  %v8763_v59 = vld [vmem:[#allocation10_spill] sm:$0xff]  ;;  %v8767_v1 = vld [vmem:[#allocation33_spill] sm:$0xff] }
 0x15f   : > { %v2401_v6 = vsel %vm7504_vm15, %v1792_v8, 0.0  ;;  %v1797_v38 = vmax.f32 %v7537_v23, 0.0  ;;  %v7554_v49 = vadd.f32 %v7276_v37, %v1724_v31  ;;  %v1727_v39 = vadd.f32 %v6043_v34, %v1233_v46  ;;  %v2470_v29 = vld [vmem:[#allocation2 + $0x67] sm:$0xff]  ;;  %v2471_v24 = vld [vmem:[#allocation2 + $0x6f] sm:$0xff] }
 0x160   : > { %2437 = vst [vmem:[#allocation2 + $0x88] sm:$0xff] %v2401_v6  ;;  %v1648_v3 = vpop.f32.mrf.mxu1  ;;  %v7556_v10 = vpack.c.bf16 %v2470_v29, %v2469_v7  ;;  %v7558_v9 = vpack.c.bf16 %v2472_v25, %v2471_v24  ;;  %6207 = vmatpush3.bf16.msra.mxu1 %v6580_v12  ;;  %v8755_v12 = vld [vmem:[#allocation9_spill] sm:$0xff]  ;;  %v6647_v28 = vpack.c.bf16 %v1792_v8, %v1791_v30  ;;  %v8762_v30 = vld [vmem:[#allocation30_spill] sm:$0xff]  ;;  %v2009_v8 = vand.u32 15, %v7561_v27 }
 0x161   : > { %6163 = vmatpush3.bf16.msra.mxu0 %v6578_v56  ;;  %2442 = vst [vmem:[#allocation2 + $0xb0] sm:$0xff] %v1797_v38  ;;  %v1795_v44 = vmax.f32 %v7554_v49, 0.0  ;;  %v7568_v41 = vadd.f32 %v7276_v37, %v1727_v39  ;;  %v1725_v61 = vadd.f32 %v1648_v3, %v1231_v21  ;;  %6208 = vmatprep.subr.bf16.mxu1 %v6582_v22  ;;  %v6584_v56 = vld [vmem:[%s8679_s3 + $0x80] sm:$0xff]   ;;  %v1833_v31 = vadd.s32 168, %v7261_v58  ;;  %v8766_v21 = vld [vmem:[#allocation11_spill] sm:$0xff] }
 0x162   : > { %6164 = vmatprep.subr.bf16.mxu0 %v6581_v54  ;;  %v845_v19 = vadd.f32 %v8756_v63, %v8755_v12  ;;  %v6046_v32 = vpop.f32.mrf.mxu1  ;;  %6129 = vmatmul.mubr.bf16.gmra.mxu1 %v7556_v10  ;;  %v1234_v46 = vadd.f32 %v8761_v33, %v842_v17  ;;  %v6650_v20 = vpack.c.bf16 %v1794_v50, %v1793_v62  ;;  %v6585_v50 = vld [vmem:[%s8679_s3 + $0xc8] sm:$0xff]   ;;  %v8768_v17 = vld [vmem:[#allocation12_spill] sm:$0xff]  ;;  %v8770_v12 = vld [vmem:[#allocation34_spill] sm:$0xff]  ;;  %vm7653_vm6 = vcmp.lt.s32.totalorder %v2009_v8, 15 }
 0x163   : > { %2440 = vst [vmem:[#allocation2 + $0xa0] sm:$0xff] %v1795_v44  ;;  %v1798_v16 = vmax.f32 %v7568_v41, 0.0  ;;  %v1764_v2 = vadd.f32 %v7276_v37, %v1725_v61  ;;  %v1730_v36 = vadd.f32 %v6046_v32, %v1236_v57  ;;  %6132 = vmatprep.mubr.bf16.mxu1 %v7558_v9  ;;  %v1237_v35 = vadd.f32 %v8762_v30, %v853_v52  ;;  %v2473_v34 = vld [vmem:[#allocation2 + $0x7f] sm:$0xff]  ;;  %vm6661_vm13 = vmpackc.low %vm7653_vm6, %vm6695_vm7 }
 0x164   : > { %6648 = vmatmul.mubr.msk.bf16.gmra.mxu0 %vm6646_vm4, %v6647_v28  ;;  %v866_v4 = vadd.f32 %v8764_v0, %v8763_v59  ;;  %v1661_v47 = vpop.f32.mrf.mxu1  ;;  %6209 = vmatpush3.bf16.msra.mxu1 %v6582_v22  ;;  %v8765_v22 = vld [vmem:[#allocation32_spill] sm:$0xff]  ;;  %v858_v55 = vadd.f32 %v8767_v1, %v8766_v21  ;;  %v869_v14 = vadd.f32 %v8769_v53, %v8768_v17  ;;  %v1995_v15 = vand.u32 15, %v1833_v31  ;;  %v7691_v41 = vld [vmem:[%s8679_s3 + $0x178] sm:$0xff]  }
 0x165   : > { %6651 = vmatprep.mubr.msk.bf16.mxu0 %vm6649_vm5, %v6650_v20  ;;  %6165 = vmatpush3.bf16.msra.mxu0 %v6581_v54  ;;  %v2407_v51 = vsel %vm7578_vm2, %v1798_v16, 0.0  ;;  %v1796_v11 = vmax.f32 %v1764_v2, 0.0  ;;  %v7615_v62 = vadd.f32 %v7276_v37, %v1730_v36  ;;  %v1728_v13 = vadd.f32 %v1661_v47, %v1234_v46  ;;  %v7623_v54 = vld [vmem:[%s8679_s3 + $0x138] sm:$0xff]   ;;  %v6586_v33 = vld [vmem:[%s8679_s3 + $0xc0] sm:$0xff]  }
 0x166   : > { %6210 = vmatprep.subr.bf16.mxu1 %v6583_v48  ;;  %6166 = vmatprep.subr.bf16.mxu0 %v6584_v56  ;;  %v1235_v45 = vadd.f32 %v8765_v22, %v845_v19  ;;  %2443 = vst [vmem:[#allocation2 + $0xb8] sm:$0xff] %v2407_v51  ;;  %v6047_v52 = vpop.f32.mrf.mxu1  ;;  %v2476_v3 = vld [vmem:[#allocation2 + $0x97] sm:$0xff]  ;;  %v1240_v63 = vadd.f32 %v8770_v12, %v866_v4  ;;  %v1839_v36 = vadd.s32 216, %v7261_v58  ;;  %v8774_v30 = vld [vmem:[#allocation36_spill] sm:$0xff]  ;;  %vm7676_vm10 = vcmp.lt.s32.totalorder %v1995_v15, 15 }
 0x167   : > { %v2405_v7 = vsel %vm7582_vm3, %v1796_v11, 0.0  ;;  %v1801_v6 = vmax.f32 %v7615_v62, 0.0  ;;  %v7634_v39 = vadd.f32 %v7276_v37, %v1728_v13  ;;  %v1731_v29 = vadd.f32 %v6047_v52, %v1237_v35  ;;  %v2474_v24 = vld [vmem:[#allocation2 + $0x87] sm:$0xff]  ;;  %v2475_v25 = vld [vmem:[#allocation2 + $0x8f] sm:$0xff]  ;;  %v8780_v13 = vld [vmem:[#allocation39_spill] sm:$0xff] }
 0x168   : > { %2441 = vst [vmem:[#allocation2 + $0xa8] sm:$0xff] %v2405_v7  ;;  %v1664_v27 = vpop.f32.mrf.mxu1  ;;  %v7636_v57 = vpack.c.bf16 %v2474_v24, %v2473_v34  ;;  %v7638_v61 = vpack.c.bf16 %v2476_v3, %v2475_v25  ;;  %6211 = vmatpush3.bf16.msra.mxu1 %v6583_v48  ;;  %v8771_v48 = vld [vmem:[#allocation13_spill] sm:$0xff]  ;;  %v6653_v20 = vpack.c.bf16 %v1796_v11, %v1795_v44  ;;  %v1837_v8 = vadd.s32 200, %v7261_v58  ;;  %v8779_v11 = vld [vmem:[#allocation14_spill] sm:$0xff]  ;;  %vm7717_vm12 = vmpackc.low %vm7676_vm10, %vm6695_vm7 }
 0x169   : > { %6167 = vmatpush3.bf16.msra.mxu0 %v6584_v56  ;;  %2446 = vst [vmem:[#allocation2 + $0xd0] sm:$0xff] %v1801_v6  ;;  %v1799_v19 = vmax.f32 %v7634_v39, 0.0  ;;  %v7645_v32 = vadd.f32 %v7276_v37, %v1731_v29  ;;  %v1729_v28 = vadd.f32 %v1664_v27, %v1235_v45  ;;  %6212 = vmatprep.subr.bf16.mxu1 %v6585_v50  ;;  %v8775_v44 = vld [vmem:[#allocation37_spill] sm:$0xff]  ;;  %v2037_v45 = vand.u32 15, %v1839_v36 }
 0x16a   : > { %6248 = vmatprep.subr.bf16.mxu0 %v7623_v54  ;;  %v861_v56 = vadd.f32 %v7252_v26, %v8771_v48  ;;  %v6050_v2 = vpop.f32.mrf.mxu1  ;;  %6133 = vmatmul.mubr.bf16.gmra.mxu1 %v7636_v57  ;;  %v1238_v35 = vadd.f32 %v8774_v30, %v858_v55  ;;  %v6656_v49 = vpack.c.bf16 %v1798_v16, %v1797_v38  ;;  %v8778_v16 = vld [vmem:[#allocation38_spill] sm:$0xff]  ;;  %v2477_v21 = vld [vmem:[#allocation2 + $0x9f] sm:$0xff]  ;;  %v2023_v39 = vand.u32 15, %v1837_v8  ;;  %v1202_v30 = vpop.f32.mrf.mxu0 }
 0x16b   : > { %2444 = vst [vmem:[#allocation2 + $0xc0] sm:$0xff] %v1799_v19  ;;  %v1802_v26 = vmax.f32 %v7645_v32, 0.0  ;;  %v1768_v59 = vadd.f32 %v7276_v37, %v1729_v28  ;;  %v1734_v0 = vadd.f32 %v6050_v2, %v1240_v63  ;;  %6136 = vmatprep.mubr.bf16.mxu1 %v7638_v61  ;;  %v1241_v60 = vadd.f32 %v8775_v44, %v869_v14  ;;  %v8785_v28 = vld [vmem:[#allocation40_spill] sm:$0xff]  ;;  %v8786_v48 = vld [vmem:[#allocation15_spill] sm:$0xff] }
 0x16c   : > { %6654 = vmatmul.mubr.msk.bf16.gmra.mxu0 %vm6652_vm8, %v6653_v20  ;;  %v1677_v47 = vpop.f32.mrf.mxu1  ;;  %6213 = vmatpush3.bf16.msra.mxu1 %v6585_v50  ;;  %v1239_v51 = vadd.f32 %v8778_v16, %v861_v56  ;;  %v874_v50 = vadd.f32 %v8780_v13, %v8779_v11  ;;  %vm7709_vm11 = vcmp.lt.s32.totalorder %v2037_v45, 15  ;;  %v8787_v56 = vld [vmem:[#allocation41_spill] sm:$0xff]  ;;  %vm7736_vm14 = vcmp.lt.s32.totalorder %v2023_v39, 15 }
 0x16d   : > { %6657 = vmatprep.mubr.msk.bf16.mxu0 %vm6655_vm9, %v6656_v49  ;;  %v2411_v5 = vsel %vm7653_vm6, %v1802_v26, 0.0  ;;  %v7683_v31 = vmax.f32 %v1768_v59, 0.0  ;;  %v7686_v23 = vadd.f32 %v7276_v37, %v1734_v0  ;;  %v1732_v38 = vadd.f32 %v1677_v47, %v1238_v35  ;;  %6214 = vmatprep.subr.bf16.mxu1 %v6586_v33  ;;  %v2480_v34 = vld [vmem:[#allocation2 + $0xb7] sm:$0xff]  ;;  %vm7755_vm15 = vmpackc.low %vm7736_vm14, %vm6695_vm7  ;;  %v3008_v15 = vld [vmem:[#allocation2 + $0x21] sm:$0xff] }
 0x16e   : > { %2447 = vst [vmem:[#allocation2 + $0xd8] sm:$0xff] %v2411_v5  ;;  %v6051_v22 = vpop.f32.mrf.mxu1  ;;  %v877_v2 = vadd.f32 %v8787_v56, %v8786_v48  ;;  %v1841_v0 = vadd.s32 232, %v7261_v58  ;;  %vm7769_vm0 = vmpackc.low %vm7709_vm11, %vm6695_vm7  ;;  %v3012_v35 = vld [vmem:[#allocation2 + $0x41] sm:$0xff] }
 0x16f   : > { %v2409_v1 = vsel %vm7676_vm10, %v7683_v31, 0.0  ;;  %v1805_v55 = vmax.f32 %v7686_v23, 0.0  ;;  %v1771_v17 = vadd.f32 %v7276_v37, %v1732_v38  ;;  %v1735_v53 = vadd.f32 %v6051_v22, %v1241_v60  ;;  %v2478_v14 = vld [vmem:[#allocation2 + $0xa7] sm:$0xff]  ;;  %v2479_v52 = vld [vmem:[#allocation2 + $0xaf] sm:$0xff] }
 0x170   : > { %2445 = vst [vmem:[#allocation2 + $0xc8] sm:$0xff] %v2409_v1  ;;  %v1680_v7 = vpop.f32.mrf.mxu1  ;;  %v7701_v29 = vpack.c.bf16 %v2478_v14, %v2477_v21  ;;  %v7703_v24 = vpack.c.bf16 %v2480_v34, %v2479_v52  ;;  %6215 = vmatpush3.bf16.msra.mxu1 %v6586_v33  ;;  %v6659_v32 = vpack.c.bf16 %v7683_v31, %v1799_v19  ;;  %v2051_v38 = vand.u32 15, %v1841_v0  ;;  %v3007_v14 = vld [vmem:[#allocation2 + $0x19] sm:$0xff] }
 0x171   : > { %2450 = vst [vmem:[#allocation2 + $0xf0] sm:$0xff] %v1805_v55  ;;  %v1803_v25 = vmax.f32 %v1771_v17, 0.0  ;;  %v1774_v3 = vadd.f32 %v7276_v37, %v1735_v53  ;;  %v1733_v27 = vadd.f32 %v1680_v7, %v1239_v51  ;;  %6296 = vmatprep.subr.bf16.mxu1 %v7691_v41  ;;  %v1242_v33 = vadd.f32 %v8785_v28, %v874_v50  ;;  %v3015_v0 = vld [vmem:[#allocation2 + $0x59] sm:$0xff]  ;;  %v4230_v50 = vld [vmem:[#allocation2 + $0x2f] sm:$0xff] }
 0x172   : > { %v6054_v12 = vpop.f32.mrf.mxu1  ;;  %6137 = vmatmul.mubr.bf16.gmra.mxu1 %v7701_v29  ;;  %v6662_v19 = vpack.c.bf16 %v1802_v26, %v1801_v6  ;;  %v2481_v4 = vld [vmem:[#allocation2 + $0xbf] sm:$0xff]  ;;  %v1243_v62 = vadd.f32 %v1202_v30, %v877_v2  ;;  %vm2257_vm1 = vcmp.lt.s32.totalorder %v2051_v38, 15  ;;  %v6588_v2 = vld [vmem:[%s8679_s3 + $0x130] sm:$0xff]   ;;  %v6589_v30 = vld [vmem:[%s8679_s3 + $0x128] sm:$0xff]  }
 0x173   : > { %2448 = vst [vmem:[#allocation2 + $0xe0] sm:$0xff] %v1803_v25  ;;  %v7727_v36 = vmax.f32 %v1774_v3, 0.0  ;;  %v1772_v20 = vadd.f32 %v7276_v37, %v1733_v27  ;;  %6140 = vmatprep.mubr.bf16.mxu1 %v7703_v24  ;;  %vm7784_vm2 = vmpackc.low %vm2257_vm1, %vm6695_vm7  ;;  %v3009_v12 = vld [vmem:[#allocation2 + $0x29] sm:$0xff]  ;;  %v3955_v21 = vld [vmem:[#allocation2 + $0x119] sm:$0xff] }
 0x174   : > { %6660 = vmatmul.mubr.msk.bf16.gmra.mxu0 %vm7717_vm12, %v6659_v32  ;;  %v1693_v59 = vpop.f32.mrf.mxu1  ;;  %v7796_v56 = vpack.c.bf16 %v3009_v12, %v3008_v15  ;;  %v3021_v38 = vld [vmem:[#allocation2 + $0x89] sm:$0xff]  ;;  %v6608_v12 = vld [vmem:[%s8679_s3 + $0x1f8] sm:$0xff]  }
 0x175   : > { %6663 = vmatprep.mubr.msk.bf16.mxu0 %vm6661_vm13, %v6662_v19  ;;  %v2415_v49 = vsel %vm7709_vm11, %v7727_v36, 0.0  ;;  %v1804_v44 = vmax.f32 %v1772_v20, 0.0  ;;  %v1736_v60 = vadd.f32 %v1693_v59, %v1242_v33  ;;  %v2484_v5 = vld [vmem:[#allocation2 + $0xd7] sm:$0xff]  ;;  %v6668_v1 = vpack.c.bf16 %v7727_v36, %v1805_v55  ;;  %v3013_v59 = vld [vmem:[#allocation2 + $0x49] sm:$0xff]  ;;  %v4232_v55 = vld [vmem:[#allocation2 + $0x3f] sm:$0xff] }
 0x176   : > { %2451 = vst [vmem:[#allocation2 + $0xf8] sm:$0xff] %v2415_v49  ;;  %v6055_v46 = vpop.f32.mrf.mxu1  ;;  %v3011_v33 = vld [vmem:[#allocation2 + $0x39] sm:$0xff]  ;;  %v3010_v20 = vld [vmem:[#allocation2 + $0x31] sm:$0xff]  ;;  %v7811_v49 = vpack.c.bf16 %v3013_v59, %v3012_v35 }
 0x177   : > { %v2413_v6 = vsel %vm7736_vm14, %v1804_v44, 0.0  ;;  %v1775_v26 = vadd.f32 %v7276_v37, %v1736_v60  ;;  %v2482_v47 = vld [vmem:[#allocation2 + $0xc7] sm:$0xff]  ;;  %v2483_v8 = vld [vmem:[#allocation2 + $0xcf] sm:$0xff]  ;;  %v7759_v22 = vpack.c.bf16 %v1804_v44, %v1803_v25  ;;  %v7803_v19 = vpack.c.bf16 %v3011_v33, %v3010_v20  ;;  %v6591_v46 = vld [vmem:[%s8679_s3 + $0x118] sm:$0xff]  }
 0x178   : > { %2449 = vst [vmem:[#allocation2 + $0xe8] sm:$0xff] %v2413_v6  ;;  %v1696_v58 = vpop.f32.mrf.mxu1  ;;  %v7747_v16 = vpack.c.bf16 %v2482_v47, %v2481_v4  ;;  %v7749_v51 = vpack.c.bf16 %v2484_v5, %v2483_v8  ;;  %v3014_v44 = vld [vmem:[#allocation2 + $0x51] sm:$0xff]  ;;  %v3016_v4 = vld [vmem:[#allocation2 + $0x61] sm:$0xff]  ;;  %v3019_v6 = vld [vmem:[#allocation2 + $0x79] sm:$0xff] }
 0x179   : > { %v1807_v11 = vmax.f32 %v1775_v26, 0.0  ;;  %v1737_v13 = vadd.f32 %v1696_v58, %v1243_v62  ;;  %v7813_v60 = vpack.c.bf16 %v3015_v0, %v3014_v44  ;;  %v3017_v62 = vld [vmem:[#allocation2 + $0x69] sm:$0xff]  ;;  %v6596_v8 = vld [vmem:[%s8679_s3 + $0x160] sm:$0xff]   ;;  %v3030_v33 = vld [vmem:[#allocation2 + $0xd1] sm:$0xff] }
 0x17a   : > { %6141 = vmatmul.mubr.bf16.gmra.mxu1 %v7747_v16  ;;  %v2485_v53 = vld [vmem:[#allocation2 + $0xdf] sm:$0xff]  ;;  %v7832_v26 = vpack.c.bf16 %v3017_v62, %v3016_v4  ;;  %v6597_v5 = vld [vmem:[%s8679_s3 + $0x108] sm:$0xff]  }
 0x17b   : > { %2452 = vst [vmem:[#allocation2 + $0x100] sm:$0xff] %v1807_v11  ;;  %v1776_v45 = vadd.f32 %v7276_v37, %v1737_v13  ;;  %6144 = vmatprep.mubr.bf16.mxu1 %v7749_v51  ;;  %v3006_v37 = vld [vmem:[#allocation2 + $0x11] sm:$0xff]  ;;  %v3020_v58 = vld [vmem:[#allocation2 + $0x81] sm:$0xff]  ;;  %v3029_v15 = vld [vmem:[#allocation2 + $0xc9] sm:$0xff] }
 0x17c   : > { %6666 = vmatmul.mubr.msk.bf16.gmra.mxu0 %vm7755_vm15, %v7759_v22  ;;  %v3038_v23 = vpack.c.bf16 %v3007_v14, %v3006_v37  ;;  %v7852_v13 = vpack.c.bf16 %v3021_v38, %v3020_v58  ;;  %v3024_v37 = vld [vmem:[#allocation2 + $0xa1] sm:$0xff]  ;;  %v3025_v14 = vld [vmem:[#allocation2 + $0xa9] sm:$0xff]  ;;  %v3621_v4 = vld [vmem:[#allocation2 + $0x38] sm:$0xff] }
 0x17d   : > { %6669 = vmatprep.mubr.msk.bf16.mxu0 %vm7769_vm0, %v6668_v1  ;;  %v1808_v17 = vmax.f32 %v1776_v45, 0.0  ;;  %v2488_v39 = vld [vmem:[#allocation2 + $0xf7] sm:$0xff]  ;;  %v3619_v0 = vld [vmem:[#allocation2 + $0x28] sm:$0xff] }
 0x17e   : > { %v6599_v1 = vld [vmem:[%s8679_s3 + $0x150] sm:$0xff]   ;;  %v3623_v62 = vld [vmem:[#allocation2 + $0x48] sm:$0xff] }
 0x17f   : > { %v2417_v52 = vsel %vm2257_vm1, %v1808_v17, 0.0  ;;  %v2486_v34 = vld [vmem:[#allocation2 + $0xe7] sm:$0xff]  ;;  %v2487_v7 = vld [vmem:[#allocation2 + $0xef] sm:$0xff]  ;;  %v7788_v27 = vpack.c.bf16 %v1808_v17, %v1807_v11  ;;  %v3023_v11 = vld [vmem:[#allocation2 + $0x99] sm:$0xff] }
 0x180   : > { %2453 = vst [vmem:[#allocation2 + $0x108] sm:$0xff] %v2417_v52  ;;  %v7778_v25 = vpack.c.bf16 %v2486_v34, %v2485_v53  ;;  %v7780_v3 = vpack.c.bf16 %v2488_v39, %v2487_v7  ;;  %v6600_v17 = vld [vmem:[%s8679_s3 + $0x100] sm:$0xff]   ;;  %v6601_v53 = vld [vmem:[%s8679_s3 + $0x148] sm:$0xff]   ;;  %v7872_v34 = vpack.c.bf16 %v3025_v14, %v3024_v37  ;;  %v3034_v35 = vld [vmem:[#allocation2 + $0xf1] sm:$0xff] }
 0x181   : > { %v3027_v52 = vld [vmem:[#allocation2 + $0xb9] sm:$0xff]  ;;  %v3624_v58 = vld [vmem:[#allocation2 + $0x50] sm:$0xff] }
 0x182   : > { %6145 = vmatmul.mubr.bf16.gmra.mxu1 %v7778_v25  ;;  %v2489_v32 = vld [vmem:[#allocation2 + $0xff] sm:$0xff]  ;;  %v3628_v37 = vld [vmem:[#allocation2 + $0x70] sm:$0xff] }
 0x183   : > { %6148 = vmatprep.mubr.bf16.mxu1 %v7780_v3  ;;  %v6602_v39 = vld [vmem:[%s8679_s3 + $0x140] sm:$0xff]  }
 0x184   : > { %6672 = vmatmul.mubr.msk.bf16.gmra.mxu0 %vm7784_vm2, %v7788_v27  ;;  %v3035_v20 = vld [vmem:[#allocation2 + $0xf9] sm:$0xff] }
 0x185   : > { %6168 = vmatprep.mubr.bf16.mxu0 %v3038_v23  ;;  %v3028_v23 = vld [vmem:[#allocation2 + $0xc1] sm:$0xff]  ;;  %v7896_v59 = vpack.c.bf16 %v3035_v20, %v3034_v35  ;;  %v3637_v20 = vld [vmem:[#allocation2 + $0xb8] sm:$0xff] }
 0x186   : > { %v6617_v35 = vld [vmem:[%s8679_s3 + $0x1c8] sm:$0xff]  }
 0x187   : > { %v2490_v28 = vld [vmem:[#allocation2 + $0x107] sm:$0xff] }
 0x188   : > { %v7794_v48 = vpack.c.bf16 %v2490_v28, %v2489_v32  ;;  %v3031_v32 = vld [vmem:[#allocation2 + $0xd9] sm:$0xff]  ;;  %v7886_v28 = vpack.c.bf16 %v3029_v15, %v3028_v23  ;;  %v6613_v23 = vld [vmem:[%s8679_s3 + $0x188] sm:$0xff]  }
 0x189   : > { %v6614_v15 = vld [vmem:[%s8679_s3 + $0x1d8] sm:$0xff]  }
 0x18a   : > { %6149 = vmatmul.mubr.bf16.gmra.mxu1 %v7794_v48 }
 0x18b   : > { %6216 = vmatprep.mubr.bf16.mxu1 %v7401_v43  ;;  %v6590_v43 = vld [vmem:[%s8679_s3 + $0x120] sm:$0xff]  }
 0x18c   : > { %6169 = vmatmul.mubr.bf16.vlgmr.msra.gmra.mxu0 %v7796_v56 }
 0x18d   : > { %6249 = vmatpush3.bf16.msra.mxu0 %v7623_v54  ;;  %6172 = vmatprep.mubr.bf16.mxu0 %v7803_v19  ;;  %v6593_v54 = vld [vmem:[%s8679_s3 + $0x170] sm:$0xff]  }
 0x18e   : > { %6250 = vmatprep.subr.bf16.mxu0 %v6588_v2 }
 0x191   : > { %6251 = vmatpush3.bf16.msra.mxu0 %v6588_v2  ;;  %v3033_v2 = vld [vmem:[#allocation2 + $0xe9] sm:$0xff] }
 0x192   : > { %6252 = vmatprep.subr.bf16.mxu0 %v6589_v30  ;;  %6217 = vmatmul.mubr.bf16.vlgmr.msra.gmra.mxu1 %v7403_v18  ;;  %v6595_v18 = vld [vmem:[%s8679_s3 + $0x168] sm:$0xff]  }
 0x193   : > { %6220 = vmatprep.mubr.bf16.mxu1 %v7478_v42  ;;  %6297 = vmatpush3.bf16.msra.mxu1 %v7691_v41  ;;  %v3018_v42 = vld [vmem:[#allocation2 + $0x71] sm:$0xff] }
 0x194   : > { %6173 = vmatmul.mubr.bf16.gmra.mxu0 %v7811_v49  ;;  %6298 = vmatprep.subr.bf16.mxu1 %v6593_v54  ;;  %v7834_v47 = vpack.c.bf16 %v3019_v6, %v3018_v42  ;;  %v6594_v41 = vld [vmem:[%s8679_s3 + $0x110] sm:$0xff]  }
 0x195   : > { %6176 = vmatprep.mubr.bf16.mxu0 %v7813_v60  ;;  %6253 = vmatpush3.bf16.msra.mxu0 %v6589_v30  ;;  %v6604_v42 = vld [vmem:[%s8679_s3 + $0x1b0] sm:$0xff]  }
 0x196   : > { %6254 = vmatprep.subr.bf16.mxu0 %v6590_v43 }
 0x197   : > { %6299 = vmatpush3.bf16.msra.mxu1 %v6593_v54 }
 0x198   : > { %6300 = vmatprep.subr.bf16.mxu1 %v6595_v18 }
 0x199   : > { %6255 = vmatpush3.bf16.msra.mxu0 %v6590_v43  ;;  %v3618_v43 = vld [vmem:[#allocation2 + $0x20] sm:$0xff] }
 0x19a   : > { %6256 = vmatprep.subr.bf16.mxu0 %v6591_v46  ;;  %6221 = vmatmul.mubr.bf16.gmra.mxu1 %v7480_v40  ;;  %v6598_v40 = vld [vmem:[%s8679_s3 + $0x158] sm:$0xff]   ;;  %v3650_v54 = vpack.c.bf16 %v3619_v0, %v3618_v43 }
 0x19b   : > { %6224 = vmatprep.mubr.bf16.mxu1 %v7556_v10  ;;  %6301 = vmatpush3.bf16.msra.mxu1 %v6595_v18  ;;  %v3022_v10 = vld [vmem:[#allocation2 + $0x91] sm:$0xff] }
 0x19c   : > { %6177 = vmatmul.mubr.bf16.gmra.mxu0 %v7832_v26  ;;  %6302 = vmatprep.subr.bf16.mxu1 %v6596_v8  ;;  %v7854_v45 = vpack.c.bf16 %v3023_v11, %v3022_v10  ;;  %v6609_v10 = vld [vmem:[%s8679_s3 + $0x1f0] sm:$0xff]  }
 0x19d   : > { %6180 = vmatprep.mubr.bf16.mxu0 %v7834_v47  ;;  %6257 = vmatpush3.bf16.msra.mxu0 %v6591_v46  ;;  %v3343_v46 = vld [vmem:[#allocation2 + $0x117] sm:$0xff] }
 0x19e   : > { %6258 = vmatprep.subr.bf16.mxu0 %v6594_v41 }
 0x19f   : > { %6303 = vmatpush3.bf16.msra.mxu1 %v6596_v8  ;;  %v3625_v8 = vld [vmem:[#allocation2 + $0x58] sm:$0xff] }
 0x1a0   : > { %6304 = vmatprep.subr.bf16.mxu1 %v6598_v40  ;;  %v7923_v38 = vpack.c.bf16 %v3625_v8, %v3624_v58  ;;  %v4238_v8 = vld [vmem:[#allocation2 + $0x6f] sm:$0xff] }
 0x1a1   : > { %6259 = vmatpush3.bf16.msra.mxu0 %v6594_v41  ;;  %v3622_v41 = vld [vmem:[#allocation2 + $0x40] sm:$0xff] }
 0x1a2   : > { %6260 = vmatprep.subr.bf16.mxu0 %v6597_v5  ;;  %6225 = vmatmul.mubr.bf16.gmra.mxu1 %v7558_v9  ;;  %v6603_v9 = vld [vmem:[%s8679_s3 + $0x1b8] sm:$0xff]  }
 0x1a3   : > { %6228 = vmatprep.mubr.bf16.mxu1 %v7636_v57  ;;  %6305 = vmatpush3.bf16.msra.mxu1 %v6598_v40  ;;  %v3026_v57 = vld [vmem:[#allocation2 + $0xb1] sm:$0xff]  ;;  %v3626_v40 = vld [vmem:[#allocation2 + $0x60] sm:$0xff] }
 0x1a4   : > { %6181 = vmatmul.mubr.bf16.gmra.mxu0 %v7852_v13  ;;  %6306 = vmatprep.subr.bf16.mxu1 %v6599_v1  ;;  %v7874_v7 = vpack.c.bf16 %v3027_v52, %v3026_v57  ;;  %v6610_v52 = vld [vmem:[%s8679_s3 + $0x190] sm:$0xff]   ;;  %v6612_v57 = vld [vmem:[%s8679_s3 + $0x1e0] sm:$0xff]  }
 0x1a5   : > { %6184 = vmatprep.mubr.bf16.mxu0 %v7854_v45  ;;  %6261 = vmatpush3.bf16.msra.mxu0 %v6597_v5  ;;  %v3627_v5 = vld [vmem:[#allocation2 + $0x68] sm:$0xff] }
 0x1a6   : > { %6262 = vmatprep.subr.bf16.mxu0 %v6600_v17  ;;  %v7925_v11 = vpack.c.bf16 %v3627_v5, %v3626_v40  ;;  %v4236_v5 = vld [vmem:[#allocation2 + $0x5f] sm:$0xff] }
 0x1a7   : > { %6307 = vmatpush3.bf16.msra.mxu1 %v6599_v1  ;;  %v3629_v1 = vld [vmem:[#allocation2 + $0x78] sm:$0xff] }
 0x1a8   : > { %6308 = vmatprep.subr.bf16.mxu1 %v6601_v53  ;;  %v7943_v14 = vpack.c.bf16 %v3629_v1, %v3628_v37 }
 0x1a9   : > { %6263 = vmatpush3.bf16.msra.mxu0 %v6600_v17  ;;  %v6607_v17 = vld [vmem:[%s8679_s3 + $0x198] sm:$0xff]  }
 0x1aa   : > { %6344 = vmatprep.subr.bf16.mxu0 %v6603_v9  ;;  %6229 = vmatmul.mubr.bf16.gmra.mxu1 %v7638_v61  ;;  %v7888_v61 = vpack.c.bf16 %v3031_v32, %v3030_v33 }
 0x1ab   : > { %6232 = vmatprep.mubr.bf16.mxu1 %v7701_v29  ;;  %6309 = vmatpush3.bf16.msra.mxu1 %v6601_v53  ;;  %v3032_v29 = vld [vmem:[#allocation2 + $0xe1] sm:$0xff] }
 0x1ac   : > { %6185 = vmatmul.mubr.bf16.gmra.mxu0 %v7872_v34  ;;  %6310 = vmatprep.subr.bf16.mxu1 %v6602_v39  ;;  %v7894_v30 = vpack.c.bf16 %v3033_v2, %v3032_v29  ;;  %v6611_v53 = vld [vmem:[%s8679_s3 + $0x1e8] sm:$0xff]   ;;  %v6615_v29 = vld [vmem:[%s8679_s3 + $0x1d0] sm:$0xff]   ;;  %v6616_v2 = vld [vmem:[%s8679_s3 + $0x180] sm:$0xff]  }
 0x1ad   : > { %6188 = vmatprep.mubr.bf16.mxu0 %v7874_v7 }
 0x1af   : > { %6311 = vmatpush3.bf16.msra.mxu1 %v6602_v39  ;;  %v3633_v39 = vld [vmem:[#allocation2 + $0x98] sm:$0xff] }
 0x1b0   : > { %6392 = vmatprep.subr.bf16.mxu1 %v6608_v12 }
 0x1b2   : > { %6233 = vmatmul.mubr.bf16.gmra.mxu1 %v7703_v24  ;;  %v3036_v24 = vld [vmem:[#allocation2 + $0x101] sm:$0xff] }
 0x1b3   : > { %6236 = vmatprep.mubr.bf16.mxu1 %v7747_v16  ;;  %v3037_v16 = vld [vmem:[#allocation2 + $0x109] sm:$0xff] }
 0x1b4   : > { %6189 = vmatmul.mubr.bf16.gmra.mxu0 %v7886_v28  ;;  %v7902_v44 = vpack.c.bf16 %v3037_v16, %v3036_v24  ;;  %v6619_v24 = vld [vmem:[%s8679_s3 + $0x238] sm:$0xff]   ;;  %v3636_v16 = vld [vmem:[#allocation2 + $0xb0] sm:$0xff] }
 0x1b5   : > { %6192 = vmatprep.mubr.bf16.mxu0 %v7888_v61  ;;  %v7985_v0 = vpack.c.bf16 %v3637_v20, %v3636_v16 }
 0x1ba   : > { %6237 = vmatmul.mubr.bf16.gmra.mxu1 %v7749_v51  ;;  %v3342_v51 = vld [vmem:[#allocation2 + $0x10f] sm:$0xff] }
 0x1bb   : > { %6240 = vmatprep.mubr.bf16.mxu1 %v7778_v25  ;;  %v3620_v25 = vld [vmem:[#allocation2 + $0x30] sm:$0xff]  ;;  %v7907_v18 = vpack.c.bf16 %v3343_v46, %v3342_v51 }
 0x1bc   : > { %6193 = vmatmul.mubr.bf16.gmra.mxu0 %v7894_v30  ;;  %v7909_v6 = vpack.c.bf16 %v3621_v4, %v3620_v25  ;;  %v3640_v51 = vld [vmem:[#allocation2 + $0xd0] sm:$0xff] }
 0x1bd   : > { %6196 = vmatprep.mubr.bf16.mxu0 %v7896_v59  ;;  %v6620_v4 = vld [vmem:[%s8679_s3 + $0x230] sm:$0xff]  }
 0x1be   : > { %v4235_v25 = vld [vmem:[#allocation2 + $0x57] sm:$0xff] }
 0x1c2   : > { %6241 = vmatmul.mubr.bf16.gmra.mxu1 %v7780_v3  ;;  %v7916_v3 = vpack.c.bf16 %v3623_v62, %v3622_v41  ;;  %v4237_v41 = vld [vmem:[#allocation2 + $0x67] sm:$0xff] }
 0x1c3   : > { %6244 = vmatprep.mubr.bf16.mxu1 %v7794_v48  ;;  %v6605_v48 = vld [vmem:[%s8679_s3 + $0x1a8] sm:$0xff]   ;;  %v4265_v40 = vpack.c.bf16 %v4237_v41, %v4236_v5 }
 0x1c4   : > { %6197 = vmatmul.mubr.bf16.gmra.mxu0 %v7902_v44 }
 0x1c5   : > { %6264 = vmatprep.mubr.bf16.mxu0 %v3650_v54  ;;  %v3641_v54 = vld [vmem:[#allocation2 + $0xd8] sm:$0xff] }
 0x1c6   : > { %v7997_v46 = vpack.c.bf16 %v3641_v54, %v3640_v51 }
 0x1ca   : > { %6245 = vmatmul.mubr.bf16.gmra.mxu1 %v7907_v18 }
 0x1cb   : > { %6312 = vmatprep.mubr.bf16.mxu1 %v7796_v56  ;;  %v6606_v56 = vld [vmem:[%s8679_s3 + $0x1a0] sm:$0xff]  }
 0x1cc   : > { %6265 = vmatmul.mubr.bf16.vlgmr.msra.gmra.mxu0 %v7909_v6 }
 0x1cd   : > { %6345 = vmatpush3.bf16.msra.mxu0 %v6603_v9  ;;  %6268 = vmatprep.mubr.bf16.mxu0 %v7916_v3 }
 0x1ce   : > { %6346 = vmatprep.subr.bf16.mxu0 %v6604_v42 }
 0x1d1   : > { %6347 = vmatpush3.bf16.msra.mxu0 %v6604_v42  ;;  %v6621_v42 = vld [vmem:[%s8679_s3 + $0x228] sm:$0xff]  }
 0x1d2   : > { %6348 = vmatprep.subr.bf16.mxu0 %v6605_v48  ;;  %6313 = vmatmul.mubr.bf16.vlgmr.msra.gmra.mxu1 %v7803_v19  ;;  %v3631_v19 = vld [vmem:[#allocation2 + $0x88] sm:$0xff] }
 0x1d3   : > { %6316 = vmatprep.mubr.bf16.mxu1 %v7811_v49  ;;  %6393 = vmatpush3.bf16.msra.mxu1 %v6608_v12  ;;  %v3630_v49 = vld [vmem:[#allocation2 + $0x80] sm:$0xff]  ;;  %v3632_v12 = vld [vmem:[#allocation2 + $0x90] sm:$0xff] }
 0x1d4   : > { %6269 = vmatmul.mubr.bf16.gmra.mxu0 %v7923_v38  ;;  %6394 = vmatprep.subr.bf16.mxu1 %v6609_v10  ;;  %v7945_v9 = vpack.c.bf16 %v3631_v19, %v3630_v49  ;;  %v7963_v32 = vpack.c.bf16 %v3633_v39, %v3632_v12 }
 0x1d5   : > { %6272 = vmatprep.mubr.bf16.mxu0 %v7925_v11  ;;  %6349 = vmatpush3.bf16.msra.mxu0 %v6605_v48 }
 0x1d6   : > { %6350 = vmatprep.subr.bf16.mxu0 %v6606_v56 }
 0x1d7   : > { %6395 = vmatpush3.bf16.msra.mxu1 %v6609_v10 }
 0x1d8   : > { %6396 = vmatprep.subr.bf16.mxu1 %v6611_v53 }
 0x1d9   : > { %6351 = vmatpush3.bf16.msra.mxu0 %v6606_v56  ;;  %v4239_v56 = vld [vmem:[#allocation2 + $0x77] sm:$0xff] }
 0x1da   : > { %6352 = vmatprep.subr.bf16.mxu0 %v6607_v17  ;;  %6317 = vmatmul.mubr.bf16.gmra.mxu1 %v7813_v60  ;;  %v3635_v60 = vld [vmem:[#allocation2 + $0xa8] sm:$0xff]  ;;  %v4266_v10 = vpack.c.bf16 %v4239_v56, %v4238_v8 }
 0x1db   : > { %6320 = vmatprep.mubr.bf16.mxu1 %v7832_v26  ;;  %6397 = vmatpush3.bf16.msra.mxu1 %v6611_v53  ;;  %v3634_v26 = vld [vmem:[#allocation2 + $0xa0] sm:$0xff] }
 0x1dc   : > { %6273 = vmatmul.mubr.bf16.gmra.mxu0 %v7943_v14  ;;  %6398 = vmatprep.subr.bf16.mxu1 %v6612_v57  ;;  %v7965_v33 = vpack.c.bf16 %v3635_v60, %v3634_v26  ;;  %v4240_v60 = vld [vmem:[#allocation2 + $0x7f] sm:$0xff] }
 0x1dd   : > { %6276 = vmatprep.mubr.bf16.mxu0 %v7945_v9  ;;  %6353 = vmatpush3.bf16.msra.mxu0 %v6607_v17 }
 0x1de   : > { %6354 = vmatprep.subr.bf16.mxu0 %v6610_v52 }
 0x1df   : > { %6399 = vmatpush3.bf16.msra.mxu1 %v6612_v57  ;;  %v6623_v57 = vld [vmem:[%s8679_s3 + $0x218] sm:$0xff]  }
 0x1e0   : > { %6400 = vmatprep.subr.bf16.mxu1 %v6614_v15 }
 0x1e1   : > { %6355 = vmatpush3.bf16.msra.mxu0 %v6610_v52  ;;  %v4241_v52 = vld [vmem:[#allocation2 + $0x87] sm:$0xff] }
 0x1e2   : > { %6356 = vmatprep.subr.bf16.mxu0 %v6613_v23  ;;  %6321 = vmatmul.mubr.bf16.gmra.mxu1 %v7834_v47  ;;  %v7983_v47 = vld [vmem:[#allocation2 + $0xc0] sm:$0xff]  ;;  %v4267_v26 = vpack.c.bf16 %v4241_v52, %v4240_v60 }
 0x1e3   : > { %6324 = vmatprep.mubr.bf16.mxu1 %v7852_v13  ;;  %6401 = vmatpush3.bf16.msra.mxu1 %v6614_v15  ;;  %v6618_v13 = vld [vmem:[%s8679_s3 + $0x1c0] sm:$0xff]   ;;  %v6674_v43 = vpack.c.bf16 %v7683_v31, %v7983_v47  ;;  %v8005_v31 = vld [vmem:[#allocation2 + $0xf0] sm:$0xff] }
 0x1e4   : > { %6277 = vmatmul.mubr.bf16.gmra.mxu0 %v7963_v32  ;;  %6402 = vmatprep.subr.bf16.mxu1 %v6615_v29  ;;  %v6680_v63 = vpack.c.bf16 %v7727_v36, %v8005_v31  ;;  %v3954_v36 = vld [vmem:[#allocation2 + $0x111] sm:$0xff]  ;;  %v4253_v60 = vld [vmem:[#allocation2 + $0xe7] sm:$0xff] }
 0x1e5   : > { %6280 = vmatprep.mubr.bf16.mxu0 %v7965_v33  ;;  %6357 = vmatpush3.bf16.msra.mxu0 %v6613_v23  ;;  %v4242_v23 = vld [vmem:[#allocation2 + $0x8f] sm:$0xff] }
 0x1e6   : > { %6358 = vmatprep.subr.bf16.mxu0 %v6616_v2 }
 0x1e7   : > { %6403 = vmatpush3.bf16.msra.mxu1 %v6615_v29  ;;  %v4243_v29 = vld [vmem:[#allocation2 + $0x97] sm:$0xff] }
 0x1e8   : > { %6404 = vmatprep.subr.bf16.mxu1 %v6617_v35  ;;  %v4268_v20 = vpack.c.bf16 %v4243_v29, %v4242_v23  ;;  %v4555_v23 = vld [vmem:[#allocation2 + $0xc8] sm:$0xff] }
 0x1e9   : > { %6359 = vmatpush3.bf16.msra.mxu0 %v6616_v2 }
 0x1ea   : > { %6440 = vmatprep.subr.bf16.mxu0 %v6619_v24  ;;  %6325 = vmatmul.mubr.bf16.gmra.mxu1 %v7854_v45  ;;  %v6627_v45 = vld [vmem:[#allocation2] sm:$0xff] }
 0x1eb   : > { %6328 = vmatprep.mubr.bf16.mxu1 %v7872_v34  ;;  %6405 = vmatpush3.bf16.msra.mxu1 %v6617_v35  ;;  %v8016_v34 = vpack.c.bf16 %v6627_v45, %v6627_v45  ;;  %v6624_v35 = vld [vmem:[%s8679_s3 + $0x210] sm:$0xff]   ;;  %v6625_v45 = vld [vmem:[%s8679_s3 + $0x208] sm:$0xff]  }
 0x1ec   : > { %6281 = vmatmul.mubr.bf16.gmra.mxu0 %v7985_v0  ;;  %6406 = vmatprep.subr.bf16.mxu1 %v6618_v13 }
 0x1ed   : > { %6675 = vmatprep.mubr.msk.bf16.mxu0 %vm7717_vm12, %v6674_v43 }
 0x1ef   : > { %6407 = vmatpush3.bf16.msra.mxu1 %v6618_v13 }
 0x1f2   : > { %6329 = vmatmul.mubr.bf16.gmra.mxu1 %v7874_v7 }
 0x1f3   : > { %6332 = vmatprep.mubr.bf16.mxu1 %v7886_v28  ;;  %v4233_v28 = vld [vmem:[#allocation2 + $0x47] sm:$0xff] }
 0x1f4   : > { %6285 = vmatmul.mubr.bf16.gmra.mxu0 %v7997_v46 }
 0x1f5   : > { %6678 = vmatprep.mubr.msk.bf16.mxu0 %vm7755_vm15, %v7759_v22  ;;  %v4231_v22 = vld [vmem:[#allocation2 + $0x37] sm:$0xff] }
 0x1f6   : > { %v4262_v7 = vpack.c.bf16 %v4231_v22, %v4230_v50  ;;  %v4246_v22 = vld [vmem:[#allocation2 + $0xaf] sm:$0xff] }
 0x1fa   : > { %6333 = vmatmul.mubr.bf16.gmra.mxu1 %v7888_v61  ;;  %v8021_v61 = vpack.c.bf16 %v3955_v21, %v3954_v36  ;;  %v4244_v36 = vld [vmem:[#allocation2 + $0x9f] sm:$0xff] }
 0x1fb   : > { %6336 = vmatprep.mubr.bf16.mxu1 %v7894_v30  ;;  %v4263_v30 = vpack.c.bf16 %v4233_v28, %v4232_v55  ;;  %v4247_v55 = vld [vmem:[#allocation2 + $0xb7] sm:$0xff] }
 0x1fc   : > { %6681 = vmatmul.mubr.msk.bf16.gmra.mxu0 %vm7769_vm0, %v6680_v63  ;;  %v4245_v63 = vld [vmem:[#allocation2 + $0xa7] sm:$0xff] }
 0x1fd   : > { %6684 = vmatprep.mubr.msk.bf16.mxu0 %vm7784_vm2, %v7788_v27  ;;  %v4234_v27 = vld [vmem:[#allocation2 + $0x4f] sm:$0xff]  ;;  %v4269_v28 = vpack.c.bf16 %v4245_v63, %v4244_v36 }
 0x1fe   : > { %v4264_v62 = vpack.c.bf16 %v4235_v25, %v4234_v27 }
 0x202   : > { %6337 = vmatmul.mubr.bf16.gmra.mxu1 %v7896_v59 }
 0x203   : > { %6340 = vmatprep.mubr.bf16.mxu1 %v7902_v44 }
 0x204   : > { %6293 = vmatmul.mubr.bf16.gmra.mxu0 %v8016_v34 }
 0x205   : > { %6360 = vmatprep.mubr.bf16.mxu0 %v4262_v7 }
 0x20a   : > { %6341 = vmatmul.mubr.bf16.gmra.mxu1 %v8021_v61  ;;  %v6074_v59 = vpop.f32.mrf.mxu0 }
 0x20b   : > { %6408 = vmatprep.mubr.bf16.mxu1 %v7909_v6  ;;  %v6622_v6 = vld [vmem:[%s8679_s3 + $0x220] sm:$0xff]  }
 0x20c   : > { %6361 = vmatmul.mubr.bf16.vlgmr.msra.gmra.mxu0 %v4263_v30  ;;  %v2670_v44 = vpop.f32.mrf.mxu0  ;;  %v4270_v30 = vpack.c.bf16 %v4247_v55, %v4246_v22 }
 0x20d   : > { %6441 = vmatpush3.bf16.msra.mxu0 %v6619_v24  ;;  %6364 = vmatprep.mubr.bf16.mxu0 %v4264_v62 }
 0x20e   : > { %6442 = vmatprep.subr.bf16.mxu0 %v6620_v4  ;;  %v6075_v48 = vpop.f32.mrf.mxu0 }
 0x210   : > { %v2673_v58 = vpop.f32.mrf.mxu0 }
 0x211   : > { %6443 = vmatpush3.bf16.msra.mxu0 %v6620_v4  ;;  %v6626_v4 = vld [vmem:[%s8679_s3 + $0x200] sm:$0xff]  }
 0x212   : > { %6444 = vmatprep.subr.bf16.mxu0 %v6621_v42  ;;  %v6122_v1 = vpop.f32.mrf.mxu1  ;;  %6409 = vmatmul.mubr.bf16.vlgmr.msra.gmra.mxu1 %v7916_v3  ;;  %v6078_v17 = vpop.f32.mrf.mxu0 }
 0x213   : > { %v8035_v53 = vadd.f32 %v6122_v1, %v6074_v59  ;;  %6412 = vmatprep.mubr.bf16.mxu1 %v7923_v38  ;;  %v4251_v1 = vld [vmem:[#allocation2 + $0xd7] sm:$0xff] }
 0x214   : > { %6365 = vmatmul.mubr.bf16.gmra.mxu0 %v4265_v40  ;;  %v2879_v19 = vpop.f32.mrf.mxu1  ;;  %v2686_v37 = vpop.f32.mrf.mxu0 }
 0x215   : > { %6368 = vmatprep.mubr.bf16.mxu0 %v4266_v10  ;;  %6445 = vmatpush3.bf16.msra.mxu0 %v6621_v42  ;;  %v8038_v49 = vadd.f32 %v2879_v19, %v2670_v44 }
 0x216   : > { %6446 = vmatprep.subr.bf16.mxu0 %v6622_v6  ;;  %v6123_v39 = vpop.f32.mrf.mxu1  ;;  %v6079_v3 = vpop.f32.mrf.mxu0 }
 0x217   : > { %v8043_v15 = vadd.f32 %v6123_v39, %v6075_v48  ;;  %v4249_v48 = vld [vmem:[#allocation2 + $0xc7] sm:$0xff] }
 0x218   : > { %v2882_v12 = vpop.f32.mrf.mxu1  ;;  %v2689_v38 = vpop.f32.mrf.mxu0 }
 0x219   : > { %6447 = vmatpush3.bf16.msra.mxu0 %v6622_v6  ;;  %v8045_v2 = vadd.f32 %v2882_v12, %v2673_v58  ;;  %v4250_v58 = vld [vmem:[#allocation2 + $0xcf] sm:$0xff] }
 0x21a   : > { %6448 = vmatprep.subr.bf16.mxu0 %v6623_v57  ;;  %v6126_v24 = vpop.f32.mrf.mxu1  ;;  %6413 = vmatmul.mubr.bf16.gmra.mxu1 %v7925_v11 }
 0x21b   : > { %v8051_v13 = vadd.f32 %v6126_v24, %v6078_v17  ;;  %6416 = vmatprep.mubr.bf16.mxu1 %v7943_v14  ;;  %v4272_v17 = vpack.c.bf16 %v4251_v1, %v4250_v58 }
 0x21c   : > { %v6082_v16 = vpop.f32.mrf.mxu0  ;;  %6369 = vmatmul.mubr.bf16.gmra.mxu0 %v4267_v26  ;;  %v2895_v43 = vpop.f32.mrf.mxu1  ;;  %v4254_v26 = vld [vmem:[#allocation2 + $0xef] sm:$0xff] }
 0x21d   : > { %6372 = vmatprep.mubr.bf16.mxu0 %v4268_v20  ;;  %6449 = vmatpush3.bf16.msra.mxu0 %v6623_v57  ;;  %v8054_v51 = vadd.f32 %v2895_v43, %v2686_v37  ;;  %v4252_v20 = vld [vmem:[#allocation2 + $0xdf] sm:$0xff]  ;;  %v4255_v43 = vld [vmem:[#allocation2 + $0xf7] sm:$0xff] }
 0x21e   : > { %v2702_v54 = vpop.f32.mrf.mxu0  ;;  %6450 = vmatprep.subr.bf16.mxu0 %v6624_v35  ;;  %v6127_v50 = vpop.f32.mrf.mxu1 }
 0x21f   : > { %v8059_v7 = vadd.f32 %v6127_v50, %v6079_v3 }
 0x220   : > { %v6083_v11 = vpop.f32.mrf.mxu0  ;;  %v2898_v21 = vpop.f32.mrf.mxu1 }
 0x221   : > { %6451 = vmatpush3.bf16.msra.mxu0 %v6624_v35  ;;  %v8061_v27 = vadd.f32 %v2898_v21, %v2689_v38  ;;  %v4577_v35 = vpack.c.bf16 %v4555_v23, %v7983_v47  ;;  %v4559_v47 = vld [vmem:[#allocation2 + $0xe8] sm:$0xff] }
 0x222   : > { %v2705_v14 = vpop.f32.mrf.mxu0  ;;  %6452 = vmatprep.subr.bf16.mxu0 %v6625_v45  ;;  %v6130_v25 = vpop.f32.mrf.mxu1  ;;  %6417 = vmatmul.mubr.bf16.gmra.mxu1 %v7945_v9  ;;  %v4248_v9 = vld [vmem:[#allocation2 + $0xbf] sm:$0xff]  ;;  %v4257_v21 = vld [vmem:[#allocation2 + $0x107] sm:$0xff] }
 0x223   : > { %v8067_v62 = vadd.f32 %v6130_v25, %v6082_v16  ;;  %6420 = vmatprep.mubr.bf16.mxu1 %v7963_v32  ;;  %v4271_v6 = vpack.c.bf16 %v4249_v48, %v4248_v9  ;;  %v4273_v16 = vpack.c.bf16 %v4253_v60, %v4252_v20  ;;  %v4256_v25 = vld [vmem:[#allocation2 + $0xff] sm:$0xff]  ;;  %v4842_v20 = vld [vmem:[#allocation2 + $0x31] sm:$0xff] }
 0x224   : > { %v6086_v59 = vpop.f32.mrf.mxu0  ;;  %6373 = vmatmul.mubr.bf16.gmra.mxu0 %v4269_v28  ;;  %v2911_v44 = vpop.f32.mrf.mxu1  ;;  %v4561_v28 = vld [vmem:[#allocation2 + $0xf8] sm:$0xff]  ;;  %v4275_v48 = vpack.c.bf16 %v4257_v21, %v4256_v25  ;;  %v4562_v60 = vld [vmem:[#allocation2 + $0x100] sm:$0xff] }
 0x225   : > { %6376 = vmatprep.mubr.bf16.mxu0 %v4270_v30  ;;  %6453 = vmatpush3.bf16.msra.mxu0 %v6625_v45  ;;  %v8070_v41 = vadd.f32 %v2911_v44, %v2702_v54  ;;  %v4274_v54 = vpack.c.bf16 %v4255_v43, %v4254_v26  ;;  %v4847_v21 = vld [vmem:[#allocation2 + $0x59] sm:$0xff]  ;;  %v4846_v25 = vld [vmem:[#allocation2 + $0x51] sm:$0xff] }
 0x226   : > { %v2718_v42 = vpop.f32.mrf.mxu0  ;;  %6454 = vmatprep.subr.bf16.mxu0 %v6626_v4  ;;  %v6131_v8 = vpop.f32.mrf.mxu1 }
 0x227   : > { %v8072_v40 = vadd.f32 %v6131_v8, %v6083_v11 }
 0x228   : > { %v6087_v5 = vpop.f32.mrf.mxu0  ;;  %v2914_v56 = vpop.f32.mrf.mxu1 }
 0x229   : > { %6455 = vmatpush3.bf16.msra.mxu0 %v6626_v4  ;;  %v8074_v32 = vadd.f32 %v2914_v56, %v2705_v14  ;;  %v4558_v4 = vld [vmem:[#allocation2 + $0xe0] sm:$0xff] }
 0x22a   : > { %v2721_v10 = vpop.f32.mrf.mxu0  ;;  %v6134_v19 = vpop.f32.mrf.mxu1  ;;  %6421 = vmatmul.mubr.bf16.gmra.mxu1 %v7965_v33  ;;  %v4579_v44 = vpack.c.bf16 %v4559_v47, %v4558_v4  ;;  %v4260_v56 = vld [vmem:[#allocation2 + $0x11f] sm:$0xff] }
 0x22b   : > { %v8077_v52 = vadd.f32 %v6134_v19, %v6086_v59  ;;  %6424 = vmatprep.mubr.bf16.mxu1 %v7985_v0  ;;  %v4563_v19 = vld [vmem:[#allocation2 + $0x108] sm:$0xff] }
 0x22c   : > { %v6090_v37 = vpop.f32.mrf.mxu0  ;;  %6377 = vmatmul.mubr.bf16.gmra.mxu0 %v4271_v6  ;;  %v2927_v57 = vpop.f32.mrf.mxu1 }
 0x22d   : > { %6380 = vmatprep.mubr.bf16.mxu0 %v4272_v17  ;;  %v8080_v3 = vadd.f32 %v2927_v57, %v2718_v42 }
 0x22e   : > { %v2734_v39 = vpop.f32.mrf.mxu0  ;;  %v6135_v12 = vpop.f32.mrf.mxu1 }
 0x22f   : > { %v8082_v29 = vadd.f32 %v6135_v12, %v6087_v5 }
 0x230   : > { %v6091_v38 = vpop.f32.mrf.mxu0  ;;  %v2930_v33 = vpop.f32.mrf.mxu1 }
 0x231   : > { %v8085_v0 = vadd.f32 %v2930_v33, %v2721_v10  ;;  %v4261_v10 = vld [vmem:[#allocation2 + $0x127] sm:$0xff] }
 0x232   : > { %v2737_v24 = vpop.f32.mrf.mxu0  ;;  %v6138_v63 = vpop.f32.mrf.mxu1  ;;  %6425 = vmatmul.mubr.bf16.gmra.mxu1 %v4577_v35 }
 0x233   : > { %v8087_v50 = vadd.f32 %v6138_v63, %v6090_v37  ;;  %6428 = vmatprep.mubr.bf16.mxu1 %v7997_v46  ;;  %v4580_v46 = vpack.c.bf16 %v4561_v28, %v8005_v31  ;;  %v4843_v31 = vld [vmem:[#allocation2 + $0x39] sm:$0xff] }
 0x234   : > { %v6094_v45 = vpop.f32.mrf.mxu0  ;;  %6381 = vmatmul.mubr.bf16.gmra.mxu0 %v4273_v16  ;;  %v2943_v11 = vpop.f32.mrf.mxu1 }
 0x235   : > { %6384 = vmatprep.mubr.bf16.mxu0 %v4274_v54  ;;  %v8090_v36 = vadd.f32 %v2943_v11, %v2734_v39  ;;  %v4277_v39 = vpack.c.bf16 %v4261_v10, %v4260_v56  ;;  %v4845_v11 = vld [vmem:[#allocation2 + $0x49] sm:$0xff] }
 0x236   : > { %v2750_v22 = vpop.f32.mrf.mxu0  ;;  %v6139_v14 = vpop.f32.mrf.mxu1 }
 0x237   : > { %v8092_v30 = vadd.f32 %v6139_v14, %v6091_v38  ;;  %v4581_v38 = vpack.c.bf16 %v4563_v19, %v4562_v60  ;;  %v4849_v19 = vld [vmem:[#allocation2 + $0x69] sm:$0xff] }
 0x238   : > { %v6095_v55 = vpop.f32.mrf.mxu0  ;;  %v2946_v59 = vpop.f32.mrf.mxu1 }
 0x239   : > { %v8094_v8 = vadd.f32 %v2946_v59, %v2737_v24 }
 0x23a   : > { %v2753_v42 = vpop.f32.mrf.mxu0  ;;  %v6142_v5 = vpop.f32.mrf.mxu1  ;;  %6429 = vmatmul.mubr.bf16.gmra.mxu1 %v4579_v44  ;;  %v4876_v44 = vpack.c.bf16 %v4847_v21, %v4846_v25 }
 0x23b   : > { %v8097_v9 = vadd.f32 %v6142_v5, %v6094_v45  ;;  %6432 = vmatprep.mubr.bf16.mxu1 %v4580_v46  ;;  %v4844_v45 = vld [vmem:[#allocation2 + $0x41] sm:$0xff] }
 0x23c   : > { %v6098_v58 = vpop.f32.mrf.mxu0  ;;  %6385 = vmatmul.mubr.bf16.gmra.mxu0 %v4275_v48  ;;  %v2959_v6 = vpop.f32.mrf.mxu1  ;;  %v4875_v4 = vpack.c.bf16 %v4845_v11, %v4844_v45 }
 0x23d   : > { %6388 = vmatprep.mubr.bf16.mxu0 %v7907_v18  ;;  %v8100_v17 = vadd.f32 %v2959_v6, %v2750_v22  ;;  %v4874_v18 = vpack.c.bf16 %v4843_v31, %v4842_v20 }
 0x23e   : > { %v2766_v1 = vpop.f32.mrf.mxu0  ;;  %v6143_v37 = vpop.f32.mrf.mxu1 }
 0x23f   : > { %v8102_v23 = vadd.f32 %v6143_v37, %v6095_v55 }
 0x240   : > { %v6099_v57 = vpop.f32.mrf.mxu0  ;;  %v2962_v12 = vpop.f32.mrf.mxu1 }
 0x241   : > { %v8104_v33 = vadd.f32 %v2962_v12, %v2753_v42 }
 0x242   : > { %v2769_v26 = vpop.f32.mrf.mxu0  ;;  %v6146_v35 = vpop.f32.mrf.mxu1  ;;  %6433 = vmatmul.mubr.bf16.gmra.mxu1 %v4581_v38 }
 0x243   : > { %v8106_v16 = vadd.f32 %v6146_v35, %v6098_v58  ;;  %6436 = vmatprep.mubr.bf16.mxu1 %v8016_v34 }
 0x244   : > { %v6102_v24 = vpop.f32.mrf.mxu0  ;;  %6389 = vmatmul.mubr.bf16.gmra.mxu0 %v4277_v39  ;;  %v2975_v43 = vpop.f32.mrf.mxu1  ;;  %v4851_v39 = vld [vmem:[#allocation2 + $0x79] sm:$0xff] }
 0x245   : > { %6456 = vmatprep.mubr.bf16.mxu0 %v4874_v18  ;;  %v8109_v63 = vadd.f32 %v2975_v43, %v2766_v1  ;;  %v4848_v1 = vld [vmem:[#allocation2 + $0x61] sm:$0xff] }
 0x246   : > { %v2782_v54 = vpop.f32.mrf.mxu0  ;;  %v6147_v22 = vpop.f32.mrf.mxu1  ;;  %v4877_v38 = vpack.c.bf16 %v4849_v19, %v4848_v1 }
 0x247   : > { %v8111_v14 = vadd.f32 %v6147_v22, %v6099_v57  ;;  %v4852_v22 = vld [vmem:[#allocation2 + $0x81] sm:$0xff] }
 0x248   : > { %v6103_v47 = vpop.f32.mrf.mxu0  ;;  %v2978_v28 = vpop.f32.mrf.mxu1 }
 0x249   : > { %v8113_v59 = vadd.f32 %v2978_v28, %v2769_v26 }
 0x24a   : > { %v2785_v55 = vpop.f32.mrf.mxu0  ;;  %v6150_v42 = vpop.f32.mrf.mxu1  ;;  %6437 = vmatmul.mubr.bf16.gmra.mxu1 %v8016_v34 }
 0x24b   : > { %v8116_v46 = vadd.f32 %v6150_v42, %v6102_v24 }
 0x24c   : > { %v6170_v48 = vpop.f32.mrf.mxu0  ;;  %6457 = vmatmul.mubr.bf16.vlgmr.msra.gmra.mxu0 %v4875_v4  ;;  %v2991_v58 = vpop.f32.mrf.mxu1 }
 0x24d   : > { %v3282_v5 = vadd.f32 %v6170_v48, %v8035_v53  ;;  %6460 = vmatprep.mubr.bf16.mxu0 %v4876_v44  ;;  %v8119_v10 = vadd.f32 %v2991_v58, %v2782_v54  ;;  %v4850_v53 = vld [vmem:[#allocation2 + $0x71] sm:$0xff] }
 0x24e   : > { %v3153_v56 = vpop.f32.mrf.mxu0  ;;  %v6151_v37 = vpop.f32.mrf.mxu1  ;;  %v4878_v18 = vpack.c.bf16 %v4851_v39, %v4850_v53  ;;  %v4856_v39 = vld [vmem:[#allocation2 + $0xa1] sm:$0xff] }
 0x24f   : > { %v3280_v6 = vadd.f32 %v3153_v56, %v8038_v49  ;;  %v8122_v31 = vadd.f32 %v6151_v37, %v6103_v47  ;;  %v4853_v47 = vld [vmem:[#allocation2 + $0x89] sm:$0xff] }
 0x250   : > { %v6171_v57 = vpop.f32.mrf.mxu0  ;;  %v2994_v60 = vpop.f32.mrf.mxu1  ;;  %v4879_v42 = vpack.c.bf16 %v4853_v47, %v4852_v22 }
 0x251   : > { %v3283_v34 = vadd.f32 %v6171_v57, %v8043_v15  ;;  %v8125_v26 = vadd.f32 %v2994_v60, %v2785_v55 }
 0x252   : > { %v3156_v12 = vpop.f32.mrf.mxu0  ;;  %v6218_v35 = vpop.f32.mrf.mxu1 }
 0x253   : > { %v3281_v20 = vadd.f32 %v3156_v12, %v8045_v2  ;;  %v8128_v24 = vadd.f32 %v6218_v35, %v3282_v5  ;;  %v4855_v2 = vld [vmem:[#allocation2 + $0x99] sm:$0xff] }
 0x254   : > { %v6174_v49 = vpop.f32.mrf.mxu0  ;;  %6461 = vmatmul.mubr.bf16.gmra.mxu0 %v4877_v38  ;;  %v3459_v54 = vpop.f32.mrf.mxu1 }
 0x255   : > { %v3286_v43 = vadd.f32 %v6174_v49, %v8051_v13  ;;  %6464 = vmatprep.mubr.bf16.mxu0 %v4878_v18  ;;  %v8131_v15 = vadd.f32 %v3459_v54, %v3280_v6  ;;  %v4854_v13 = vld [vmem:[#allocation2 + $0x91] sm:$0xff] }
 0x256   : > { %v3169_v45 = vpop.f32.mrf.mxu0  ;;  %v6219_v21 = vpop.f32.mrf.mxu1  ;;  %v4880_v58 = vpack.c.bf16 %v4855_v2, %v4854_v13  ;;  %v4860_v2 = vld [vmem:[#allocation2 + $0xc1] sm:$0xff] }
 0x257   : > { %v3284_v11 = vadd.f32 %v3169_v45, %v8054_v51  ;;  %v8134_v55 = vadd.f32 %v6219_v21, %v3283_v34  ;;  %v4857_v34 = vld [vmem:[#allocation2 + $0xa9] sm:$0xff] }
 0x258   : > { %v6175_v28 = vpop.f32.mrf.mxu0  ;;  %v3462_v25 = vpop.f32.mrf.mxu1  ;;  %v4881_v35 = vpack.c.bf16 %v4857_v34, %v4856_v39 }
 0x259   : > { %v3287_v4 = vadd.f32 %v6175_v28, %v8059_v7  ;;  %v8137_v48 = vadd.f32 %v3462_v25, %v3281_v20 }
 0x25a   : > { %v3172_v44 = vpop.f32.mrf.mxu0  ;;  %v6222_v56 = vpop.f32.mrf.mxu1 }
 0x25b   : > { %v3285_v5 = vadd.f32 %v3172_v44, %v8061_v27  ;;  %v8140_v6 = vadd.f32 %v6222_v56, %v3286_v43  ;;  %v4859_v27 = vld [vmem:[#allocation2 + $0xb9] sm:$0xff] }
 0x25c   : > { %v6178_v51 = vpop.f32.mrf.mxu0  ;;  %6465 = vmatmul.mubr.bf16.gmra.mxu0 %v4879_v42  ;;  %v3475_v19 = vpop.f32.mrf.mxu1 }
 0x25d   : > { %v3290_v1 = vadd.f32 %v6178_v51, %v8067_v62  ;;  %6468 = vmatprep.mubr.bf16.mxu0 %v4880_v58  ;;  %v8143_v7 = vadd.f32 %v3475_v19, %v3284_v11  ;;  %v4858_v62 = vld [vmem:[#allocation2 + $0xb1] sm:$0xff] }
 0x25e   : > { %v3185_v37 = vpop.f32.mrf.mxu0  ;;  %v6223_v60 = vpop.f32.mrf.mxu1  ;;  %v4882_v54 = vpack.c.bf16 %v4859_v27, %v4858_v62  ;;  %v4864_v27 = vld [vmem:[#allocation2 + $0xe1] sm:$0xff] }
 0x25f   : > { %v3288_v57 = vadd.f32 %v3185_v37, %v8070_v41  ;;  %v8146_v38 = vadd.f32 %v6223_v60, %v3287_v4  ;;  %v4861_v4 = vld [vmem:[#allocation2 + $0xc9] sm:$0xff] }
 0x260   : > { %v6179_v12 = vpop.f32.mrf.mxu0  ;;  %v3478_v20 = vpop.f32.mrf.mxu1  ;;  %v4883_v56 = vpack.c.bf16 %v4861_v4, %v4860_v2 }
 0x261   : > { %v3291_v53 = vadd.f32 %v6179_v12, %v8072_v40  ;;  %v8149_v49 = vadd.f32 %v3478_v20, %v3285_v5 }
 0x262   : > { %v3188_v18 = vpop.f32.mrf.mxu0  ;;  %v6226_v45 = vpop.f32.mrf.mxu1 }
 0x263   : > { %v3289_v43 = vadd.f32 %v3188_v18, %v8074_v32  ;;  %v8152_v11 = vadd.f32 %v6226_v45, %v3290_v1  ;;  %v4863_v32 = vld [vmem:[#allocation2 + $0xd9] sm:$0xff] }
 0x264   : > { %v6182_v41 = vpop.f32.mrf.mxu0  ;;  %6469 = vmatmul.mubr.bf16.gmra.mxu0 %v4881_v35  ;;  %v3491_v47 = vpop.f32.mrf.mxu1 }
 0x265   : > { %v3294_v22 = vadd.f32 %v6182_v41, %v8077_v52  ;;  %6472 = vmatprep.mubr.bf16.mxu0 %v4882_v54  ;;  %v8155_v40 = vadd.f32 %v3491_v47, %v3288_v57  ;;  %v4862_v52 = vld [vmem:[#allocation2 + $0xd1] sm:$0xff] }
 0x266   : > { %v3201_v21 = vpop.f32.mrf.mxu0  ;;  %v6227_v25 = vpop.f32.mrf.mxu1  ;;  %v4884_v19 = vpack.c.bf16 %v4863_v32, %v4862_v52  ;;  %v4868_v32 = vld [vmem:[#allocation2 + $0x101] sm:$0xff] }
 0x267   : > { %v3292_v28 = vadd.f32 %v3201_v21, %v8080_v3  ;;  %v8158_v42 = vadd.f32 %v6227_v25, %v3291_v53  ;;  %v4865_v53 = vld [vmem:[#allocation2 + $0xe9] sm:$0xff] }
 0x268   : > { %v6183_v44 = vpop.f32.mrf.mxu0  ;;  %v3494_v5 = vpop.f32.mrf.mxu1  ;;  %v4885_v45 = vpack.c.bf16 %v4865_v53, %v4864_v27 }
 0x269   : > { %v3295_v13 = vadd.f32 %v6183_v44, %v8082_v29  ;;  %v8161_v51 = vadd.f32 %v3494_v5, %v3289_v43 }
 0x26a   : > { %v3204_v58 = vpop.f32.mrf.mxu0  ;;  %v6230_v37 = vpop.f32.mrf.mxu1 }
 0x26b   : > { %v3293_v1 = vadd.f32 %v3204_v58, %v8085_v0  ;;  %v8164_v57 = vadd.f32 %v6230_v37, %v3294_v22  ;;  %v4867_v0 = vld [vmem:[#allocation2 + $0xf9] sm:$0xff] }
 0x26c   : > { %v6186_v3 = vpop.f32.mrf.mxu0  ;;  %6473 = vmatmul.mubr.bf16.gmra.mxu0 %v4883_v56  ;;  %v3507_v34 = vpop.f32.mrf.mxu1 }
 0x26d   : > { %v3298_v39 = vadd.f32 %v6186_v3, %v8087_v50  ;;  %6476 = vmatprep.mubr.bf16.mxu0 %v4884_v19  ;;  %v8167_v29 = vadd.f32 %v3507_v34, %v3292_v28  ;;  %v4866_v50 = vld [vmem:[#allocation2 + $0xf1] sm:$0xff] }
 0x26e   : > { %v3217_v60 = vpop.f32.mrf.mxu0  ;;  %v6231_v20 = vpop.f32.mrf.mxu1  ;;  %v4886_v47 = vpack.c.bf16 %v4867_v0, %v4866_v50 }
 0x26f   : > { %v3296_v12 = vadd.f32 %v3217_v60, %v8090_v36  ;;  %v8170_v35 = vadd.f32 %v6231_v20, %v3295_v13  ;;  %v4869_v13 = vld [vmem:[#allocation2 + $0x109] sm:$0xff]  ;;  %v4872_v60 = vld [vmem:[#allocation2 + $0x121] sm:$0xff] }
 0x270   : > { %v6187_v18 = vpop.f32.mrf.mxu0  ;;  %v3510_v43 = vpop.f32.mrf.mxu1  ;;  %v4887_v19 = vpack.c.bf16 %v4869_v13, %v4868_v32 }
 0x271   : > { %v3299_v62 = vadd.f32 %v6187_v18, %v8092_v30  ;;  %v8173_v41 = vadd.f32 %v3510_v43, %v3293_v1 }
 0x272   : > { %v3220_v54 = vpop.f32.mrf.mxu0  ;;  %v6234_v21 = vpop.f32.mrf.mxu1 }
 0x273   : > { %v3297_v22 = vadd.f32 %v3220_v54, %v8094_v8  ;;  %v8176_v28 = vadd.f32 %v6234_v21, %v3298_v39 }
 0x274   : > { %v6190_v36 = vpop.f32.mrf.mxu0  ;;  %6477 = vmatmul.mubr.bf16.gmra.mxu0 %v4885_v45  ;;  %v3523_v4 = vpop.f32.mrf.mxu1 }
 0x275   : > { %v3302_v2 = vadd.f32 %v6190_v36, %v8097_v9  ;;  %6480 = vmatprep.mubr.bf16.mxu0 %v4886_v47  ;;  %v8179_v30 = vadd.f32 %v3523_v4, %v3296_v12  ;;  %v4873_v12 = vld [vmem:[#allocation2 + $0x129] sm:$0xff] }
 0x276   : > { %v3233_v25 = vpop.f32.mrf.mxu0  ;;  %v6235_v5 = vpop.f32.mrf.mxu1 }
 0x277   : > { %v3300_v44 = vadd.f32 %v3233_v25, %v8100_v17  ;;  %v8182_v8 = vadd.f32 %v6235_v5, %v3299_v62 }
 0x278   : > { %v6191_v58 = vpop.f32.mrf.mxu0  ;;  %v3526_v52 = vpop.f32.mrf.mxu1 }
 0x279   : > { %v3303_v56 = vadd.f32 %v6191_v58, %v8102_v23  ;;  %v8185_v37 = vadd.f32 %v3526_v52, %v3297_v22 }
 0x27a   : > { %v3236_v1 = vpop.f32.mrf.mxu0  ;;  %v6238_v3 = vpop.f32.mrf.mxu1 }
 0x27b   : > { %v3301_v9 = vadd.f32 %v3236_v1, %v8104_v33  ;;  %v8188_v34 = vadd.f32 %v6238_v3, %v3302_v2  ;;  %v4889_v33 = vpack.c.bf16 %v4873_v12, %v4872_v60 }
 0x27c   : > { %v6194_v39 = vpop.f32.mrf.mxu0  ;;  %6481 = vmatmul.mubr.bf16.gmra.mxu0 %v4887_v19  ;;  %v3539_v27 = vpop.f32.mrf.mxu1 }
 0x27d   : > { %v3306_v17 = vadd.f32 %v6194_v39, %v8106_v16  ;;  %6484 = vmatprep.mubr.bf16.mxu0 %v8021_v61  ;;  %v8192_v53 = vadd.f32 %v3539_v27, %v3300_v44 }
 0x27e   : > { %v3249_v23 = vpop.f32.mrf.mxu0  ;;  %v6239_v18 = vpop.f32.mrf.mxu1 }
 0x27f   : > { %v3304_v20 = vadd.f32 %v3249_v23, %v8109_v63  ;;  %v8195_v62 = vadd.f32 %v6239_v18, %v3303_v56 }
 0x280   : > { %v6195_v0 = vpop.f32.mrf.mxu0  ;;  %v3542_v54 = vpop.f32.mrf.mxu1 }
 0x281   : > { %v3307_v43 = vadd.f32 %v6195_v0, %v8111_v14  ;;  %v8198_v16 = vadd.f32 %v3542_v54, %v3301_v9 }
 0x282   : > { %v3252_v45 = vpop.f32.mrf.mxu0  ;;  %v6242_v50 = vpop.f32.mrf.mxu1 }
 0x283   : > { %v3305_v61 = vadd.f32 %v3252_v45, %v8113_v59  ;;  %v8201_v47 = vadd.f32 %v6242_v50, %v3306_v17 }
 0x284   : > { %v6198_v22 = vpop.f32.mrf.mxu0  ;;  %6485 = vmatmul.mubr.bf16.gmra.mxu0 %v4889_v33  ;;  %v3555_v21 = vpop.f32.mrf.mxu1 }
 0x285   : > { %v3310_v63 = vadd.f32 %v6198_v22, %v8116_v46  ;;  %v8204_v2 = vadd.f32 %v3555_v21, %v3304_v20 }
 0x286   : > { %v3265_v36 = vpop.f32.mrf.mxu0  ;;  %v6243_v14 = vpop.f32.mrf.mxu1 }
 0x287   : > { %v3308_v4 = vadd.f32 %v3265_v36, %v8119_v10  ;;  %v8207_v44 = vadd.f32 %v6243_v14, %v3307_v43 }
 0x288   : > { %v6199_v25 = vpop.f32.mrf.mxu0  ;;  %v3558_v59 = vpop.f32.mrf.mxu1 }
 0x289   : > { %v3311_v32 = vadd.f32 %v6199_v25, %v8122_v31  ;;  %v8210_v5 = vadd.f32 %v3558_v59, %v3305_v61 }
 0x28a   : > { %v3268_v13 = vpop.f32.mrf.mxu0  ;;  %v6246_v56 = vpop.f32.mrf.mxu1 }
 0x28b   : > { %v3309_v58 = vadd.f32 %v3268_v13, %v8125_v26  ;;  %v8213_v52 = vadd.f32 %v6246_v56, %v3310_v63 }
 0x28c   : > { %v6266_v46 = vpop.f32.mrf.mxu0  ;;  %v3571_v10 = vpop.f32.mrf.mxu1 }
 0x28d   : > { %v8216_v1 = vadd.f32 %v6266_v46, %v8128_v24  ;;  %v8218_v9 = vadd.f32 %v3571_v10, %v3308_v4 }
 0x28e   : > { %v3765_v19 = vpop.f32.mrf.mxu0  ;;  %v6247_v31 = vpop.f32.mrf.mxu1 }
 0x28f   : > { %v8221_v3 = vadd.f32 %v3765_v19, %v8131_v15  ;;  %v8223_v17 = vadd.f32 %v6247_v31, %v3311_v32 }
 0x290   : > { %v6267_v39 = vpop.f32.mrf.mxu0  ;;  %v3574_v60 = vpop.f32.mrf.mxu1 }
 0x291   : > { %v8226_v26 = vadd.f32 %v6267_v39, %v8134_v55  ;;  %v8228_v27 = vadd.f32 %v3574_v60, %v3309_v58 }
 0x292   : > { %v3768_v12 = vpop.f32.mrf.mxu0  ;;  %v8233_v23 = vpop.f32.mrf.mxu1 }
 0x293   : > { %v8231_v24 = vadd.f32 %v3768_v12, %v8137_v48 }
 0x294   : > { %v6270_v20 = vpop.f32.mrf.mxu0  ;;  %v8238_v18 = vpop.f32.mrf.mxu1 }
 0x295   : > { %v8236_v15 = vadd.f32 %v6270_v20, %v8140_v6 }
 0x296   : > { %v3781_v0 = vpop.f32.mrf.mxu0  ;;  %v8243_v55 = vpop.f32.mrf.mxu1 }
 0x297   : > { %v8241_v33 = vadd.f32 %v3781_v0, %v8143_v7 }
 0x298   : > { %v6271_v43 = vpop.f32.mrf.mxu0  ;;  %v8248_v48 = vpop.f32.mrf.mxu1 }
 0x299   : > { %v8246_v54 = vadd.f32 %v6271_v43, %v8146_v38 }
 0x29a   : > { %v3784_v45 = vpop.f32.mrf.mxu0  ;;  %v8253_v6 = vpop.f32.mrf.mxu1 }
 0x29b   : > { %v8251_v61 = vadd.f32 %v3784_v45, %v8149_v49 }
 0x29c   : > { %v6274_v50 = vpop.f32.mrf.mxu0  ;;  %v8258_v7 = vpop.f32.mrf.mxu1 }
 0x29d   : > { %v8256_v22 = vadd.f32 %v6274_v50, %v8152_v11 }
 0x29e   : > { %v3797_v63 = vpop.f32.mrf.mxu0  ;;  %v8263_v38 = vpop.f32.mrf.mxu1 }
 0x29f   : > { %v8261_v21 = vadd.f32 %v3797_v63, %v8155_v40 }
 0x2a0   : > { %v6275_v36 = vpop.f32.mrf.mxu0  ;;  %v8268_v49 = vpop.f32.mrf.mxu1 }
 0x2a1   : > { %v8266_v4 = vadd.f32 %v6275_v36, %v8158_v42 }
 0x2a2   : > { %v3800_v14 = vpop.f32.mrf.mxu0  ;;  %v8273_v11 = vpop.f32.mrf.mxu1 }
 0x2a3   : > { %v8271_v25 = vadd.f32 %v3800_v14, %v8161_v51 }
 0x2a4   : > { %v6278_v32 = vpop.f32.mrf.mxu0  ;;  %v8278_v40 = vpop.f32.mrf.mxu1 }
 0x2a5   : > { %v8276_v59 = vadd.f32 %v6278_v32, %v8164_v57 }
 0x2a6   : > { %v3813_v13 = vpop.f32.mrf.mxu0  ;;  %v8283_v42 = vpop.f32.mrf.mxu1 }
 0x2a7   : > { %v8281_v58 = vadd.f32 %v3813_v13, %v8167_v29 }
 0x2a8   : > { %v6279_v56 = vpop.f32.mrf.mxu0  ;;  %v8288_v51 = vpop.f32.mrf.mxu1 }
 0x2a9   : > { %v8286_v46 = vadd.f32 %v6279_v56, %v8170_v35 }
 0x2aa   : > { %v3816_v10 = vpop.f32.mrf.mxu0  ;;  %v8293_v57 = vpop.f32.mrf.mxu1 }
 0x2ab   : > { %8796 = vst [vmem:[#allocation16_spill] sm:$0xff] %v8286_v46  ;;  %v8291_v19 = vadd.f32 %v3816_v10, %v8173_v41 }
 0x2ac   : > { %v6282_v31 = vpop.f32.mrf.mxu0  ;;  %v8298_v29 = vpop.f32.mrf.mxu1 }
 0x2ad   : > { %8797 = vst [vmem:[#allocation3_spill] sm:$0xff] %v8291_v19  ;;  %v8296_v39 = vadd.f32 %v6282_v31, %v8176_v28 }
 0x2ae   : > { %v3829_v60 = vpop.f32.mrf.mxu0  ;;  %v8303_v35 = vpop.f32.mrf.mxu1 }
 0x2af   : > { %8798 = vst [vmem:[#allocation17_spill] sm:$0xff] %v8296_v39  ;;  %v8301_v12 = vadd.f32 %v3829_v60, %v8179_v30  ;;  %8800 = vst [vmem:[#allocation19_spill] sm:$0xff] %v8303_v35 }
 0x2b0   : > { %v6283_v20 = vpop.f32.mrf.mxu0  ;;  %v8308_v41 = vpop.f32.mrf.mxu1 }
 0x2b1   : > { %8799 = vst [vmem:[#allocation4_spill] sm:$0xff] %v8301_v12  ;;  %v8306_v0 = vadd.f32 %v6283_v20, %v8182_v8  ;;  %8802 = vst [vmem:[#allocation5_spill] sm:$0xff] %v8308_v41 }
 0x2b2   : > { %v3832_v43 = vpop.f32.mrf.mxu0  ;;  %v8313_v28 = vpop.f32.mrf.mxu1 }
 0x2b3   : > { %8801 = vst [vmem:[#allocation18_spill] sm:$0xff] %v8306_v0  ;;  %v8311_v45 = vadd.f32 %v3832_v43, %v8185_v37  ;;  %8804 = vst [vmem:[#allocation20_spill] sm:$0xff] %v8313_v28 }
 0x2b4   : > { %v6286_v50 = vpop.f32.mrf.mxu0  ;;  %v8318_v30 = vpop.f32.mrf.mxu1 }
 0x2b5   : > { %8803 = vst [vmem:[#allocation21_spill] sm:$0xff] %v8311_v45  ;;  %v8316_v63 = vadd.f32 %v6286_v50, %v8188_v34  ;;  %8806 = vst [vmem:[#allocation6_spill] sm:$0xff] %v8318_v30 }
 0x2b6   : > { %v3845_v36 = vpop.f32.mrf.mxu0  ;;  %v8323_v8 = vpop.f32.mrf.mxu1 }
 0x2b7   : > { %8805 = vst [vmem:[#allocation22_spill] sm:$0xff] %v8316_v63  ;;  %v8321_v14 = vadd.f32 %v3845_v36, %v8192_v53  ;;  %8808 = vst [vmem:[#allocation24_spill] sm:$0xff] %v8323_v8 }
 0x2b8   : > { %v6287_v32 = vpop.f32.mrf.mxu0  ;;  %v8328_v37 = vpop.f32.mrf.mxu1 }
 0x2b9   : > { %8807 = vst [vmem:[#allocation23_spill] sm:$0xff] %v8321_v14  ;;  %v8326_v13 = vadd.f32 %v6287_v32, %v8195_v62  ;;  %8810 = vst [vmem:[#allocation25_spill] sm:$0xff] %v8328_v37 }
 0x2ba   : > { %v3848_v56 = vpop.f32.mrf.mxu0  ;;  %v8333_v34 = vpop.f32.mrf.mxu1 }
 0x2bb   : > { %8809 = vst [vmem:[#allocation7_spill] sm:$0xff] %v8326_v13  ;;  %v8331_v10 = vadd.f32 %v3848_v56, %v8198_v16  ;;  %8812 = vst [vmem:[#allocation27_spill] sm:$0xff] %v8333_v34 }
 0x2bc   : > { %v6290_v31 = vpop.f32.mrf.mxu0  ;;  %v8338_v53 = vpop.f32.mrf.mxu1 }
 0x2bd   : > { %8811 = vst [vmem:[#allocation8_spill] sm:$0xff] %v8331_v10  ;;  %v8336_v60 = vadd.f32 %v6290_v31, %v8201_v47  ;;  %8814 = vst [vmem:[#allocation9_spill] sm:$0xff] %v8338_v53 }
 0x2be   : > { %v3861_v20 = vpop.f32.mrf.mxu0  ;;  %v8343_v62 = vpop.f32.mrf.mxu1 }
 0x2bf   : > { %8813 = vst [vmem:[#allocation26_spill] sm:$0xff] %v8336_v60  ;;  %v8341_v43 = vadd.f32 %v3861_v20, %v8204_v2  ;;  %8816 = vst [vmem:[#allocation28_spill] sm:$0xff] %v8343_v62 }
 0x2c0   : > { %v6291_v50 = vpop.f32.mrf.mxu0  ;;  %v8348_v16 = vpop.f32.mrf.mxu1 }
 0x2c1   : > { %8815 = vst [vmem:[#allocation29_spill] sm:$0xff] %v8341_v43  ;;  %v8346_v36 = vadd.f32 %v6291_v50, %v8207_v44  ;;  %8818 = vst [vmem:[#allocation10_spill] sm:$0xff] %v8348_v16 }
 0x2c2   : > { %v3864_v32 = vpop.f32.mrf.mxu0  ;;  %v8353_v47 = vpop.f32.mrf.mxu1 }
 0x2c3   : > { %8817 = vst [vmem:[#allocation30_spill] sm:$0xff] %v8346_v36  ;;  %v8351_v56 = vadd.f32 %v3864_v32, %v8210_v5  ;;  %8820 = vst [vmem:[#allocation32_spill] sm:$0xff] %v8353_v47 }
 0x2c4   : > { %v6294_v31 = vpop.f32.mrf.mxu0  ;;  %v8358_v2 = vpop.f32.mrf.mxu1 }
 0x2c5   : > { %8819 = vst [vmem:[#allocation31_spill] sm:$0xff] %v8351_v56  ;;  %v8356_v60 = vadd.f32 %v6294_v31, %v8213_v52  ;;  %8822 = vst [vmem:[#allocation33_spill] sm:$0xff] %v8358_v2 }
 0x2c6   : > { %v3877_v20 = vpop.f32.mrf.mxu0  ;;  %v8363_v44 = vpop.f32.mrf.mxu1 }
 0x2c7   : > { %8821 = vst [vmem:[#allocation11_spill] sm:$0xff] %v8356_v60  ;;  %v8361_v43 = vadd.f32 %v3877_v20, %v8218_v9  ;;  %8824 = vst [vmem:[#allocation35_spill] sm:$0xff] %v8363_v44 }
 0x2c8   : > { %v6295_v50 = vpop.f32.mrf.mxu0  ;;  %v8368_v5 = vpop.f32.mrf.mxu1 }
 0x2c9   : > { %8823 = vst [vmem:[#allocation12_spill] sm:$0xff] %v8361_v43  ;;  %v8366_v36 = vadd.f32 %v6295_v50, %v8223_v17  ;;  %8826 = vst [vmem:[#allocation13_spill] sm:$0xff] %v8368_v5 }
 0x2ca   : > { %v3880_v32 = vpop.f32.mrf.mxu0  ;;  %v8373_v52 = vpop.f32.mrf.mxu1 }
 0x2cb   : > { %8825 = vst [vmem:[#allocation34_spill] sm:$0xff] %v8366_v36  ;;  %v8371_v56 = vadd.f32 %v3880_v32, %v8228_v27  ;;  %8828 = vst [vmem:[#allocation37_spill] sm:$0xff] %v8373_v52 }
 0x2cc   : > { %v6362_v31 = vpop.f32.mrf.mxu0  ;;  %v8375_v60 = vpop.f32.mrf.mxu1 }
 0x2cd   : > { %8827 = vst [vmem:[#allocation36_spill] sm:$0xff] %v8371_v56  ;;  %8829 = vst [vmem:[#allocation38_spill] sm:$0xff] %v8375_v60 }
 0x2ce   : > { %v4377_v2 = vpop.f32.mrf.mxu0  ;;  %v8377_v9 = vpop.f32.mrf.mxu1 }
 0x2cf   : > { %8830 = vst [vmem:[#allocation14_spill] sm:$0xff] %v8377_v9 }
 0x2d0   : > { %v6363_v20 = vpop.f32.mrf.mxu0  ;;  %v8379_v43 = vpop.f32.mrf.mxu1 }
 0x2d1   : > { %8831 = vst [vmem:[#allocation39_spill] sm:$0xff] %v8379_v43 }
 0x2d2   : > { %v8381_v44 = vpop.f32.mrf.mxu0  ;;  %v6410_v17 = vpop.f32.mrf.mxu1 }
 0x2d4   : > { %v8383_v50 = vpop.f32.mrf.mxu0  ;;  %v4683_v36 = vpop.f32.mrf.mxu1 }
 0x2d6   : > { %v8385_v5 = vpop.f32.mrf.mxu0  ;;  %v6411_v27 = vpop.f32.mrf.mxu1 }
 0x2d8   : > { %v8387_v32 = vpop.f32.mrf.mxu0  ;;  %v8389_v56 = vpop.f32.mrf.mxu1 }
 0x2da   : > { %v8391_v60 = vpop.f32.mrf.mxu0  ;;  %v8393_v52 = vpop.f32.mrf.mxu1 }
 0x2dc   : > { %v8395_v9 = vpop.f32.mrf.mxu0  ;;  %v8397_v43 = vpop.f32.mrf.mxu1 }
 0x2de   : > { %v8399_v47 = vpop.f32.mrf.mxu0  ;;  %v8403_v10 = vpop.f32.mrf.mxu1 }
 0x2e0   : > { %v8401_v16 = vpop.f32.mrf.mxu0  ;;  %v8409_v53 = vpop.f32.mrf.mxu1 }
 0x2e2   : > { %v8405_v62 = vpop.f32.mrf.mxu0  ;;  %v8415_v63 = vpop.f32.mrf.mxu1 }
 0x2e4   : > { %v8407_v13 = vpop.f32.mrf.mxu0  ;;  %v8421_v8 = vpop.f32.mrf.mxu1 }
 0x2e6   : > { %v8411_v14 = vpop.f32.mrf.mxu0  ;;  %v8427_v12 = vpop.f32.mrf.mxu1 }
 0x2e7   : > { %8832 = vst [vmem:[#allocation40_spill] sm:$0xff] %v8411_v14 }
 0x2e8   : > { %v8413_v34 = vpop.f32.mrf.mxu0  ;;  %v8433_v41 = vpop.f32.mrf.mxu1 }
 0x2e9   : > { %8833 = vst [vmem:[#allocation15_spill] sm:$0xff] %v8413_v34 }
 0x2ea   : > { %v8417_v37 = vpop.f32.mrf.mxu0 }
 0x2eb   : > { %8834 = vst [vmem:[#allocation41_spill] sm:$0xff] %v8417_v37  ;;  %v8439_v37 = vpop.f32.mrf.mxu1 }
 0x2ec   : > { %v8419_v45 = vpop.f32.mrf.mxu0  ;;  %8842 = vst [vmem:[#allocation49_spill] sm:$0xff] %v8439_v37 }
 0x2ed   : > { %8835 = vst [vmem:[#allocation42_spill] sm:$0xff] %v8419_v45 }
 0x2ee   : > { %v8423_v0 = vpop.f32.mrf.mxu0 }
 0x2ef   : > { %8836 = vst [vmem:[#allocation43_spill] sm:$0xff] %v8423_v0  ;;  %v8445_v0 = vpop.f32.mrf.mxu1 }
 0x2f0   : > { %v8425_v30 = vpop.f32.mrf.mxu0  ;;  %8845 = vst [vmem:[#allocation52_spill] sm:$0xff] %v8445_v0 }
 0x2f1   : > { %8837 = vst [vmem:[#allocation44_spill] sm:$0xff] %v8425_v30 }
 0x2f2   : > { %v8429_v28 = vpop.f32.mrf.mxu0 }
 0x2f3   : > { %8838 = vst [vmem:[#allocation45_spill] sm:$0xff] %v8429_v28  ;;  %v8451_v28 = vpop.f32.mrf.mxu1 }
 0x2f4   : > { %v8431_v39 = vpop.f32.mrf.mxu0  ;;  %8848 = vst [vmem:[#allocation55_spill] sm:$0xff] %v8451_v28 }
 0x2f5   : > { %8839 = vst [vmem:[#allocation46_spill] sm:$0xff] %v8431_v39 }
 0x2f6   : > { %v8435_v34 = vpop.f32.mrf.mxu0 }
 0x2f7   : > { %8840 = vst [vmem:[#allocation47_spill] sm:$0xff] %v8435_v34  ;;  %v8457_v34 = vpop.f32.mrf.mxu1 }
 0x2f8   : > { %v8437_v19 = vpop.f32.mrf.mxu0  ;;  %8851 = vst [vmem:[#allocation58_spill] sm:$0xff] %v8457_v34 }
 0x2f9   : > { %8841 = vst [vmem:[#allocation48_spill] sm:$0xff] %v8437_v19  ;;  %v8467_v0 = vpop.f32.mrf.mxu1 }
 0x2fa   : > { %v8441_v45 = vpop.f32.mrf.mxu0 }
 0x2fb   : > { %8843 = vst [vmem:[#allocation50_spill] sm:$0xff] %v8441_v45 }
 0x2fc   : > { %v8443_v14 = vpop.f32.mrf.mxu0 }
 0x2fd   : > { %8844 = vst [vmem:[#allocation51_spill] sm:$0xff] %v8443_v14  ;;  %v4200_v14 = vadd.f32 %v8233_v23, %v8216_v1  ;;  %v8476_v1 = vld [vmem:[%s8680_s4] ss:$0 sm:$0xff]  ;;  %v4199_v23 = vadd.f32 %v8248_v48, %v8231_v24 }
 0x2fe   : > { %v8447_v30 = vpop.f32.mrf.mxu0 }
 0x2ff   : > { %8846 = vst [vmem:[#allocation53_spill] sm:$0xff] %v8447_v30  ;;  %v4198_v30 = vadd.f32 %v8238_v18, %v8221_v3 }
 0x300   : > { %v8449_v35 = vpop.f32.mrf.mxu0 }
 0x301   : > { %8847 = vst [vmem:[#allocation54_spill] sm:$0xff] %v8449_v35  ;;  %v4506_v35 = vadd.f32 %v6362_v31, %v4200_v14  ;;  %v4504_v34 = vadd.f32 %v4377_v2, %v4198_v30  ;;  %v4204_v31 = vadd.f32 %v8253_v6, %v8236_v15 }
 0x302   : > { %v8453_v39 = vpop.f32.mrf.mxu0 }
 0x303   : > { %8849 = vst [vmem:[#allocation56_spill] sm:$0xff] %v8453_v39  ;;  %v4812_v39 = vadd.f32 %v6410_v17, %v4506_v35  ;;  %v4810_v3 = vadd.f32 %v4683_v36, %v4504_v34  ;;  %v4505_v35 = vadd.f32 %v8381_v44, %v4199_v23  ;;  %v4202_v17 = vadd.f32 %v8258_v7, %v8241_v33 }
 0x304   : > { %v8455_v46 = vpop.f32.mrf.mxu0  ;;  %v4510_v24 = vadd.f32 %v8383_v50, %v4204_v31  ;;  %v4203_v50 = vadd.f32 %v8268_v49, %v8251_v61 }
 0x305   : > { %8850 = vst [vmem:[#allocation57_spill] sm:$0xff] %v8455_v46  ;;  %v4201_v46 = vadd.f32 %v8243_v55, %v8226_v26  ;;  %v4811_v48 = vadd.f32 %v8389_v56, %v4505_v35  ;;  %v4508_v33 = vadd.f32 %v8385_v5, %v4202_v17 }
 0x306   : > { %v8459_v19 = vpop.f32.mrf.mxu0  ;;  %v4816_v36 = vadd.f32 %v8393_v52, %v4510_v24 }
 0x307   : > { %v4507_v18 = vadd.f32 %v6363_v20, %v4201_v46 }
 0x308   : > { %v8463_v45 = vpop.f32.mrf.mxu0 }
 0x309   : > { %v4813_v55 = vadd.f32 %v6411_v27, %v4507_v18  ;;  %v4509_v18 = vadd.f32 %v8391_v60, %v4203_v50 }
 0x30a   : > { %v8469_v28 = vpop.f32.mrf.mxu0 }
 0x30b   : > { %8852 = vst [vmem:[#allocation59_spill] sm:$0xff] %v8469_v28  ;;  %v8483_v28 = vpop.f32.mrf.mxu1 }
 0x30c   : > { %v6458_v37 = vpop.f32.mrf.mxu0 }
 0x30d   : > { %v5118_v14 = vadd.f32 %v6458_v37, %v4812_v39  ;;  %v4205_v37 = vadd.f32 %v8263_v38, %v8246_v54  ;;  %v8500_v7 = vpop.f32.mrf.mxu1  ;;  %v4814_v54 = vadd.f32 %v8397_v43, %v4508_v33 }
 0x30e   : > { %v4989_v26 = vpop.f32.mrf.mxu0 }
 0x30f   : > { %v5157_v30 = vadd.f32 %v8476_v1, %v5118_v14  ;;  %v5116_v2 = vadd.f32 %v4989_v26, %v4810_v3  ;;  %v4511_v27 = vadd.f32 %v8387_v32, %v4205_v37  ;;  %v4208_v3 = vadd.f32 %v8273_v11, %v8256_v22  ;;  %v8514_v14 = vpop.f32.mrf.mxu1 }
 0x310   : > { %v6459_v15 = vpop.f32.mrf.mxu0  ;;  %v4206_v26 = vadd.f32 %v8278_v40, %v8261_v21  ;;  %v4815_v22 = vadd.f32 %v8409_v53, %v4509_v18 }
 0x311   : > { %v5189_v6 = vmax.f32 %v5157_v30, 0.0  ;;  %v5155_v46 = vadd.f32 %v8476_v1, %v5116_v2  ;;  %v5119_v39 = vadd.f32 %v6459_v15, %v4813_v55  ;;  %v4817_v61 = vadd.f32 %v8403_v10, %v4511_v27  ;;  %v8528_v17 = vpop.f32.mrf.mxu1  ;;  %v8855_v27 = vld [vmem:[#allocation40_spill] sm:$0xff] }
 0x312   : > { %v4992_v34 = vpop.f32.mrf.mxu0  ;;  %v4514_v55 = vadd.f32 %v8395_v9, %v4208_v3  ;;  %v4209_v30 = vadd.f32 %v8283_v42, %v8266_v4  ;;  %v4512_v2 = vadd.f32 %v8399_v47, %v4206_v26  ;;  %v4207_v15 = vadd.f32 %v8288_v51, %v8271_v25  ;;  %v8858_v3 = vld [vmem:[#allocation5_spill] sm:$0xff] }
 0x313   : > { %5221 = vst [vmem:[%s8493_s21 + $0x10] sm:$0xff] %v5189_v6  ;;  %v5187_v44 = vmax.f32 %v5155_v46, 0.0  ;;  %v5158_v56 = vadd.f32 %v8476_v1, %v5119_v39  ;;  %v5117_v20 = vadd.f32 %v4992_v34, %v4811_v48  ;;  %v4212_v46 = vadd.f32 %v8293_v57, %v8276_v59  ;;  %v8542_v37 = vpop.f32.mrf.mxu1 }
 0x314   : > { %v6462_v23 = vpop.f32.mrf.mxu0  ;;  %v4820_v21 = vadd.f32 %v8415_v63, %v4514_v55  ;;  %v4515_v48 = vadd.f32 %v8401_v16, %v4209_v30  ;;  %v4818_v4 = vadd.f32 %v8421_v8, %v4512_v2  ;;  %v4513_v39 = vadd.f32 %v8405_v62, %v4207_v15 }
 0x315   : > { %5219 = vst [vmem:[%s8493_s21] sm:$0xff] %v5187_v44  ;;  %v5190_v38 = vmax.f32 %v5158_v56, 0.0  ;;  %v5156_v5 = vadd.f32 %v8476_v1, %v5117_v20  ;;  %v5122_v52 = vadd.f32 %v6462_v23, %v4816_v36  ;;  %v4210_v34 = vadd.f32 %v8298_v29, %v8281_v58  ;;  %v8853_v56 = vld [vmem:[#allocation16_spill] sm:$0xff]  ;;  %v8854_v20 = vld [vmem:[#allocation19_spill] sm:$0xff]  ;;  %v8856_v58 = vld [vmem:[#allocation49_spill] sm:$0xff] }
 0x316   : > { %v5005_v31 = vpop.f32.mrf.mxu0  ;;  %v4821_v25 = vadd.f32 %v8427_v12, %v4515_v48  ;;  %v4518_v36 = vadd.f32 %v8407_v13, %v4212_v46  ;;  %v4819_v59 = vadd.f32 %v8433_v41, %v4513_v39  ;;  %v4213_v50 = vadd.f32 %v8854_v20, %v8853_v56  ;;  %v8865_v48 = vld [vmem:[#allocation4_spill] sm:$0xff]  ;;  %v8868_v46 = vld [vmem:[#allocation58_spill] sm:$0xff] }
 0x317   : > { %5222 = vst [vmem:[%s8493_s21 + $0x18] sm:$0xff] %v5190_v38  ;;  %v5188_v49 = vmax.f32 %v5156_v5, 0.0  ;;  %v5161_v43 = vadd.f32 %v8476_v1, %v5122_v52  ;;  %v5120_v32 = vadd.f32 %v5005_v31, %v4814_v54  ;;  %v4516_v23 = vadd.f32 %v8855_v27, %v4210_v34  ;;  %v8556_v54 = vpop.f32.mrf.mxu1  ;;  %v8857_v52 = vld [vmem:[#allocation3_spill] sm:$0xff]  ;;  %v8873_v27 = vld [vmem:[#allocation25_spill] sm:$0xff] }
 0x318   : > { %v6463_v35 = vpop.f32.mrf.mxu0  ;;  %v4824_v29 = vadd.f32 %v8856_v58, %v4518_v36  ;;  %v4211_v18 = vadd.f32 %v8858_v3, %v8857_v52  ;;  %v8859_v31 = vld [vmem:[#allocation15_spill] sm:$0xff]  ;;  %v8875_v52 = vld [vmem:[#allocation22_spill] sm:$0xff] }
 0x319   : > { %5220 = vst [vmem:[%s8493_s21 + $0x8] sm:$0xff] %v5188_v49  ;;  %v5193_v11 = vmax.f32 %v5161_v43, 0.0  ;;  %v5159_v60 = vadd.f32 %v8476_v1, %v5120_v32  ;;  %v5123_v10 = vadd.f32 %v6463_v35, %v4817_v61  ;;  %v4519_v61 = vadd.f32 %v8859_v31, %v4213_v50  ;;  %v8860_v43 = vld [vmem:[#allocation52_spill] sm:$0xff]  ;;  %v8570_v2 = vpop.f32.mrf.mxu1  ;;  %v8871_v36 = vld [vmem:[#allocation43_spill] sm:$0xff]  ;;  %v8872_v50 = vld [vmem:[#allocation21_spill] sm:$0xff] }
 0x31a   : > { %v5008_v24 = vpop.f32.mrf.mxu0  ;;  %v4822_v32 = vadd.f32 %v8860_v43, %v4516_v23  ;;  %v4215_v23 = vadd.f32 %v8873_v27, %v8872_v50  ;;  %v8876_v3 = vld [vmem:[#allocation27_spill] sm:$0xff]  ;;  %v8877_v31 = vld [vmem:[#allocation45_spill] sm:$0xff] }
 0x31b   : > { %5225 = vst [vmem:[%s8493_s21 + $0x30] sm:$0xff] %v5193_v11  ;;  %v5191_v40 = vmax.f32 %v5159_v60, 0.0  ;;  %v5162_v53 = vadd.f32 %v8476_v1, %v5123_v10  ;;  %v5121_v9 = vadd.f32 %v5008_v24, %v4815_v22  ;;  %v8861_v22 = vld [vmem:[#allocation17_spill] sm:$0xff]  ;;  %v8862_v11 = vld [vmem:[#allocation20_spill] sm:$0xff] }
 0x31c   : > { %v6466_v6 = vpop.f32.mrf.mxu0  ;;  %v4216_v60 = vadd.f32 %v8862_v11, %v8861_v22  ;;  %v8863_v10 = vld [vmem:[#allocation41_spill] sm:$0xff] }
 0x31d   : > { %5223 = vst [vmem:[%s8493_s21 + $0x20] sm:$0xff] %v5191_v40  ;;  %v5194_v42 = vmax.f32 %v5162_v53, 0.0  ;;  %v5160_v47 = vadd.f32 %v8476_v1, %v5121_v9  ;;  %v5126_v63 = vadd.f32 %v6466_v6, %v4820_v21  ;;  %v4517_v30 = vadd.f32 %v8863_v10, %v4211_v18  ;;  %v8864_v21 = vld [vmem:[#allocation55_spill] sm:$0xff]  ;;  %v8866_v6 = vld [vmem:[#allocation6_spill] sm:$0xff]  ;;  %v8879_v22 = vld [vmem:[#allocation9_spill] sm:$0xff] }
 0x31e   : > { %v5021_v33 = vpop.f32.mrf.mxu0  ;;  %v4825_v40 = vadd.f32 %v8864_v21, %v4519_v61  ;;  %v4220_v18 = vadd.f32 %v8876_v3, %v8875_v52  ;;  %v4521_v61 = vadd.f32 %v8877_v31, %v4215_v23 }
 0x31f   : > { %5226 = vst [vmem:[%s8493_s21 + $0x38] sm:$0xff] %v5194_v42  ;;  %v5192_v51 = vmax.f32 %v5160_v47, 0.0  ;;  %v5165_v8 = vadd.f32 %v8476_v1, %v5126_v63  ;;  %v5124_v16 = vadd.f32 %v5021_v33, %v4818_v4  ;;  %v4214_v4 = vadd.f32 %v8866_v6, %v8865_v48  ;;  %v8867_v42 = vld [vmem:[#allocation42_spill] sm:$0xff]  ;;  %v8883_v48 = vld [vmem:[#allocation47_spill] sm:$0xff] }
 0x320   : > { %v6467_v44 = vpop.f32.mrf.mxu0  ;;  %v4522_v47 = vadd.f32 %v8867_v42, %v4216_v60  ;;  %v4823_v39 = vadd.f32 %v8868_v46, %v4517_v30  ;;  %v8880_v60 = vld [vmem:[#allocation46_spill] sm:$0xff] }
 0x321   : > { %5224 = vst [vmem:[%s8493_s21 + $0x28] sm:$0xff] %v5192_v51  ;;  %v5197_v57 = vmax.f32 %v5165_v8, 0.0  ;;  %v5163_v62 = vadd.f32 %v8476_v1, %v5124_v16  ;;  %v5127_v12 = vadd.f32 %v6467_v44, %v4821_v25  ;;  %v8869_v8 = vld [vmem:[#allocation18_spill] sm:$0xff]  ;;  %v8870_v16 = vld [vmem:[#allocation24_spill] sm:$0xff]  ;;  %v4520_v44 = vadd.f32 %v8871_v36, %v4214_v4 }
 0x322   : > { %v5024_v38 = vpop.f32.mrf.mxu0  ;;  %v4217_v34 = vadd.f32 %v8870_v16, %v8869_v8  ;;  %v4526_v10 = vadd.f32 %v8880_v60, %v4220_v18 }
 0x323   : > { %5229 = vst [vmem:[%s8493_s21 + $0x50] sm:$0xff] %v5197_v57  ;;  %v5195_v13 = vmax.f32 %v5163_v62, 0.0  ;;  %v5166_v41 = vadd.f32 %v8476_v1, %v5127_v12  ;;  %v5125_v5 = vadd.f32 %v5024_v38, %v4819_v59  ;;  %v8584_v59 = vpop.f32.mrf.mxu1  ;;  %v4828_v62 = vadd.f32 %v8467_v0, %v4522_v47  ;;  %v8874_v38 = vld [vmem:[#allocation44_spill] sm:$0xff] }
 0x324   : > { %v6470_v49 = vpop.f32.mrf.mxu0  ;;  %v4523_v58 = vadd.f32 %v8874_v38, %v4217_v34  ;;  %v4832_v47 = vadd.f32 %v8528_v17, %v4526_v10  ;;  %v8896_v10 = vld [vmem:[#allocation31_spill] sm:$0xff] }
 0x325   : > { %5227 = vst [vmem:[%s8493_s21 + $0x40] sm:$0xff] %v5195_v13  ;;  %v5198_v26 = vmax.f32 %v5166_v41, 0.0  ;;  %v5164_v55 = vadd.f32 %v8476_v1, %v5125_v5  ;;  %v5130_v35 = vadd.f32 %v6470_v49, %v4824_v29  ;;  %v4826_v13 = vadd.f32 %v8483_v28, %v4520_v44  ;;  %v4779_v49 = vpop.f32.mrf.mxu1 }
 0x326   : > { %v5037_v24 = vpop.f32.mrf.mxu0 }
 0x327   : > { %5230 = vst [vmem:[%s8493_s21 + $0x58] sm:$0xff] %v5198_v26  ;;  %v5196_v53 = vmax.f32 %v5164_v55, 0.0  ;;  %v5169_v9 = vadd.f32 %v8476_v1, %v5130_v35  ;;  %v5128_v15 = vadd.f32 %v5037_v24, %v4822_v32  ;;  %v4829_v32 = vadd.f32 %v8500_v7, %v4523_v58  ;;  %v8878_v35 = vld [vmem:[#allocation23_spill] sm:$0xff]  ;;  %v6435_v4 = vpop.f32.mrf.mxu1 }
 0x328   : > { %v6471_v63 = vpop.f32.mrf.mxu0  ;;  %v4218_v11 = vadd.f32 %v8879_v22, %v8878_v35  ;;  %v4827_v24 = vadd.f32 %v8514_v14, %v4521_v61  ;;  %v8893_v61 = vld [vmem:[#allocation30_spill] sm:$0xff] }
 0x329   : > { %5228 = vst [vmem:[%s8493_s21 + $0x48] sm:$0xff] %v5196_v53  ;;  %v5201_v33 = vmax.f32 %v5169_v9, 0.0  ;;  %v5167_v25 = vadd.f32 %v8476_v1, %v5128_v15  ;;  %v5131_v51 = vadd.f32 %v6471_v63, %v4825_v40  ;;  %v8881_v53 = vld [vmem:[#allocation7_spill] sm:$0xff]  ;;  %v8882_v9 = vld [vmem:[#allocation28_spill] sm:$0xff]  ;;  %v4782_v50 = vpop.f32.mrf.mxu1 }
 0x32a   : > { %v5040_v57 = vpop.f32.mrf.mxu0  ;;  %v4221_v15 = vadd.f32 %v8882_v9, %v8881_v53  ;;  %v4524_v6 = vadd.f32 %v8883_v48, %v4218_v11 }
 0x32b   : > { %5233 = vst [vmem:[%s8493_s21 + $0x70] sm:$0xff] %v5201_v33  ;;  %v5199_v12 = vmax.f32 %v5167_v25, 0.0  ;;  %v5170_v56 = vadd.f32 %v8476_v1, %v5131_v51  ;;  %v5129_v20 = vadd.f32 %v5040_v57, %v4823_v39  ;;  %v8884_v39 = vld [vmem:[#allocation8_spill] sm:$0xff]  ;;  %v8885_v33 = vld [vmem:[#allocation10_spill] sm:$0xff] }
 0x32c   : > { %v6474_v29 = vpop.f32.mrf.mxu0  ;;  %v4219_v25 = vadd.f32 %v8885_v33, %v8884_v39  ;;  %v8886_v51 = vld [vmem:[#allocation48_spill] sm:$0xff]  ;;  %v4830_v34 = vadd.f32 %v8542_v37, %v4524_v6  ;;  %v8887_v57 = vld [vmem:[#allocation26_spill] sm:$0xff]  ;;  %v8900_v6 = vld [vmem:[#allocation37_spill] sm:$0xff] }
 0x32d   : > { %5231 = vst [vmem:[%s8493_s21 + $0x60] sm:$0xff] %v5199_v12  ;;  %v5202_v41 = vmax.f32 %v5170_v56, 0.0  ;;  %v5168_v5 = vadd.f32 %v8476_v1, %v5129_v20  ;;  %v5134_v0 = vadd.f32 %v6474_v29, %v4828_v62  ;;  %v4527_v8 = vadd.f32 %v8886_v51, %v4221_v15  ;;  %v8888_v62 = vld [vmem:[#allocation32_spill] sm:$0xff]  ;;  %v8889_v56 = vld [vmem:[#allocation50_spill] sm:$0xff]  ;;  %v8890_v29 = vld [vmem:[#allocation29_spill] sm:$0xff] }
 0x32e   : > { %v5053_v43 = vpop.f32.mrf.mxu0  ;;  %v4224_v12 = vadd.f32 %v8888_v62, %v8887_v57  ;;  %v4525_v20 = vadd.f32 %v8889_v56, %v4219_v25  ;;  %v8902_v51 = vld [vmem:[#allocation12_spill] sm:$0xff]  ;;  %v8906_v56 = vld [vmem:[#allocation14_spill] sm:$0xff] }
 0x32f   : > { %5234 = vst [vmem:[%s8493_s21 + $0x78] sm:$0xff] %v5202_v41  ;;  %v5200_v26 = vmax.f32 %v5168_v5, 0.0  ;;  %v5173_v28 = vadd.f32 %v8476_v1, %v5134_v0  ;;  %v5132_v55 = vadd.f32 %v5053_v43, %v4826_v13  ;;  %v4833_v23 = vadd.f32 %v8556_v54, %v4527_v8  ;;  %v8891_v13 = vld [vmem:[#allocation33_spill] sm:$0xff]  ;;  %v8892_v5 = vld [vmem:[#allocation51_spill] sm:$0xff]  ;;  %v8903_v8 = vld [vmem:[#allocation38_spill] sm:$0xff] }
 0x330   : > { %v6475_v30 = vpop.f32.mrf.mxu0  ;;  %v4222_v41 = vadd.f32 %v8891_v13, %v8890_v29  ;;  %v4530_v0 = vadd.f32 %v8892_v5, %v4224_v12  ;;  %v4831_v3 = vadd.f32 %v8570_v2, %v4525_v20  ;;  %v8894_v43 = vld [vmem:[#allocation35_spill] sm:$0xff]  ;;  %v8907_v13 = vld [vmem:[#allocation36_spill] sm:$0xff] }
 0x331   : > { %5232 = vst [vmem:[%s8493_s21 + $0x68] sm:$0xff] %v5200_v26  ;;  %v5205_v21 = vmax.f32 %v5173_v28, 0.0  ;;  %v5171_v40 = vadd.f32 %v8476_v1, %v5132_v55  ;;  %v5135_v7 = vadd.f32 %v6475_v30, %v4829_v32  ;;  %v4225_v32 = vadd.f32 %v8894_v43, %v8893_v61  ;;  %v8895_v26 = vld [vmem:[#allocation53_spill] sm:$0xff]  ;;  %v6438_v55 = vpop.f32.mrf.mxu1 }
 0x332   : > { %v5056_v42 = vpop.f32.mrf.mxu0  ;;  %v4528_v28 = vadd.f32 %v8895_v26, %v4222_v41  ;;  %v4836_v22 = vadd.f32 %v8584_v59, %v4530_v0  ;;  %v8897_v30 = vld [vmem:[#allocation13_spill] sm:$0xff]  ;;  %v8899_v59 = vld [vmem:[#allocation11_spill] sm:$0xff] }
 0x333   : > { %5237 = vst [vmem:[%s8493_s21 + $0x90] sm:$0xff] %v5205_v21  ;;  %v5203_v63 = vmax.f32 %v5171_v40, 0.0  ;;  %v5174_v14 = vadd.f32 %v8476_v1, %v5135_v7  ;;  %v5133_v46 = vadd.f32 %v5056_v42, %v4827_v24  ;;  %v4223_v24 = vadd.f32 %v8897_v30, %v8896_v10  ;;  %v8898_v21 = vld [vmem:[#allocation54_spill] sm:$0xff]  ;;  %v8908_v41 = vld [vmem:[#allocation39_spill] sm:$0xff] }
 0x334   : > { %v6478_v16 = vpop.f32.mrf.mxu0  ;;  %v4531_v40 = vadd.f32 %v8898_v21, %v4225_v32  ;;  %v4834_v53 = vadd.f32 %v4779_v49, %v4528_v28  ;;  %v4228_v42 = vadd.f32 %v8900_v6, %v8899_v59  ;;  %v4227_v5 = vadd.f32 %v8908_v41, %v8907_v13 }
 0x335   : > { %5235 = vst [vmem:[%s8493_s21 + $0x80] sm:$0xff] %v5203_v63  ;;  %v5206_v36 = vmax.f32 %v5174_v14, 0.0  ;;  %v5172_v44 = vadd.f32 %v8476_v1, %v5133_v46  ;;  %v5138_v17 = vadd.f32 %v6478_v16, %v4832_v47  ;;  %v8901_v47 = vld [vmem:[#allocation56_spill] sm:$0xff]  ;;  %v4795_v14 = vpop.f32.mrf.mxu1  ;;  %v4226_v16 = vadd.f32 %v8903_v8, %v8902_v51 }
 0x336   : > { %v5069_v27 = vpop.f32.mrf.mxu0  ;;  %v4529_v63 = vadd.f32 %v8901_v47, %v4223_v24  ;;  %v4837_v39 = vadd.f32 %v6435_v4, %v4531_v40  ;;  %v8905_v4 = vld [vmem:[#allocation34_spill] sm:$0xff] }
 0x337   : > { %5238 = vst [vmem:[%s8493_s21 + $0x98] sm:$0xff] %v5206_v36  ;;  %v5204_v38 = vmax.f32 %v5172_v44, 0.0  ;;  %v5177_v37 = vadd.f32 %v8476_v1, %v5138_v17  ;;  %v5136_v58 = vadd.f32 %v5069_v27, %v4830_v34  ;;  %v8904_v34 = vld [vmem:[#allocation57_spill] sm:$0xff]  ;;  %v4229_v20 = vadd.f32 %v8906_v56, %v8905_v4 }
 0x338   : > { %v6479_v52 = vpop.f32.mrf.mxu0  ;;  %v4534_v36 = vadd.f32 %v8904_v34, %v4228_v42  ;;  %v4835_v17 = vadd.f32 %v4782_v50, %v4529_v63  ;;  %v4532_v27 = vadd.f32 %v8459_v19, %v4226_v16 }
 0x339   : > { %5236 = vst [vmem:[%s8493_s21 + $0x88] sm:$0xff] %v5204_v38  ;;  %v5209_v18 = vmax.f32 %v5177_v37, 0.0  ;;  %v5175_v31 = vadd.f32 %v8476_v1, %v5136_v58  ;;  %v5139_v54 = vadd.f32 %v6479_v52, %v4833_v23  ;;  %v6439_v23 = vpop.f32.mrf.mxu1  ;;  %v4535_v0 = vadd.f32 %v8463_v45, %v4229_v20 }
 0x33a   : > { %v5072_v35 = vpop.f32.mrf.mxu0  ;;  %v4840_v37 = vadd.f32 %v6438_v55, %v4534_v36 }
 0x33b   : > { %5241 = vst [vmem:[%s8493_s21 + $0xb0] sm:$0xff] %v5209_v18  ;;  %v5207_v11 = vmax.f32 %v5175_v31, 0.0  ;;  %v5178_v2 = vadd.f32 %v8476_v1, %v5139_v54  ;;  %v5137_v60 = vadd.f32 %v5072_v35, %v4831_v3  ;;  %v4838_v3 = vadd.f32 %v4795_v14, %v4532_v27  ;;  %v8909_v54 = vld [vmem:[#allocation59_spill] sm:$0xff]  ;;  %v4798_v43 = vpop.f32.mrf.mxu1 }
 0x33c   : > { %v6482_v7 = vpop.f32.mrf.mxu0  ;;  %v4533_v61 = vadd.f32 %v8909_v54, %v4227_v5  ;;  %v4841_v26 = vadd.f32 %v6439_v23, %v4535_v0 }
 0x33d   : > { %5239 = vst [vmem:[%s8493_s21 + $0xa0] sm:$0xff] %v5207_v11  ;;  %v5210_v9 = vmax.f32 %v5178_v2, 0.0  ;;  %v5176_v15 = vadd.f32 %v8476_v1, %v5137_v60  ;;  %v5142_v48 = vadd.f32 %v6482_v7, %v4836_v22 }
 0x33e   : > { %v5085_v46 = vpop.f32.mrf.mxu0  ;;  %v4839_v22 = vadd.f32 %v4798_v43, %v4533_v61 }
 0x33f   : > { %5242 = vst [vmem:[%s8493_s21 + $0xb8] sm:$0xff] %v5210_v9  ;;  %v5208_v33 = vmax.f32 %v5176_v15, 0.0  ;;  %v5181_v25 = vadd.f32 %v8476_v1, %v5142_v48  ;;  %v5140_v49 = vadd.f32 %v5085_v46, %v4834_v53 }
 0x340   : > { %v6483_v44 = vpop.f32.mrf.mxu0 }
 0x341   : > { %5240 = vst [vmem:[%s8493_s21 + $0xa8] sm:$0xff] %v5208_v33  ;;  %v5213_v57 = vmax.f32 %v5181_v25, 0.0  ;;  %v5179_v62 = vadd.f32 %v8476_v1, %v5140_v49  ;;  %v5143_v12 = vadd.f32 %v6483_v44, %v4837_v39 }
 0x342   : > { %v5088_v38 = vpop.f32.mrf.mxu0 }
 0x343   : > { %5245 = vst [vmem:[%s8493_s21 + $0xd0] sm:$0xff] %v5213_v57  ;;  %v5211_v58 = vmax.f32 %v5179_v62, 0.0  ;;  %v5182_v29 = vadd.f32 %v8476_v1, %v5143_v12  ;;  %v5141_v50 = vadd.f32 %v5088_v38, %v4835_v17 }
 0x344   : > { %v6486_v52 = vpop.f32.mrf.mxu0 }
 0x345   : > { %5243 = vst [vmem:[%s8493_s21 + $0xc0] sm:$0xff] %v5211_v58  ;;  %v5214_v18 = vmax.f32 %v5182_v29, 0.0  ;;  %v5180_v19 = vadd.f32 %v8476_v1, %v5141_v50  ;;  %v5146_v31 = vadd.f32 %v6486_v52, %v4840_v37 }
 0x346   : > { %v5101_v32 = vpop.f32.mrf.mxu0 }
 0x347   : > { %5246 = vst [vmem:[%s8493_s21 + $0xd8] sm:$0xff] %v5214_v18  ;;  %v5212_v28 = vmax.f32 %v5180_v19, 0.0  ;;  %v5185_v55 = vadd.f32 %v8476_v1, %v5146_v31  ;;  %v5144_v45 = vadd.f32 %v5101_v32, %v4838_v3 }
 0x348   : > { %v6487_v35 = vpop.f32.mrf.mxu0 }
 0x349   : > { %5244 = vst [vmem:[%s8493_s21 + $0xc8] sm:$0xff] %v5212_v28  ;;  %v5217_v11 = vmax.f32 %v5185_v55, 0.0  ;;  %v5183_v2 = vadd.f32 %v8476_v1, %v5144_v45  ;;  %v5147_v60 = vadd.f32 %v6487_v35, %v4841_v26 }
 0x34a   : > { %v5104_v10 = vpop.f32.mrf.mxu0 }
 0x34b   : > { %5249 = vst [vmem:[%s8493_s21 + $0xf0] sm:$0xff] %v5217_v11  ;;  %v5215_v30 = vmax.f32 %v5183_v2, 0.0  ;;  %v5186_v24 = vadd.f32 %v8476_v1, %v5147_v60  ;;  %v5145_v21 = vadd.f32 %v5104_v10, %v4839_v22 }
 0x34d   : > { %5247 = vst [vmem:[%s8493_s21 + $0xe0] sm:$0xff] %v5215_v30  ;;  %v5218_v40 = vmax.f32 %v5186_v24, 0.0  ;;  %v5184_v7 = vadd.f32 %v8476_v1, %v5145_v21 }
 0x34f   : > { %5250 = vst [vmem:[%s8493_s21 + $0xf8] sm:$0xff] %v5218_v40  ;;  %v5216_v53 = vmax.f32 %v5184_v7, 0.0 }
 0x351   : > { %5248 = vst [vmem:[%s8493_s21 + $0xe8] sm:$0xff] %v5216_v53 }
 0x352 PF: > { %s15_s18 = sadd.s32 1, %s6691_s18  }
 0x353   : > { %p12_p4 = scmp.ge.s32.totalorder %s15_s18, 4  }
 0x355   :  { %14 = sbr.rel (!%p12_p4) target bundleno = 1 (0x1), region = 81 }

</bundles_post_ra>
